<compile_context>
chip_gen: v6e
topology: v6e:2x2x1
jax: 0.10.0
libtpu: 0.0.40
codegen_flags: <defaults>
</compile_context>

<pallas_src>
import jax
import jax.numpy as jnp
from jax import lax
from jax.experimental import pallas as pl
from jax.experimental.pallas import tpu as pltpu

PAD = 1          # both convs use padding=1
SUB1 = 0.5       # subtracted after conv1
SUB2 = 0.6       # subtracted after conv2
GUARD = 32       # zero guard lanes so negative conv1 tap offsets stay in range
MAX_NB = 16      # images per grid step (VMEM-safe on v5e/v6e/v7x)


def _pick_nb(n):
    if n <= MAX_NB:
        return n
    for cand in range(MAX_NB, 0, -1):
        if n % cand == 0:
            return cand
    return 1


def _make_kernel(NB, C1, C2, C3, K1, K2, Hp, Wp, OH2, OW2, L2):
    """Fused conv1 -> (bias-0.5) -> relu -> conv2 -> (bias-0.6) -> relu -> mean."""
    F = Hp * Wp
    NBF = NB * F
    inv_count = 1.0 / float(OH2 * OW2 * C3)

    def kernel(x_ref, w1_ref, b1_ref, w2_ref, b2_ref, mask_ref, seg_ref, o_ref):
        # x_ref block: (1, C1, GUARD + NB*F + GUARD) -- pre-padded flat frames.
        xa = x_ref[0]                                            # (C1, G+NBF+G)

        # ---------------- conv1: tap accumulation on the VPU ----------------
        # acc1[co, q] = sum_{ci,kh,kw} W1[co,ci,kh,kw] * frameA[ci, q + d1]
        # with d1 = (kh-1)*Wp + (kw-1); result indexed in the conv2-input frame.
        acc1 = jnp.zeros((C2, NBF), jnp.float32)
        for kh in range(K1):
            for kw in range(K1):
                d = (kh - PAD) * Wp + (kw - PAD)                 # in [-19, +19]
                win = xa[:, GUARD + d: GUARD + d + NBF]          # (C1, NBF)
                wt = w1_ref[kh * K1 + kw]                        # (C2, C1)
                for ci in range(C1):                             # K=3 -> VPU FMAs
                    acc1 = acc1 + wt[:, ci:ci + 1] * win[ci:ci + 1, :]
        # (bias - 0.5) folded; interior mask zeroes the conv2 halo + garbage.
        frame_b = jnp.maximum(acc1 + b1_ref[...], 0.0) * mask_ref[...]   # (C2, NBF)

        # ---------------- conv2: per-tap MXU matmuls, spatial on lanes -------
        acc2 = jnp.zeros((C3, L2), jnp.float32)
        for kh in range(K2):
            for kw in range(K2):
                d = kh * Wp + kw                                  # in [0, 57]
                win = frame_b[:, d: d + L2]                       # (C2, L2)
                wt = w2_ref[kh * K2 + kw]                         # (C3, C2)
                acc2 = acc2 + jnp.dot(wt, win,
                                      preferred_element_type=jnp.float32)
        y2 = jnp.maximum(acc2 + b2_ref[...], 0.0)                 # (C3, L2)

        # -------- flatten + mean: masked per-batch segment sum via MXU -------
        per_cb = jnp.dot(y2, seg_ref[...],
                         preferred_element_type=jnp.float32)      # (C3, NB)
        means = jnp.sum(per_cb, axis=0, keepdims=True) * inv_count  # (1, NB)

        o_ref[...] = jnp.zeros_like(o_ref)                        # full (8,128) slab
        o_ref[0, 0:1, 0:NB] = means                               # lane segment write

    return kernel


def fused_forward(x_nchw, w1_oihw, b1, w2_oihw, b2):
    N, C1, H, W = x_nchw.shape
    C2, _, K1, _ = w1_oihw.shape
    C3, _, K2, _ = w2_oihw.shape

    Hp, Wp = H + 2 * PAD, W + 2 * PAD          # conv1 padded frame (also conv2 input frame)
    F = Hp * Wp
    assert Hp - K1 + 1 == H and Wp - K1 + 1 == W    # conv1 is 'same'
    OH2, OW2 = Hp - K2 + 1, Wp - K2 + 1        # conv2 output (15 x 15 for 16x16 input)

    NB = _pick_nb(N)
    num_chunks = N // NB
    NBF = NB * F
    L2 = (NB - 1) * F + (OH2 - 1) * Wp + OW2   # flat range covering valid conv2 outputs
    assert (K2 - 1) * Wp + (K2 - 1) + L2 <= NBF
    assert GUARD >= PAD * Wp + PAD

    # ----------------------- wrapper-side layout prep ------------------------
    # conv1 input as zero-padded flat frames, batch-major on the lane axis,
    # with GUARD zero lanes so negative tap offsets never leave the block.
    xf = jnp.transpose(x_nchw, (1, 0, 2, 3))                        # (C1, N, H, W)
    xf = jnp.pad(xf, ((0, 0), (0, 0), (PAD, PAD), (PAD, PAD)))      # (C1, N, Hp, Wp)
    xf = xf.reshape(C1, num_chunks, NBF)                            # (C1, nc, NB*F)
    xf = jnp.transpose(xf, (1, 0, 2))                               # (nc, C1, NB*F)
    xf = jnp.pad(xf, ((0, 0), (0, 0), (GUARD, GUARD)))              # (nc, C1, G+NB*F+G)

    # per-tap (Cout, Cin) weight matrices; (bias - sub_const) folded once.
    w1t = jnp.transpose(w1_oihw, (2, 3, 0, 1)).reshape(K1 * K1, C2, C1)
    w2t = jnp.transpose(w2_oihw, (2, 3, 0, 1)).reshape(K2 * K2, C3, C2)
    b1f = (b1 - SUB1).reshape(C2, 1).astype(jnp.float32)
    b2f = (b2 - SUB2).reshape(C3, 1).astype(jnp.float32)

    # interior mask of the conv1-output frame: zeroes conv2's 1-pixel halo and
    # any cross-batch / wrap garbage in one VPU multiply.
    fm = jnp.zeros((Hp, Wp), jnp.float32).at[PAD:PAD + H, PAD:PAD + W].set(1.0)
    mask_b = jnp.tile(fm.reshape(F), (NB,)).reshape(1, NBF)

    # segment selector: column n picks batch n's valid conv2 output positions.
    v2 = jnp.zeros((Hp, Wp), jnp.float32).at[:OH2, :OW2].set(1.0).reshape(F)
    seg = jnp.kron(jnp.eye(NB, dtype=jnp.float32), v2[:, None])[:L2]   # (L2, NB)

    kernel = _make_kernel(NB, C1, C2, C3, K1, K2, Hp, Wp, OH2, OW2, L2)

    out3 = pl.pallas_call(
        kernel,
        out_shape=jax.ShapeDtypeStruct((num_chunks, 8, 128), jnp.float32),
        grid=(num_chunks,),
        in_specs=[
            pl.BlockSpec((1, C1, xf.shape[-1]), lambda i: (i, 0, 0)),
            pl.BlockSpec(w1t.shape, lambda i: (0, 0, 0)),
            pl.BlockSpec(b1f.shape, lambda i: (0, 0)),
            pl.BlockSpec(w2t.shape, lambda i: (0, 0, 0)),
            pl.BlockSpec(b2f.shape, lambda i: (0, 0)),
            pl.BlockSpec(mask_b.shape, lambda i: (0, 0)),
            pl.BlockSpec(seg.shape, lambda i: (0, 0)),
        ],
        out_specs=pl.BlockSpec((1, 8, 128), lambda i: (i, 0, 0)),
        compiler_params=pltpu.CompilerParams(
            dimension_semantics=("parallel",)),
    )(xf, w1t, b1f, w2t, b2f, mask_b, seg)

    return out3[:, 0, :NB].reshape(N)


@jax.jit
def model_forward(x_nchw, w1_oihw, b1, w2_oihw, b2):
    return fused_forward(x_nchw, w1_oihw, b1, w2_oihw, b2)   # shape (N,)


def reference_forward(x_nchw, w1_oihw, b1, w2_oihw, b2):
    def conv(x, w, b, pad):
        y = lax.conv_general_dilated(
            x, w, window_strides=(1, 1), padding=[(pad, pad), (pad, pad)],
            dimension_numbers=("NCHW", "OIHW", "NCHW"),
            precision=lax.Precision.HIGHEST)
        return y + b[None, :, None, None]

    v1 = conv(x_nchw, w1_oihw, b1, 1)
    v3 = jnp.maximum(v1 - SUB1, 0.0)
    v4 = conv(v3, w2_oihw, b2, 1)
    v6 = jnp.maximum(v4 - SUB2, 0.0)
    v7 = v6.reshape(v6.shape[0], -1)
    return jnp.mean(v7, axis=1)


if __name__ == "__main__":
    key = jax.random.PRNGKey(0)
    kx, kw1, kb1, kw2, kb2 = jax.random.split(key, 5)

    # Small shapes consistent with the module (channels 3 -> 8 -> 4).
    N, Cin, H, W = 2, 3, 16, 16
    x = jax.random.normal(kx, (N, Cin, H, W), jnp.float32)

    # Deterministic synthetic parameters (PyTorch conv weight layout: OIHW).
    w1 = 0.1 * jax.random.normal(kw1, (8, 3, 3, 3), jnp.float32)
    b1 = 0.1 * jax.random.normal(kb1, (8,), jnp.float32)
    w2 = 0.1 * jax.random.normal(kw2, (4, 8, 4, 4), jnp.float32)
    b2 = 0.1 * jax.random.normal(kb2, (4,), jnp.float32)

    out = jax.block_until_ready(model_forward(x, w1, b1, w2, b2))

    ref = reference_forward(x, w1, b1, w2, b2)
    assert out.shape == (N,), out.shape
    assert jnp.allclose(out, ref, rtol=1e-3, atol=1e-3), (out, ref)

    print("KERNEL_OK")
</pallas_src>

<mosaic_0001>
module attributes {stable_mosaic.version = 11 : i64} {
  func.func @kernel(%arg0: i32, %arg1: memref<1x3x712xf32, #tpu.memory_space<vmem>>, %arg2: memref<9x8x3xf32, #tpu.memory_space<vmem>>, %arg3: memref<8x1xf32, #tpu.memory_space<vmem>>, %arg4: memref<16x4x8xf32, #tpu.memory_space<vmem>>, %arg5: memref<4x1xf32, #tpu.memory_space<vmem>>, %arg6: memref<1x648xf32, #tpu.memory_space<vmem>>, %arg7: memref<591x2xf32, #tpu.memory_space<vmem>>, %arg8: memref<1x8x128xf32, #tpu.memory_space<vmem>>) attributes {dimension_semantics = [#tpu.dimension_semantics<parallel>], iteration_bounds = array<i64: 1>, scalar_prefetch = 0 : i64, scratch_operands = 0 : i64, tpu.core_type = #tpu.core_type<tc>, window_params = [{transform_indices = @transform_0, window_bounds = array<i64: 1, 3, 712>}, {pipeline_mode = #tpu.pipeline_mode<synchronous>, transform_indices = @transform_1, window_bounds = array<i64: 9, 8, 3>}, {pipeline_mode = #tpu.pipeline_mode<synchronous>, transform_indices = @transform_2, window_bounds = array<i64: 8, 1>}, {pipeline_mode = #tpu.pipeline_mode<synchronous>, transform_indices = @transform_3, window_bounds = array<i64: 16, 4, 8>}, {pipeline_mode = #tpu.pipeline_mode<synchronous>, transform_indices = @transform_4, window_bounds = array<i64: 4, 1>}, {pipeline_mode = #tpu.pipeline_mode<synchronous>, transform_indices = @transform_5, window_bounds = array<i64: 1, 648>}, {pipeline_mode = #tpu.pipeline_mode<synchronous>, transform_indices = @transform_6, window_bounds = array<i64: 591, 2>}, {transform_indices = @transform_7, window_bounds = array<i64: 1, 8, 128>}]} {
    %c0 = arith.constant 0 : index
    %c0_0 = arith.constant 0 : index
    %c0_1 = arith.constant 0 : index
    %0 = vector.load %arg1[%c0, %c0_0, %c0_1] : memref<1x3x712xf32, #tpu.memory_space<vmem>>, vector<1x3x712xf32>
    %1 = vector.shape_cast %0 : vector<1x3x712xf32> to vector<3x712xf32>
    %cst = arith.constant 0.000000e+00 : f32
    %2 = vector.broadcast %cst : f32 to vector<8x648xf32>
    %3 = vector.extract_strided_slice %1 {offsets = [0, 13], sizes = [3, 648], strides = [1, 1]} : vector<3x712xf32> to vector<3x648xf32>
    %c0_2 = arith.constant 0 : index
    %c0_3 = arith.constant 0 : index
    %c0_4 = arith.constant 0 : index
    %4 = vector.load %arg2[%c0_2, %c0_3, %c0_4] : memref<9x8x3xf32, #tpu.memory_space<vmem>>, vector<1x8x3xf32>
    %5 = vector.shape_cast %4 : vector<1x8x3xf32> to vector<8x3xf32>
    %6 = vector.extract_strided_slice %5 {offsets = [0, 0], sizes = [8, 1], strides = [1, 1]} : vector<8x3xf32> to vector<8x1xf32>
    %7 = vector.extract_strided_slice %3 {offsets = [0, 0], sizes = [1, 648], strides = [1, 1]} : vector<3x648xf32> to vector<1x648xf32>
    %8 = vector.broadcast %6 : vector<8x1xf32> to vector<8x648xf32>
    %9 = vector.broadcast %7 : vector<1x648xf32> to vector<8x648xf32>
    %10 = arith.mulf %8, %9 : vector<8x648xf32>
    %11 = arith.addf %2, %10 : vector<8x648xf32>
    %12 = vector.extract_strided_slice %5 {offsets = [0, 1], sizes = [8, 1], strides = [1, 1]} : vector<8x3xf32> to vector<8x1xf32>
    %13 = vector.extract_strided_slice %3 {offsets = [1, 0], sizes = [1, 648], strides = [1, 1]} : vector<3x648xf32> to vector<1x648xf32>
    %14 = vector.broadcast %12 : vector<8x1xf32> to vector<8x648xf32>
    %15 = vector.broadcast %13 : vector<1x648xf32> to vector<8x648xf32>
    %16 = arith.mulf %14, %15 : vector<8x648xf32>
    %17 = arith.addf %11, %16 : vector<8x648xf32>
    %18 = vector.extract_strided_slice %5 {offsets = [0, 2], sizes = [8, 1], strides = [1, 1]} : vector<8x3xf32> to vector<8x1xf32>
    %19 = vector.extract_strided_slice %3 {offsets = [2, 0], sizes = [1, 648], strides = [1, 1]} : vector<3x648xf32> to vector<1x648xf32>
    %20 = vector.broadcast %18 : vector<8x1xf32> to vector<8x648xf32>
    %21 = vector.broadcast %19 : vector<1x648xf32> to vector<8x648xf32>
    %22 = arith.mulf %20, %21 : vector<8x648xf32>
    %23 = arith.addf %17, %22 : vector<8x648xf32>
    %24 = vector.extract_strided_slice %1 {offsets = [0, 14], sizes = [3, 648], strides = [1, 1]} : vector<3x712xf32> to vector<3x648xf32>
    %c1 = arith.constant 1 : index
    %c0_5 = arith.constant 0 : index
    %c0_6 = arith.constant 0 : index
    %25 = vector.load %arg2[%c1, %c0_5, %c0_6] : memref<9x8x3xf32, #tpu.memory_space<vmem>>, vector<1x8x3xf32>
    %26 = vector.shape_cast %25 : vector<1x8x3xf32> to vector<8x3xf32>
    %27 = vector.extract_strided_slice %26 {offsets = [0, 0], sizes = [8, 1], strides = [1, 1]} : vector<8x3xf32> to vector<8x1xf32>
    %28 = vector.extract_strided_slice %24 {offsets = [0, 0], sizes = [1, 648], strides = [1, 1]} : vector<3x648xf32> to vector<1x648xf32>
    %29 = vector.broadcast %27 : vector<8x1xf32> to vector<8x648xf32>
    %30 = vector.broadcast %28 : vector<1x648xf32> to vector<8x648xf32>
    %31 = arith.mulf %29, %30 : vector<8x648xf32>
    %32 = arith.addf %23, %31 : vector<8x648xf32>
    %33 = vector.extract_strided_slice %26 {offsets = [0, 1], sizes = [8, 1], strides = [1, 1]} : vector<8x3xf32> to vector<8x1xf32>
    %34 = vector.extract_strided_slice %24 {offsets = [1, 0], sizes = [1, 648], strides = [1, 1]} : vector<3x648xf32> to vector<1x648xf32>
    %35 = vector.broadcast %33 : vector<8x1xf32> to vector<8x648xf32>
    %36 = vector.broadcast %34 : vector<1x648xf32> to vector<8x648xf32>
    %37 = arith.mulf %35, %36 : vector<8x648xf32>
    %38 = arith.addf %32, %37 : vector<8x648xf32>
    %39 = vector.extract_strided_slice %26 {offsets = [0, 2], sizes = [8, 1], strides = [1, 1]} : vector<8x3xf32> to vector<8x1xf32>
    %40 = vector.extract_strided_slice %24 {offsets = [2, 0], sizes = [1, 648], strides = [1, 1]} : vector<3x648xf32> to vector<1x648xf32>
    %41 = vector.broadcast %39 : vector<8x1xf32> to vector<8x648xf32>
    %42 = vector.broadcast %40 : vector<1x648xf32> to vector<8x648xf32>
    %43 = arith.mulf %41, %42 : vector<8x648xf32>
    %44 = arith.addf %38, %43 : vector<8x648xf32>
    %45 = vector.extract_strided_slice %1 {offsets = [0, 15], sizes = [3, 648], strides = [1, 1]} : vector<3x712xf32> to vector<3x648xf32>
    %c2 = arith.constant 2 : index
    %c0_7 = arith.constant 0 : index
    %c0_8 = arith.constant 0 : index
    %46 = vector.load %arg2[%c2, %c0_7, %c0_8] : memref<9x8x3xf32, #tpu.memory_space<vmem>>, vector<1x8x3xf32>
    %47 = vector.shape_cast %46 : vector<1x8x3xf32> to vector<8x3xf32>
    %48 = vector.extract_strided_slice %47 {offsets = [0, 0], sizes = [8, 1], strides = [1, 1]} : vector<8x3xf32> to vector<8x1xf32>
    %49 = vector.extract_strided_slice %45 {offsets = [0, 0], sizes = [1, 648], strides = [1, 1]} : vector<3x648xf32> to vector<1x648xf32>
    %50 = vector.broadcast %48 : vector<8x1xf32> to vector<8x648xf32>
    %51 = vector.broadcast %49 : vector<1x648xf32> to vector<8x648xf32>
    %52 = arith.mulf %50, %51 : vector<8x648xf32>
    %53 = arith.addf %44, %52 : vector<8x648xf32>
    %54 = vector.extract_strided_slice %47 {offsets = [0, 1], sizes = [8, 1], strides = [1, 1]} : vector<8x3xf32> to vector<8x1xf32>
    %55 = vector.extract_strided_slice %45 {offsets = [1, 0], sizes = [1, 648], strides = [1, 1]} : vector<3x648xf32> to vector<1x648xf32>
    %56 = vector.broadcast %54 : vector<8x1xf32> to vector<8x648xf32>
    %57 = vector.broadcast %55 : vector<1x648xf32> to vector<8x648xf32>
    %58 = arith.mulf %56, %57 : vector<8x648xf32>
    %59 = arith.addf %53, %58 : vector<8x648xf32>
    %60 = vector.extract_strided_slice %47 {offsets = [0, 2], sizes = [8, 1], strides = [1, 1]} : vector<8x3xf32> to vector<8x1xf32>
    %61 = vector.extract_strided_slice %45 {offsets = [2, 0], sizes = [1, 648], strides = [1, 1]} : vector<3x648xf32> to vector<1x648xf32>
    %62 = vector.broadcast %60 : vector<8x1xf32> to vector<8x648xf32>
    %63 = vector.broadcast %61 : vector<1x648xf32> to vector<8x648xf32>
    %64 = arith.mulf %62, %63 : vector<8x648xf32>
    %65 = arith.addf %59, %64 : vector<8x648xf32>
    %66 = vector.extract_strided_slice %1 {offsets = [0, 31], sizes = [3, 648], strides = [1, 1]} : vector<3x712xf32> to vector<3x648xf32>
    %c3 = arith.constant 3 : index
    %c0_9 = arith.constant 0 : index
    %c0_10 = arith.constant 0 : index
    %67 = vector.load %arg2[%c3, %c0_9, %c0_10] : memref<9x8x3xf32, #tpu.memory_space<vmem>>, vector<1x8x3xf32>
    %68 = vector.shape_cast %67 : vector<1x8x3xf32> to vector<8x3xf32>
    %69 = vector.extract_strided_slice %68 {offsets = [0, 0], sizes = [8, 1], strides = [1, 1]} : vector<8x3xf32> to vector<8x1xf32>
    %70 = vector.extract_strided_slice %66 {offsets = [0, 0], sizes = [1, 648], strides = [1, 1]} : vector<3x648xf32> to vector<1x648xf32>
    %71 = vector.broadcast %69 : vector<8x1xf32> to vector<8x648xf32>
    %72 = vector.broadcast %70 : vector<1x648xf32> to vector<8x648xf32>
    %73 = arith.mulf %71, %72 : vector<8x648xf32>
    %74 = arith.addf %65, %73 : vector<8x648xf32>
    %75 = vector.extract_strided_slice %68 {offsets = [0, 1], sizes = [8, 1], strides = [1, 1]} : vector<8x3xf32> to vector<8x1xf32>
    %76 = vector.extract_strided_slice %66 {offsets = [1, 0], sizes = [1, 648], strides = [1, 1]} : vector<3x648xf32> to vector<1x648xf32>
    %77 = vector.broadcast %75 : vector<8x1xf32> to vector<8x648xf32>
    %78 = vector.broadcast %76 : vector<1x648xf32> to vector<8x648xf32>
    %79 = arith.mulf %77, %78 : vector<8x648xf32>
    %80 = arith.addf %74, %79 : vector<8x648xf32>
    %81 = vector.extract_strided_slice %68 {offsets = [0, 2], sizes = [8, 1], strides = [1, 1]} : vector<8x3xf32> to vector<8x1xf32>
    %82 = vector.extract_strided_slice %66 {offsets = [2, 0], sizes = [1, 648], strides = [1, 1]} : vector<3x648xf32> to vector<1x648xf32>
    %83 = vector.broadcast %81 : vector<8x1xf32> to vector<8x648xf32>
    %84 = vector.broadcast %82 : vector<1x648xf32> to vector<8x648xf32>
    %85 = arith.mulf %83, %84 : vector<8x648xf32>
    %86 = arith.addf %80, %85 : vector<8x648xf32>
    %87 = vector.extract_strided_slice %1 {offsets = [0, 32], sizes = [3, 648], strides = [1, 1]} : vector<3x712xf32> to vector<3x648xf32>
    %c4 = arith.constant 4 : index
    %c0_11 = arith.constant 0 : index
    %c0_12 = arith.constant 0 : index
    %88 = vector.load %arg2[%c4, %c0_11, %c0_12] : memref<9x8x3xf32, #tpu.memory_space<vmem>>, vector<1x8x3xf32>
    %89 = vector.shape_cast %88 : vector<1x8x3xf32> to vector<8x3xf32>
    %90 = vector.extract_strided_slice %89 {offsets = [0, 0], sizes = [8, 1], strides = [1, 1]} : vector<8x3xf32> to vector<8x1xf32>
    %91 = vector.extract_strided_slice %87 {offsets = [0, 0], sizes = [1, 648], strides = [1, 1]} : vector<3x648xf32> to vector<1x648xf32>
    %92 = vector.broadcast %90 : vector<8x1xf32> to vector<8x648xf32>
    %93 = vector.broadcast %91 : vector<1x648xf32> to vector<8x648xf32>
    %94 = arith.mulf %92, %93 : vector<8x648xf32>
    %95 = arith.addf %86, %94 : vector<8x648xf32>
    %96 = vector.extract_strided_slice %89 {offsets = [0, 1], sizes = [8, 1], strides = [1, 1]} : vector<8x3xf32> to vector<8x1xf32>
    %97 = vector.extract_strided_slice %87 {offsets = [1, 0], sizes = [1, 648], strides = [1, 1]} : vector<3x648xf32> to vector<1x648xf32>
    %98 = vector.broadcast %96 : vector<8x1xf32> to vector<8x648xf32>
    %99 = vector.broadcast %97 : vector<1x648xf32> to vector<8x648xf32>
    %100 = arith.mulf %98, %99 : vector<8x648xf32>
    %101 = arith.addf %95, %100 : vector<8x648xf32>
    %102 = vector.extract_strided_slice %89 {offsets = [0, 2], sizes = [8, 1], strides = [1, 1]} : vector<8x3xf32> to vector<8x1xf32>
    %103 = vector.extract_strided_slice %87 {offsets = [2, 0], sizes = [1, 648], strides = [1, 1]} : vector<3x648xf32> to vector<1x648xf32>
    %104 = vector.broadcast %102 : vector<8x1xf32> to vector<8x648xf32>
    %105 = vector.broadcast %103 : vector<1x648xf32> to vector<8x648xf32>
    %106 = arith.mulf %104, %105 : vector<8x648xf32>
    %107 = arith.addf %101, %106 : vector<8x648xf32>
    %108 = vector.extract_strided_slice %1 {offsets = [0, 33], sizes = [3, 648], strides = [1, 1]} : vector<3x712xf32> to vector<3x648xf32>
    %c5 = arith.constant 5 : index
    %c0_13 = arith.constant 0 : index
    %c0_14 = arith.constant 0 : index
    %109 = vector.load %arg2[%c5, %c0_13, %c0_14] : memref<9x8x3xf32, #tpu.memory_space<vmem>>, vector<1x8x3xf32>
    %110 = vector.shape_cast %109 : vector<1x8x3xf32> to vector<8x3xf32>
    %111 = vector.extract_strided_slice %110 {offsets = [0, 0], sizes = [8, 1], strides = [1, 1]} : vector<8x3xf32> to vector<8x1xf32>
    %112 = vector.extract_strided_slice %108 {offsets = [0, 0], sizes = [1, 648], strides = [1, 1]} : vector<3x648xf32> to vector<1x648xf32>
    %113 = vector.broadcast %111 : vector<8x1xf32> to vector<8x648xf32>
    %114 = vector.broadcast %112 : vector<1x648xf32> to vector<8x648xf32>
    %115 = arith.mulf %113, %114 : vector<8x648xf32>
    %116 = arith.addf %107, %115 : vector<8x648xf32>
    %117 = vector.extract_strided_slice %110 {offsets = [0, 1], sizes = [8, 1], strides = [1, 1]} : vector<8x3xf32> to vector<8x1xf32>
    %118 = vector.extract_strided_slice %108 {offsets = [1, 0], sizes = [1, 648], strides = [1, 1]} : vector<3x648xf32> to vector<1x648xf32>
    %119 = vector.broadcast %117 : vector<8x1xf32> to vector<8x648xf32>
    %120 = vector.broadcast %118 : vector<1x648xf32> to vector<8x648xf32>
    %121 = arith.mulf %119, %120 : vector<8x648xf32>
    %122 = arith.addf %116, %121 : vector<8x648xf32>
    %123 = vector.extract_strided_slice %110 {offsets = [0, 2], sizes = [8, 1], strides = [1, 1]} : vector<8x3xf32> to vector<8x1xf32>
    %124 = vector.extract_strided_slice %108 {offsets = [2, 0], sizes = [1, 648], strides = [1, 1]} : vector<3x648xf32> to vector<1x648xf32>
    %125 = vector.broadcast %123 : vector<8x1xf32> to vector<8x648xf32>
    %126 = vector.broadcast %124 : vector<1x648xf32> to vector<8x648xf32>
    %127 = arith.mulf %125, %126 : vector<8x648xf32>
    %128 = arith.addf %122, %127 : vector<8x648xf32>
    %129 = vector.extract_strided_slice %1 {offsets = [0, 49], sizes = [3, 648], strides = [1, 1]} : vector<3x712xf32> to vector<3x648xf32>
    %c6 = arith.constant 6 : index
    %c0_15 = arith.constant 0 : index
    %c0_16 = arith.constant 0 : index
    %130 = vector.load %arg2[%c6, %c0_15, %c0_16] : memref<9x8x3xf32, #tpu.memory_space<vmem>>, vector<1x8x3xf32>
    %131 = vector.shape_cast %130 : vector<1x8x3xf32> to vector<8x3xf32>
    %132 = vector.extract_strided_slice %131 {offsets = [0, 0], sizes = [8, 1], strides = [1, 1]} : vector<8x3xf32> to vector<8x1xf32>
    %133 = vector.extract_strided_slice %129 {offsets = [0, 0], sizes = [1, 648], strides = [1, 1]} : vector<3x648xf32> to vector<1x648xf32>
    %134 = vector.broadcast %132 : vector<8x1xf32> to vector<8x648xf32>
    %135 = vector.broadcast %133 : vector<1x648xf32> to vector<8x648xf32>
    %136 = arith.mulf %134, %135 : vector<8x648xf32>
    %137 = arith.addf %128, %136 : vector<8x648xf32>
    %138 = vector.extract_strided_slice %131 {offsets = [0, 1], sizes = [8, 1], strides = [1, 1]} : vector<8x3xf32> to vector<8x1xf32>
    %139 = vector.extract_strided_slice %129 {offsets = [1, 0], sizes = [1, 648], strides = [1, 1]} : vector<3x648xf32> to vector<1x648xf32>
    %140 = vector.broadcast %138 : vector<8x1xf32> to vector<8x648xf32>
    %141 = vector.broadcast %139 : vector<1x648xf32> to vector<8x648xf32>
    %142 = arith.mulf %140, %141 : vector<8x648xf32>
    %143 = arith.addf %137, %142 : vector<8x648xf32>
    %144 = vector.extract_strided_slice %131 {offsets = [0, 2], sizes = [8, 1], strides = [1, 1]} : vector<8x3xf32> to vector<8x1xf32>
    %145 = vector.extract_strided_slice %129 {offsets = [2, 0], sizes = [1, 648], strides = [1, 1]} : vector<3x648xf32> to vector<1x648xf32>
    %146 = vector.broadcast %144 : vector<8x1xf32> to vector<8x648xf32>
    %147 = vector.broadcast %145 : vector<1x648xf32> to vector<8x648xf32>
    %148 = arith.mulf %146, %147 : vector<8x648xf32>
    %149 = arith.addf %143, %148 : vector<8x648xf32>
    %150 = vector.extract_strided_slice %1 {offsets = [0, 50], sizes = [3, 648], strides = [1, 1]} : vector<3x712xf32> to vector<3x648xf32>
    %c7 = arith.constant 7 : index
    %c0_17 = arith.constant 0 : index
    %c0_18 = arith.constant 0 : index
    %151 = vector.load %arg2[%c7, %c0_17, %c0_18] : memref<9x8x3xf32, #tpu.memory_space<vmem>>, vector<1x8x3xf32>
    %152 = vector.shape_cast %151 : vector<1x8x3xf32> to vector<8x3xf32>
    %153 = vector.extract_strided_slice %152 {offsets = [0, 0], sizes = [8, 1], strides = [1, 1]} : vector<8x3xf32> to vector<8x1xf32>
    %154 = vector.extract_strided_slice %150 {offsets = [0, 0], sizes = [1, 648], strides = [1, 1]} : vector<3x648xf32> to vector<1x648xf32>
    %155 = vector.broadcast %153 : vector<8x1xf32> to vector<8x648xf32>
    %156 = vector.broadcast %154 : vector<1x648xf32> to vector<8x648xf32>
    %157 = arith.mulf %155, %156 : vector<8x648xf32>
    %158 = arith.addf %149, %157 : vector<8x648xf32>
    %159 = vector.extract_strided_slice %152 {offsets = [0, 1], sizes = [8, 1], strides = [1, 1]} : vector<8x3xf32> to vector<8x1xf32>
    %160 = vector.extract_strided_slice %150 {offsets = [1, 0], sizes = [1, 648], strides = [1, 1]} : vector<3x648xf32> to vector<1x648xf32>
    %161 = vector.broadcast %159 : vector<8x1xf32> to vector<8x648xf32>
    %162 = vector.broadcast %160 : vector<1x648xf32> to vector<8x648xf32>
    %163 = arith.mulf %161, %162 : vector<8x648xf32>
    %164 = arith.addf %158, %163 : vector<8x648xf32>
    %165 = vector.extract_strided_slice %152 {offsets = [0, 2], sizes = [8, 1], strides = [1, 1]} : vector<8x3xf32> to vector<8x1xf32>
    %166 = vector.extract_strided_slice %150 {offsets = [2, 0], sizes = [1, 648], strides = [1, 1]} : vector<3x648xf32> to vector<1x648xf32>
    %167 = vector.broadcast %165 : vector<8x1xf32> to vector<8x648xf32>
    %168 = vector.broadcast %166 : vector<1x648xf32> to vector<8x648xf32>
    %169 = arith.mulf %167, %168 : vector<8x648xf32>
    %170 = arith.addf %164, %169 : vector<8x648xf32>
    %171 = vector.extract_strided_slice %1 {offsets = [0, 51], sizes = [3, 648], strides = [1, 1]} : vector<3x712xf32> to vector<3x648xf32>
    %c8 = arith.constant 8 : index
    %c0_19 = arith.constant 0 : index
    %c0_20 = arith.constant 0 : index
    %172 = vector.load %arg2[%c8, %c0_19, %c0_20] : memref<9x8x3xf32, #tpu.memory_space<vmem>>, vector<1x8x3xf32>
    %173 = vector.shape_cast %172 : vector<1x8x3xf32> to vector<8x3xf32>
    %174 = vector.extract_strided_slice %173 {offsets = [0, 0], sizes = [8, 1], strides = [1, 1]} : vector<8x3xf32> to vector<8x1xf32>
    %175 = vector.extract_strided_slice %171 {offsets = [0, 0], sizes = [1, 648], strides = [1, 1]} : vector<3x648xf32> to vector<1x648xf32>
    %176 = vector.broadcast %174 : vector<8x1xf32> to vector<8x648xf32>
    %177 = vector.broadcast %175 : vector<1x648xf32> to vector<8x648xf32>
    %178 = arith.mulf %176, %177 : vector<8x648xf32>
    %179 = arith.addf %170, %178 : vector<8x648xf32>
    %180 = vector.extract_strided_slice %173 {offsets = [0, 1], sizes = [8, 1], strides = [1, 1]} : vector<8x3xf32> to vector<8x1xf32>
    %181 = vector.extract_strided_slice %171 {offsets = [1, 0], sizes = [1, 648], strides = [1, 1]} : vector<3x648xf32> to vector<1x648xf32>
    %182 = vector.broadcast %180 : vector<8x1xf32> to vector<8x648xf32>
    %183 = vector.broadcast %181 : vector<1x648xf32> to vector<8x648xf32>
    %184 = arith.mulf %182, %183 : vector<8x648xf32>
    %185 = arith.addf %179, %184 : vector<8x648xf32>
    %186 = vector.extract_strided_slice %173 {offsets = [0, 2], sizes = [8, 1], strides = [1, 1]} : vector<8x3xf32> to vector<8x1xf32>
    %187 = vector.extract_strided_slice %171 {offsets = [2, 0], sizes = [1, 648], strides = [1, 1]} : vector<3x648xf32> to vector<1x648xf32>
    %188 = vector.broadcast %186 : vector<8x1xf32> to vector<8x648xf32>
    %189 = vector.broadcast %187 : vector<1x648xf32> to vector<8x648xf32>
    %190 = arith.mulf %188, %189 : vector<8x648xf32>
    %191 = arith.addf %185, %190 : vector<8x648xf32>
    %c0_21 = arith.constant 0 : index
    %c0_22 = arith.constant 0 : index
    %192 = vector.load %arg3[%c0_21, %c0_22] : memref<8x1xf32, #tpu.memory_space<vmem>>, vector<8x1xf32>
    %193 = vector.broadcast %192 : vector<8x1xf32> to vector<8x648xf32>
    %194 = arith.addf %191, %193 : vector<8x648xf32>
    %cst_23 = arith.constant 0.000000e+00 : f32
    %195 = vector.broadcast %cst_23 : f32 to vector<8x648xf32>
    %196 = arith.maximumf %194, %195 : vector<8x648xf32>
    %c0_24 = arith.constant 0 : index
    %c0_25 = arith.constant 0 : index
    %197 = vector.load %arg6[%c0_24, %c0_25] : memref<1x648xf32, #tpu.memory_space<vmem>>, vector<1x648xf32>
    %198 = vector.broadcast %197 : vector<1x648xf32> to vector<8x648xf32>
    %199 = arith.mulf %196, %198 : vector<8x648xf32>
    %cst_26 = arith.constant 0.000000e+00 : f32
    %200 = vector.broadcast %cst_26 : f32 to vector<4x591xf32>
    %201 = vector.extract_strided_slice %199 {offsets = [0, 0], sizes = [8, 591], strides = [1, 1]} : vector<8x648xf32> to vector<8x591xf32>
    %c0_27 = arith.constant 0 : index
    %c0_28 = arith.constant 0 : index
    %c0_29 = arith.constant 0 : index
    %202 = vector.load %arg4[%c0_27, %c0_28, %c0_29] : memref<16x4x8xf32, #tpu.memory_space<vmem>>, vector<1x4x8xf32>
    %203 = vector.shape_cast %202 : vector<1x4x8xf32> to vector<4x8xf32>
    %cst_30 = arith.constant dense<0.000000e+00> : vector<4x591xf32>
    %204 = tpu.matmul %203, %201, %cst_30 {dimension_numbers = #tpu.dot_dimension_numbers<[1], [0], [0], [1], [0, 0, 1, 1], [], []>} : vector<4x8xf32>, vector<8x591xf32>, vector<4x591xf32> -> vector<4x591xf32>
    %205 = arith.addf %200, %204 : vector<4x591xf32>
    %206 = vector.extract_strided_slice %199 {offsets = [0, 1], sizes = [8, 591], strides = [1, 1]} : vector<8x648xf32> to vector<8x591xf32>
    %c1_31 = arith.constant 1 : index
    %c0_32 = arith.constant 0 : index
    %c0_33 = arith.constant 0 : index
    %207 = vector.load %arg4[%c1_31, %c0_32, %c0_33] : memref<16x4x8xf32, #tpu.memory_space<vmem>>, vector<1x4x8xf32>
    %208 = vector.shape_cast %207 : vector<1x4x8xf32> to vector<4x8xf32>
    %cst_34 = arith.constant dense<0.000000e+00> : vector<4x591xf32>
    %209 = tpu.matmul %208, %206, %cst_34 {dimension_numbers = #tpu.dot_dimension_numbers<[1], [0], [0], [1], [0, 0, 1, 1], [], []>} : vector<4x8xf32>, vector<8x591xf32>, vector<4x591xf32> -> vector<4x591xf32>
    %210 = arith.addf %205, %209 : vector<4x591xf32>
    %211 = vector.extract_strided_slice %199 {offsets = [0, 2], sizes = [8, 591], strides = [1, 1]} : vector<8x648xf32> to vector<8x591xf32>
    %c2_35 = arith.constant 2 : index
    %c0_36 = arith.constant 0 : index
    %c0_37 = arith.constant 0 : index
    %212 = vector.load %arg4[%c2_35, %c0_36, %c0_37] : memref<16x4x8xf32, #tpu.memory_space<vmem>>, vector<1x4x8xf32>
    %213 = vector.shape_cast %212 : vector<1x4x8xf32> to vector<4x8xf32>
    %cst_38 = arith.constant dense<0.000000e+00> : vector<4x591xf32>
    %214 = tpu.matmul %213, %211, %cst_38 {dimension_numbers = #tpu.dot_dimension_numbers<[1], [0], [0], [1], [0, 0, 1, 1], [], []>} : vector<4x8xf32>, vector<8x591xf32>, vector<4x591xf32> -> vector<4x591xf32>
    %215 = arith.addf %210, %214 : vector<4x591xf32>
    %216 = vector.extract_strided_slice %199 {offsets = [0, 3], sizes = [8, 591], strides = [1, 1]} : vector<8x648xf32> to vector<8x591xf32>
    %c3_39 = arith.constant 3 : index
    %c0_40 = arith.constant 0 : index
    %c0_41 = arith.constant 0 : index
    %217 = vector.load %arg4[%c3_39, %c0_40, %c0_41] : memref<16x4x8xf32, #tpu.memory_space<vmem>>, vector<1x4x8xf32>
    %218 = vector.shape_cast %217 : vector<1x4x8xf32> to vector<4x8xf32>
    %cst_42 = arith.constant dense<0.000000e+00> : vector<4x591xf32>
    %219 = tpu.matmul %218, %216, %cst_42 {dimension_numbers = #tpu.dot_dimension_numbers<[1], [0], [0], [1], [0, 0, 1, 1], [], []>} : vector<4x8xf32>, vector<8x591xf32>, vector<4x591xf32> -> vector<4x591xf32>
    %220 = arith.addf %215, %219 : vector<4x591xf32>
    %221 = vector.extract_strided_slice %199 {offsets = [0, 18], sizes = [8, 591], strides = [1, 1]} : vector<8x648xf32> to vector<8x591xf32>
    %c4_43 = arith.constant 4 : index
    %c0_44 = arith.constant 0 : index
    %c0_45 = arith.constant 0 : index
    %222 = vector.load %arg4[%c4_43, %c0_44, %c0_45] : memref<16x4x8xf32, #tpu.memory_space<vmem>>, vector<1x4x8xf32>
    %223 = vector.shape_cast %222 : vector<1x4x8xf32> to vector<4x8xf32>
    %cst_46 = arith.constant dense<0.000000e+00> : vector<4x591xf32>
    %224 = tpu.matmul %223, %221, %cst_46 {dimension_numbers = #tpu.dot_dimension_numbers<[1], [0], [0], [1], [0, 0, 1, 1], [], []>} : vector<4x8xf32>, vector<8x591xf32>, vector<4x591xf32> -> vector<4x591xf32>
    %225 = arith.addf %220, %224 : vector<4x591xf32>
    %226 = vector.extract_strided_slice %199 {offsets = [0, 19], sizes = [8, 591], strides = [1, 1]} : vector<8x648xf32> to vector<8x591xf32>
    %c5_47 = arith.constant 5 : index
    %c0_48 = arith.constant 0 : index
    %c0_49 = arith.constant 0 : index
    %227 = vector.load %arg4[%c5_47, %c0_48, %c0_49] : memref<16x4x8xf32, #tpu.memory_space<vmem>>, vector<1x4x8xf32>
    %228 = vector.shape_cast %227 : vector<1x4x8xf32> to vector<4x8xf32>
    %cst_50 = arith.constant dense<0.000000e+00> : vector<4x591xf32>
    %229 = tpu.matmul %228, %226, %cst_50 {dimension_numbers = #tpu.dot_dimension_numbers<[1], [0], [0], [1], [0, 0, 1, 1], [], []>} : vector<4x8xf32>, vector<8x591xf32>, vector<4x591xf32> -> vector<4x591xf32>
    %230 = arith.addf %225, %229 : vector<4x591xf32>
    %231 = vector.extract_strided_slice %199 {offsets = [0, 20], sizes = [8, 591], strides = [1, 1]} : vector<8x648xf32> to vector<8x591xf32>
    %c6_51 = arith.constant 6 : index
    %c0_52 = arith.constant 0 : index
    %c0_53 = arith.constant 0 : index
    %232 = vector.load %arg4[%c6_51, %c0_52, %c0_53] : memref<16x4x8xf32, #tpu.memory_space<vmem>>, vector<1x4x8xf32>
    %233 = vector.shape_cast %232 : vector<1x4x8xf32> to vector<4x8xf32>
    %cst_54 = arith.constant dense<0.000000e+00> : vector<4x591xf32>
    %234 = tpu.matmul %233, %231, %cst_54 {dimension_numbers = #tpu.dot_dimension_numbers<[1], [0], [0], [1], [0, 0, 1, 1], [], []>} : vector<4x8xf32>, vector<8x591xf32>, vector<4x591xf32> -> vector<4x591xf32>
    %235 = arith.addf %230, %234 : vector<4x591xf32>
    %236 = vector.extract_strided_slice %199 {offsets = [0, 21], sizes = [8, 591], strides = [1, 1]} : vector<8x648xf32> to vector<8x591xf32>
    %c7_55 = arith.constant 7 : index
    %c0_56 = arith.constant 0 : index
    %c0_57 = arith.constant 0 : index
    %237 = vector.load %arg4[%c7_55, %c0_56, %c0_57] : memref<16x4x8xf32, #tpu.memory_space<vmem>>, vector<1x4x8xf32>
    %238 = vector.shape_cast %237 : vector<1x4x8xf32> to vector<4x8xf32>
    %cst_58 = arith.constant dense<0.000000e+00> : vector<4x591xf32>
    %239 = tpu.matmul %238, %236, %cst_58 {dimension_numbers = #tpu.dot_dimension_numbers<[1], [0], [0], [1], [0, 0, 1, 1], [], []>} : vector<4x8xf32>, vector<8x591xf32>, vector<4x591xf32> -> vector<4x591xf32>
    %240 = arith.addf %235, %239 : vector<4x591xf32>
    %241 = vector.extract_strided_slice %199 {offsets = [0, 36], sizes = [8, 591], strides = [1, 1]} : vector<8x648xf32> to vector<8x591xf32>
    %c8_59 = arith.constant 8 : index
    %c0_60 = arith.constant 0 : index
    %c0_61 = arith.constant 0 : index
    %242 = vector.load %arg4[%c8_59, %c0_60, %c0_61] : memref<16x4x8xf32, #tpu.memory_space<vmem>>, vector<1x4x8xf32>
    %243 = vector.shape_cast %242 : vector<1x4x8xf32> to vector<4x8xf32>
    %cst_62 = arith.constant dense<0.000000e+00> : vector<4x591xf32>
    %244 = tpu.matmul %243, %241, %cst_62 {dimension_numbers = #tpu.dot_dimension_numbers<[1], [0], [0], [1], [0, 0, 1, 1], [], []>} : vector<4x8xf32>, vector<8x591xf32>, vector<4x591xf32> -> vector<4x591xf32>
    %245 = arith.addf %240, %244 : vector<4x591xf32>
    %246 = vector.extract_strided_slice %199 {offsets = [0, 37], sizes = [8, 591], strides = [1, 1]} : vector<8x648xf32> to vector<8x591xf32>
    %c9 = arith.constant 9 : index
    %c0_63 = arith.constant 0 : index
    %c0_64 = arith.constant 0 : index
    %247 = vector.load %arg4[%c9, %c0_63, %c0_64] : memref<16x4x8xf32, #tpu.memory_space<vmem>>, vector<1x4x8xf32>
    %248 = vector.shape_cast %247 : vector<1x4x8xf32> to vector<4x8xf32>
    %cst_65 = arith.constant dense<0.000000e+00> : vector<4x591xf32>
    %249 = tpu.matmul %248, %246, %cst_65 {dimension_numbers = #tpu.dot_dimension_numbers<[1], [0], [0], [1], [0, 0, 1, 1], [], []>} : vector<4x8xf32>, vector<8x591xf32>, vector<4x591xf32> -> vector<4x591xf32>
    %250 = arith.addf %245, %249 : vector<4x591xf32>
    %251 = vector.extract_strided_slice %199 {offsets = [0, 38], sizes = [8, 591], strides = [1, 1]} : vector<8x648xf32> to vector<8x591xf32>
    %c10 = arith.constant 10 : index
    %c0_66 = arith.constant 0 : index
    %c0_67 = arith.constant 0 : index
    %252 = vector.load %arg4[%c10, %c0_66, %c0_67] : memref<16x4x8xf32, #tpu.memory_space<vmem>>, vector<1x4x8xf32>
    %253 = vector.shape_cast %252 : vector<1x4x8xf32> to vector<4x8xf32>
    %cst_68 = arith.constant dense<0.000000e+00> : vector<4x591xf32>
    %254 = tpu.matmul %253, %251, %cst_68 {dimension_numbers = #tpu.dot_dimension_numbers<[1], [0], [0], [1], [0, 0, 1, 1], [], []>} : vector<4x8xf32>, vector<8x591xf32>, vector<4x591xf32> -> vector<4x591xf32>
    %255 = arith.addf %250, %254 : vector<4x591xf32>
    %256 = vector.extract_strided_slice %199 {offsets = [0, 39], sizes = [8, 591], strides = [1, 1]} : vector<8x648xf32> to vector<8x591xf32>
    %c11 = arith.constant 11 : index
    %c0_69 = arith.constant 0 : index
    %c0_70 = arith.constant 0 : index
    %257 = vector.load %arg4[%c11, %c0_69, %c0_70] : memref<16x4x8xf32, #tpu.memory_space<vmem>>, vector<1x4x8xf32>
    %258 = vector.shape_cast %257 : vector<1x4x8xf32> to vector<4x8xf32>
    %cst_71 = arith.constant dense<0.000000e+00> : vector<4x591xf32>
    %259 = tpu.matmul %258, %256, %cst_71 {dimension_numbers = #tpu.dot_dimension_numbers<[1], [0], [0], [1], [0, 0, 1, 1], [], []>} : vector<4x8xf32>, vector<8x591xf32>, vector<4x591xf32> -> vector<4x591xf32>
    %260 = arith.addf %255, %259 : vector<4x591xf32>
    %261 = vector.extract_strided_slice %199 {offsets = [0, 54], sizes = [8, 591], strides = [1, 1]} : vector<8x648xf32> to vector<8x591xf32>
    %c12 = arith.constant 12 : index
    %c0_72 = arith.constant 0 : index
    %c0_73 = arith.constant 0 : index
    %262 = vector.load %arg4[%c12, %c0_72, %c0_73] : memref<16x4x8xf32, #tpu.memory_space<vmem>>, vector<1x4x8xf32>
    %263 = vector.shape_cast %262 : vector<1x4x8xf32> to vector<4x8xf32>
    %cst_74 = arith.constant dense<0.000000e+00> : vector<4x591xf32>
    %264 = tpu.matmul %263, %261, %cst_74 {dimension_numbers = #tpu.dot_dimension_numbers<[1], [0], [0], [1], [0, 0, 1, 1], [], []>} : vector<4x8xf32>, vector<8x591xf32>, vector<4x591xf32> -> vector<4x591xf32>
    %265 = arith.addf %260, %264 : vector<4x591xf32>
    %266 = vector.extract_strided_slice %199 {offsets = [0, 55], sizes = [8, 591], strides = [1, 1]} : vector<8x648xf32> to vector<8x591xf32>
    %c13 = arith.constant 13 : index
    %c0_75 = arith.constant 0 : index
    %c0_76 = arith.constant 0 : index
    %267 = vector.load %arg4[%c13, %c0_75, %c0_76] : memref<16x4x8xf32, #tpu.memory_space<vmem>>, vector<1x4x8xf32>
    %268 = vector.shape_cast %267 : vector<1x4x8xf32> to vector<4x8xf32>
    %cst_77 = arith.constant dense<0.000000e+00> : vector<4x591xf32>
    %269 = tpu.matmul %268, %266, %cst_77 {dimension_numbers = #tpu.dot_dimension_numbers<[1], [0], [0], [1], [0, 0, 1, 1], [], []>} : vector<4x8xf32>, vector<8x591xf32>, vector<4x591xf32> -> vector<4x591xf32>
    %270 = arith.addf %265, %269 : vector<4x591xf32>
    %271 = vector.extract_strided_slice %199 {offsets = [0, 56], sizes = [8, 591], strides = [1, 1]} : vector<8x648xf32> to vector<8x591xf32>
    %c14 = arith.constant 14 : index
    %c0_78 = arith.constant 0 : index
    %c0_79 = arith.constant 0 : index
    %272 = vector.load %arg4[%c14, %c0_78, %c0_79] : memref<16x4x8xf32, #tpu.memory_space<vmem>>, vector<1x4x8xf32>
    %273 = vector.shape_cast %272 : vector<1x4x8xf32> to vector<4x8xf32>
    %cst_80 = arith.constant dense<0.000000e+00> : vector<4x591xf32>
    %274 = tpu.matmul %273, %271, %cst_80 {dimension_numbers = #tpu.dot_dimension_numbers<[1], [0], [0], [1], [0, 0, 1, 1], [], []>} : vector<4x8xf32>, vector<8x591xf32>, vector<4x591xf32> -> vector<4x591xf32>
    %275 = arith.addf %270, %274 : vector<4x591xf32>
    %276 = vector.extract_strided_slice %199 {offsets = [0, 57], sizes = [8, 591], strides = [1, 1]} : vector<8x648xf32> to vector<8x591xf32>
    %c15 = arith.constant 15 : index
    %c0_81 = arith.constant 0 : index
    %c0_82 = arith.constant 0 : index
    %277 = vector.load %arg4[%c15, %c0_81, %c0_82] : memref<16x4x8xf32, #tpu.memory_space<vmem>>, vector<1x4x8xf32>
    %278 = vector.shape_cast %277 : vector<1x4x8xf32> to vector<4x8xf32>
    %cst_83 = arith.constant dense<0.000000e+00> : vector<4x591xf32>
    %279 = tpu.matmul %278, %276, %cst_83 {dimension_numbers = #tpu.dot_dimension_numbers<[1], [0], [0], [1], [0, 0, 1, 1], [], []>} : vector<4x8xf32>, vector<8x591xf32>, vector<4x591xf32> -> vector<4x591xf32>
    %280 = arith.addf %275, %279 : vector<4x591xf32>
    %c0_84 = arith.constant 0 : index
    %c0_85 = arith.constant 0 : index
    %281 = vector.load %arg5[%c0_84, %c0_85] : memref<4x1xf32, #tpu.memory_space<vmem>>, vector<4x1xf32>
    %282 = vector.broadcast %281 : vector<4x1xf32> to vector<4x591xf32>
    %283 = arith.addf %280, %282 : vector<4x591xf32>
    %cst_86 = arith.constant 0.000000e+00 : f32
    %284 = vector.broadcast %cst_86 : f32 to vector<4x591xf32>
    %285 = arith.maximumf %283, %284 : vector<4x591xf32>
    %c0_87 = arith.constant 0 : index
    %c0_88 = arith.constant 0 : index
    %286 = vector.load %arg7[%c0_87, %c0_88] : memref<591x2xf32, #tpu.memory_space<vmem>>, vector<591x2xf32>
    %cst_89 = arith.constant dense<0.000000e+00> : vector<4x2xf32>
    %287 = tpu.matmul %285, %286, %cst_89 {dimension_numbers = #tpu.dot_dimension_numbers<[1], [0], [0], [1], [0, 0, 1, 1], [], []>} : vector<4x591xf32>, vector<591x2xf32>, vector<4x2xf32> -> vector<4x2xf32>
    %cst_90 = arith.constant dense<0.000000e+00> : vector<2xf32>
    %288 = vector.multi_reduction <add>, %287, %cst_90 [0] : vector<4x2xf32> to vector<2xf32>
    %289 = vector.shape_cast %288 : vector<2xf32> to vector<1x2xf32>
    %cst_91 = arith.constant 0.00111111114 : f32
    %290 = vector.broadcast %cst_91 : f32 to vector<1x2xf32>
    %291 = arith.mulf %289, %290 : vector<1x2xf32>
    %cst_92 = arith.constant 0.000000e+00 : f32
    %292 = vector.broadcast %cst_92 : f32 to vector<1x8x128xf32>
    %c0_93 = arith.constant 0 : index
    %c0_94 = arith.constant 0 : index
    %c0_95 = arith.constant 0 : index
    %293 = vector.load %arg8[%c0_93, %c0_94, %c0_95] : memref<1x8x128xf32, #tpu.memory_space<vmem>>, vector<1x8x128xf32>
    tpu.vector_store %arg8[%c0_93, %c0_94, %c0_95], %292 {strides = array<i32>} : memref<1x8x128xf32, #tpu.memory_space<vmem>>, vector<1x8x128xf32>,
    %c0_96 = arith.constant 0 : index
    %c0_97 = arith.constant 0 : index
    %c0_98 = arith.constant 0 : index
    %294 = vector.load %arg8[%c0_96, %c0_97, %c0_98] : memref<1x8x128xf32, #tpu.memory_space<vmem>>, vector<1x1x2xf32>
    %295 = vector.shape_cast %294 : vector<1x1x2xf32> to vector<1x2xf32>
    %296 = vector.shape_cast %291 : vector<1x2xf32> to vector<1x1x2xf32>
    tpu.vector_store %arg8[%c0_96, %c0_97, %c0_98], %296 {strides = array<i32>} : memref<1x8x128xf32, #tpu.memory_space<vmem>>, vector<1x1x2xf32>,
    return
  }
  func.func @transform_0(%arg0: i32) -> (i32, i32, i32) {
    %c0_i32 = arith.constant 0 : i32
    %c0_i32_0 = arith.constant 0 : i32
    %c0_i32_1 = arith.constant 0 : i32
    return %arg0, %c0_i32, %c0_i32_0 : i32, i32, i32
  }
  func.func @transform_1(%arg0: i32) -> (i32, i32, i32) {
    %c0_i32 = arith.constant 0 : i32
    %c0_i32_0 = arith.constant 0 : i32
    %c0_i32_1 = arith.constant 0 : i32
    %c0_i32_2 = arith.constant 0 : i32
    return %c0_i32, %c0_i32_0, %c0_i32_1 : i32, i32, i32
  }
  func.func @transform_2(%arg0: i32) -> (i32, i32) {
    %c0_i32 = arith.constant 0 : i32
    %c0_i32_0 = arith.constant 0 : i32
    %c0_i32_1 = arith.constant 0 : i32
    return %c0_i32, %c0_i32_0 : i32, i32
  }
  func.func @transform_3(%arg0: i32) -> (i32, i32, i32) {
    %c0_i32 = arith.constant 0 : i32
    %c0_i32_0 = arith.constant 0 : i32
    %c0_i32_1 = arith.constant 0 : i32
    %c0_i32_2 = arith.constant 0 : i32
    return %c0_i32, %c0_i32_0, %c0_i32_1 : i32, i32, i32
  }
  func.func @transform_4(%arg0: i32) -> (i32, i32) {
    %c0_i32 = arith.constant 0 : i32
    %c0_i32_0 = arith.constant 0 : i32
    %c0_i32_1 = arith.constant 0 : i32
    return %c0_i32, %c0_i32_0 : i32, i32
  }
  func.func @transform_5(%arg0: i32) -> (i32, i32) {
    %c0_i32 = arith.constant 0 : i32
    %c0_i32_0 = arith.constant 0 : i32
    %c0_i32_1 = arith.constant 0 : i32
    return %c0_i32, %c0_i32_0 : i32, i32
  }
  func.func @transform_6(%arg0: i32) -> (i32, i32) {
    %c0_i32 = arith.constant 0 : i32
    %c0_i32_0 = arith.constant 0 : i32
    %c0_i32_1 = arith.constant 0 : i32
    return %c0_i32, %c0_i32_0 : i32, i32
  }
  func.func @transform_7(%arg0: i32) -> (i32, i32, i32) {
    %c0_i32 = arith.constant 0 : i32
    %c0_i32_0 = arith.constant 0 : i32
    %c0_i32_1 = arith.constant 0 : i32
    return %arg0, %c0_i32, %c0_i32_0 : i32, i32, i32
  }
}

</mosaic_0001>

<bundles_post_ra>
// kernel: tile.7
= control target key start
LH: loop header
LB: loop body
LE: loop exit
PB: predicated region body
PF: predicated region fallthrough
CT: control target
= control target key end

     0   :  { %vm31_vm0 = vcmask 1042434   ;;  %s21_s12 = smov 3  ;;  %vm33_vm1 = vcmask 490496   ;;  %vm18_vm2 = vcmask 556032   ;;  %s46_s13 = smov 3  ;;  %vm37_vm3 = vcmask 64512   ;;  %s148_s0 = inlined_call_operand.vmem [shape: f32[2,324], index: 0, kind: input, shape index: {}]   ;;  %s149_s1 = inlined_call_operand.vmem [shape: f32[1,648], index: 1, kind: output, shape index: {}]  }
   0x1   :  { %v100_v0 = vld [vmem:[%s148_s0 + $0x4] sm:$0x3]  ;;  %v101_v1 = vld [vmem:[%s148_s0 + $0x2] sm:$0x3]  ;;  %v14_v2 = vld [vmem:[%s148_s0] sm:$0x3] }
   0x2   :  { %9 = vst [vmem:[#allocation1 + $0x10] sm:$0x3] %v100_v0  ;;  %13 = vst [vmem:[#allocation1 + $0x8] sm:$0x3] %v101_v1  ;;  %s27_s0 = smov 3  ;;  %s108_s14 = smov 68  }
   0x3   :  { %15 = vst [vmem:[#allocation1] sm:$0x3] %v14_v2  ;;  %vm40_vm4 = vcmask 1048096  }
   0x9   :  { %v25_v3 = vld [vmem:[#allocation1 + $0x11] sm:$0x1]   ;;  %v30_v5 = vld [vmem:[#allocation1 + $0x7] sm:$0x4]   ;;  %v17_v8 = vld [vmem:[#allocation1 + $0x10] sm:$0x1]  }
   0xa   :  { %v28_v4 = vld [vmem:[#allocation1 + $0x11] ss:$-16 sm:%s27_s0]   ;;  %v22_v7 = vld [vmem:[#allocation1] ss:$8 sm:%s21_s12]   ;;  %20 = vst.msk [vmem:[#allocation0 + $0x10] sm:$0x1] %vm18_vm2, %v17_v8  }
   0xb   :  { %v32_v6 = vsel %vm31_vm0, %v30_v5, %v28_v4  ;;  %23 = vst [vmem:[#allocation0] ss:$8 sm:$0x3] %v22_v7   ;;  %v47_v10 = vld [vmem:[#allocation1 + $0x9] ss:$-8 sm:%s46_s13]  }
   0xc   :  { %v34_v9 = vsel %vm33_vm1, %v32_v6, %v25_v3 }
   0xd   :  { %35 = vrot.lane.b32.xlu0 %v34_v9, %s108_s14 }
  0x11   :  { %48 = vrot.lane.b32.xlu0 %v47_v10, %s108_s14 }
  0x12   :  { %v57_v11 = vld [vmem:[#allocation0] sm:$0x1]  ;;  %v62_v12 = vld [vmem:[#allocation0 + $0x8] sm:$0x1] }
  0x13   :  { %60 = vst [vmem:[%s149_s1] sm:$0x1] %v57_v11  ;;  %102 = vst [vmem:[%s149_s1 + $0x1] sm:$0x1] %v62_v12 }
  0x7f   :  { %v36_v13 = vpop.permute.xlu0 %35  }
  0x80   :  { %39 = vst.msk [vmem:[#allocation0 + $0x28] sm:$0x1] %vm37_vm3, %v36_v13  }
  0x81   :  { %42 = vst.msk [vmem:[#allocation0 + $0x20] ss:$-16 sm:$0x3] %vm40_vm4, %v36_v13   ;;  %44 = vst.msk [vmem:[#allocation0 + $0x16] sm:$0x4] %vm40_vm4, %v36_v13  }
  0x83   :  { %v49_v14 = vpop.permute.xlu0 %48  }
  0x84   :  { %52 = vst.msk [vmem:[#allocation0 + $0x20] ss:$-8 sm:$0x3] %vm18_vm2, %v49_v14  }
  0x87   :  { %v89_v16 = vld [vmem:[#allocation0 + $0x28] sm:$0x1] }
  0x88   :  { %v68_v15 = vld [vmem:[#allocation0 + $0x10] sm:$0x1]  ;;  %106 = vst [vmem:[%s149_s1 + $0x5] sm:$0x1] %v89_v16 }
  0x89   :  { %103 = vst [vmem:[%s149_s1 + $0x2] sm:$0x1] %v68_v15 }
  0x8b   :  { %v75_v17 = vld [vmem:[#allocation0 + $0x18] sm:$0x1]  ;;  %v82_v18 = vld [vmem:[#allocation0 + $0x20] sm:$0x1] }
  0x8c   :  { %104 = vst [vmem:[%s149_s1 + $0x3] sm:$0x1] %v75_v17  ;;  %105 = vst [vmem:[%s149_s1 + $0x4] sm:$0x1] %v82_v18 }

// kernel: model_forward.1
= control target key start
LH: loop header
LB: loop body
LE: loop exit
PB: predicated region body
PF: predicated region fallthrough
CT: control target
= control target key end

     0   :  { %v5980_v0 = vmov 2   ;;  %v5981_v4 = vmov 0   ;;  %v5982_v6 = vmov 1   ;;  %v38_v17 = vlaneseq  ;;  %s5983_s22 = smov 127   ;;  %s5985_s25 = smov 110   ;;  %s8018_s1 = inlined_call_operand.vmem [shape: f32[9,8,3], index: 1, kind: input, shape index: {}]   ;;  %s8019_s0 = inlined_call_operand.vmem [shape: f32[1,3,712], index: 0, kind: input, shape index: {}]   ;;  %s8020_s2 = inlined_call_operand.vmem [shape: f32[8,1], index: 2, kind: input, shape index: {}]   ;;  %s8021_s5 = inlined_call_operand.vmem [shape: f32[1,648], index: 5, kind: input, shape index: {}]   ;;  %s8022_s3 = inlined_call_operand.vmem [shape: f32[16,4,8], index: 3, kind: input, shape index: {}]   ;;  %s8023_s4 = inlined_call_operand.vmem [shape: f32[4,1], index: 4, kind: input, shape index: {}]   ;;  %s8024_s6 = inlined_call_operand.vmem [shape: f32[591,2], index: 6, kind: input, shape index: {}]   ;;  %s8025_s7 = inlined_call_operand.vmem [shape: f32[1,8,128], index: 7, kind: output, shape index: {}]  }
   0x1   :  { %5964 = vset.pattern.permute.xlu0 %v5980_v0  ;;  %5961 = vset.pattern.permute.xlu1 %v5980_v0  ;;  %v5643_v1 = vld [vmem:[%s8018_s1 + $0x10] sm:$0xff]  ;;  %v5642_v2 = vld [vmem:[%s8018_s1 + $0x8] sm:$0xff]  ;;  %v5644_v3 = vld [vmem:[%s8018_s1 + $0x18] sm:$0xff]  ;;  %s5986_s26 = smov 109   ;;  %s5987_s27 = smov 108   ;;  %vm275_vm0 = vcmask 1039360  }
   0x2   :  { %478 = vperm.xlu0 %5964, %v5643_v1   ;;  %339 = vperm.xlu1 %5961, %v5642_v2   ;;  %v5648_v5 = vld [vmem:[%s8018_s1 + $0x38] sm:$0xff]  ;;  %v5649_v7 = vld [vmem:[%s8018_s1 + $0x40] sm:$0xff]  ;;  %v5646_v9 = vld [vmem:[%s8018_s1 + $0x28] sm:$0xff]  ;;  %v6089_v19 = vshrl.u32 %v38_v17, 7  ;;  %s5988_s28 = smov 92   ;;  %s5989_s29 = smov 91  }
   0x3   :  { %v5645_v8 = vld [vmem:[%s8018_s1 + $0x20] sm:$0xff]  ;;  %v5647_v11 = vld [vmem:[%s8018_s1 + $0x30] sm:$0xff]  ;;  %v6102_v23 = vld [vmem:[%s8019_s0 + $0x8] sm:$0x77]  ;;  %s5990_s30 = smov 90   ;;  %vm414_vm1 = vcmask 1031168  }
   0x4   :  { %v29_v10 = vld [vmem:[%s8018_s1] sm:$0xff]  ;;  %v6092_v20 = vsub.s32 0, %v6089_v19  ;;  %v6095_v21 = vsub.s32 4, %v6089_v19  ;;  %v6116_v28 = vsub.s32 1, %v6089_v19  ;;  %v6119_v29 = vsub.s32 5, %v6089_v19  ;;  %s5993_s11 = smov 114  }
   0x5   :  { %v6107_v24 = vld [vmem:[%s8019_s0] sm:$0x77]  ;;  %v28_v49 = vld [vmem:[%s8019_s0 + $0x10] sm:$0x77]  ;;  %v6169_v50 = vsub.s32 2, %v6089_v19  ;;  %v184_v51 = vsub.s32 6, %v6089_v19 }
   0x6   :  { %617 = vperm.xlu0 %5964, %v5644_v3   ;;  %5962 = vset.pattern.permute.xlu1 %v5981_v4  ;;  %v49_v25 = vrot.slane %v6102_v23, %v6092_v20  ;;  %v45_v26 = vrot.slane %v6107_v24, %v6095_v21  ;;  %8091 = vst [vmem:[#allocation2_spill] sm:$0xff] %v6119_v29  ;;  %s5984_s0 = smov 126   ;;  %vm553_vm2 = vcmask 900096   ;;  %vm692_vm3 = vcmask 891904   ;;  %s5994_s12 = smov 115  }
   0x7   :  { %387 = vperm.xlu1 %5962, %v5643_v1   ;;  %v53_v32 = vrot.slane %v6102_v23, %v6095_v21  ;;  %v41_v33 = vrot.slane %v6107_v24, %v6092_v20  ;;  %v115_v35 = vrot.slane %v6107_v24, %v6119_v29  ;;  %v119_v36 = vrot.slane %v6102_v23, %v6116_v28  ;;  %s5995_s13 = smov 113   ;;  %s5996_s14 = smov 112  }
   0x8   :  { %v6122_v30 = vrot.slane %v49_v25, %v6092_v20  ;;  %v6125_v31 = vrot.slane %v45_v26, %v6092_v20  ;;  %v123_v41 = vrot.slane %v6102_v23, %v6119_v29  ;;  %v111_v42 = vrot.slane %v6107_v24, %v6116_v28  ;;  %s5997_s15 = smov 97   ;;  %s5998_s16 = smov 96  }
   0x9   :  { %v6138_v39 = vrot.slane %v53_v32, %v6092_v20  ;;  %v6141_v40 = vrot.slane %v41_v33, %v6092_v20  ;;  %v6152_v45 = vrot.slane %v115_v35, %v6116_v28  ;;  %v6155_v46 = vrot.slane %v119_v36, %v6116_v28  ;;  %s5999_s17 = smov 95   ;;  %s6000_s18 = smov 94  }
   0xa   :  { %1173 = vperm.xlu0 %5964, %v5648_v5   ;;  %v6160_v47 = vrot.slane %v123_v41, %v6116_v28  ;;  %v6163_v48 = vrot.slane %v111_v42, %v6116_v28  ;;  %v57_v54 = vrot.slane %v28_v49, %v6092_v20  ;;  %v61_v55 = vrot.slane %v28_v49, %v6095_v21  ;;  %s6001_s1 = smov 79   ;;  %s6002_s19 = smov 78  }
   0xb   :  { %5963 = vset.pattern.permute.xlu1 %v5982_v6  ;;  %v185_v56 = vrot.slane %v6107_v24, %v184_v51  ;;  %v189_v57 = vrot.slane %v6102_v23, %v6169_v50  ;;  %v197_v36 = vrot.slane %v28_v49, %v6169_v50  ;;  %vm831_vm4 = vcmask 883712   ;;  %s6003_s20 = smov 77   ;;  %s6004_s21 = smov 76  }
   0xc   :  { %433 = vperm.xlu1 %5963, %v5643_v1   ;;  %v6188_v60 = vrot.slane %v57_v54, %v6092_v20  ;;  %v6191_v61 = vrot.slane %v61_v55, %v6092_v20  ;;  %vm970_vm5 = vcmask 752640   ;;  %vm1109_vm6 = vcmask 744448   ;;  %s6005_s24 = smov 61   ;;  %s6008_s8 = smov 59  }
   0xd   :  { %v6201_v1 = vrot.slane %v189_v57, %v6169_v50  ;;  %v6246_v41 = vrot.slane %v197_v36, %v6169_v50  ;;  %vm1248_vm7 = vcmask 736256   ;;  %vm1412_vm8 = vcmask 105472   ;;  %s6009_s9 = smov 58  }
   0xe   :  { %1312 = vperm.xlu0 %5964, %v5649_v7   ;;  %vm1448_vm9 = vcmask 932864   ;;  %vm1458_vm10 = vcmask 64512   ;;  %vm1684_vm11 = vcmask 941056   ;;  %vm6006_vm12 = vmmov 0  }
   0xf   :  { %vm1921_vm13 = vcmask 924672   ;;  %vm2163_vm14 = vcmask 916480   ;;  %vm2405_vm15 = vcmask 793600  }
  0x10   :  { %5965 = vset.pattern.permute.xlu1 %v5981_v4 }
  0x11   :  { %526 = vperm.xlu1 %5965, %v5644_v3  }
  0x12   :  { %5976 = vset.pattern.permute.xlu0 %v5982_v6 }
  0x13   :  { %294 = vperm.xlu0 %5976, %v5642_v2  }
  0x15   :  { %5966 = vset.pattern.permute.xlu1 %v5982_v6 }
  0x16   :  { %572 = vperm.xlu1 %5966, %v5644_v3   ;;  %v193_v3 = vrot.slane %v6102_v23, %v184_v51 }
  0x17   :  { %711 = vperm.xlu0 %5976, %v5645_v8  }
  0x1a   :  { %5967 = vset.pattern.permute.xlu1 %v5981_v4 }
  0x1b   :  { %850 = vperm.xlu0 %5976, %v5646_v9   ;;  %665 = vperm.xlu1 %5967, %v5645_v8  }
  0x1f   :  { %5968 = vset.pattern.permute.xlu1 %v5980_v0  ;;  %105 = vperm.xlu0 %5976, %v29_v10  }
  0x20   :  { %756 = vperm.xlu1 %5968, %v5645_v8   ;;  %v131_v8 = vrot.slane %v28_v49, %v6119_v29 }
  0x23   :  { %5978 = vset.pattern.permute.xlu0 %v5981_v4 }
  0x24   :  { %5969 = vset.pattern.permute.xlu1 %v5981_v4  ;;  %248 = vperm.xlu0 %5978, %v5642_v2  }
  0x25   :  { %804 = vperm.xlu1 %5969, %v5646_v9  }
  0x28   :  { %943 = vperm.xlu0 %5978, %v5647_v11  }
  0x29   :  { %5970 = vset.pattern.permute.xlu1 %v5980_v0 }
  0x2a   :  { %895 = vperm.xlu1 %5970, %v5646_v9   ;;  %v6215_v9 = vrot.slane %v193_v3, %v6169_v50 }
  0x2c   :  { %1082 = vperm.xlu0 %5978, %v5648_v5  }
  0x2e   :  { %5971 = vset.pattern.permute.xlu1 %v5982_v6 }
  0x2f   :  { %989 = vperm.xlu1 %5971, %v5647_v11  }
  0x33   :  { %5972 = vset.pattern.permute.xlu1 %v5980_v0 }
  0x34   :  { %1034 = vperm.xlu1 %5972, %v5647_v11  }
  0x38   :  { %5973 = vset.pattern.permute.xlu1 %v5982_v6 }
  0x39   :  { %1128 = vperm.xlu1 %5973, %v5648_v5  }
  0x3d   :  { %5974 = vset.pattern.permute.xlu1 %v5981_v4 }
  0x3e   :  { %1221 = vperm.xlu1 %5974, %v5649_v7  }
  0x42   :  { %5975 = vset.pattern.permute.xlu1 %v5982_v6  ;;  %v181_v6 = vrot.slane %v6107_v24, %v6169_v50  ;;  %v6226_v24 = vrot.slane %v131_v8, %v6116_v28 }
  0x43   :  { %1267 = vperm.xlu1 %5975, %v5649_v7   ;;  %v127_v7 = vrot.slane %v28_v49, %v6116_v28 }
  0x45   :  { %v6223_v23 = vrot.slane %v127_v7, %v6116_v28 }
  0x47   :  { %5977 = vset.pattern.permute.xlu1 %v5981_v4 }
  0x48   :  { %32 = vperm.xlu1 %5977, %v29_v10  }
  0x4c   :  { %5979 = vset.pattern.permute.xlu1 %v5980_v0  ;;  %v6198_v0 = vrot.slane %v185_v56, %v6169_v50 }
  0x4d   :  { %175 = vperm.xlu1 %5979, %v29_v10   ;;  %v6218_v10 = vrot.slane %v181_v6, %v6169_v50 }
  0x7d   :  { %v6077_v12 = vpop.permute.xlu0 %478  ;;  %v340_v2 = vpop.permute.xlu1 %339 }
  0x7e   :  { %v343_v4 = vmul.f32 %v340_v2, %v6198_v0  ;;  %v344_v5 = vmul.f32 %v340_v2, %v6201_v1  ;;  %v345_v11 = vmul.f32 %v340_v2, %v6215_v9  ;;  %v342_v17 = vmul.f32 %v340_v2, %v6218_v10 }
  0x7f   :  { %v481_v3 = vmul.f32 %v6077_v12, %v6218_v10 }
  0x81   :  { %v6079_v13 = vpop.permute.xlu0 %617 }
  0x82   :  { %v388_v25 = vpop.permute.xlu1 %387 }
  0x83   :  { %v391_v33 = vmul.f32 %v388_v25, %v6125_v31  ;;  %v394_v57 = vmul.f32 %v388_v25, %v6188_v60 }
  0x85   :  { %v6081_v14 = vpop.permute.xlu0 %1173 }
  0x87   :  { %v434_v35 = vpop.permute.xlu1 %433 }
  0x88   :  { %v439_v54 = vmul.f32 %v434_v35, %v6160_v47  ;;  %v436_v55 = vmul.f32 %v434_v35, %v6163_v48  ;;  %v441_v6 = vmul.f32 %v434_v35, %v6226_v24 }
  0x89   :  { %v6083_v15 = vpop.permute.xlu0 %1312 }
  0x8e   :  { %v6085_v16 = vpop.permute.xlu0 %294 }
  0x8f   :  { %v298_v52 = vmul.f32 %v6085_v16, %v6152_v45  ;;  %v299_v53 = vmul.f32 %v6085_v16, %v6155_v46  ;;  %v300_v58 = vmul.f32 %v6085_v16, %v6160_v47  ;;  %v297_v59 = vmul.f32 %v6085_v16, %v6163_v48 }
  0x90   :  { %v301_v26 = vmul.f32 %v6085_v16, %v6223_v23  ;;  %v302_v32 = vmul.f32 %v6085_v16, %v6226_v24  ;;  %v390_v16 = vmul.f32 %v388_v25, %v6141_v40 }
  0x92   :  { %v6087_v18 = vpop.permute.xlu0 %711 }
  0x96   :  { %v6097_v22 = vpop.permute.xlu0 %850 }
  0x9a   :  { %v6113_v27 = vpop.permute.xlu0 %105 }
  0x9f   :  { %v249_v34 = vpop.permute.xlu0 %248 }
  0xa0   :  { %v253_v37 = vmul.f32 %v249_v34, %v6122_v30  ;;  %v252_v38 = vmul.f32 %v249_v34, %v6125_v31  ;;  %v254_v43 = vmul.f32 %v249_v34, %v6138_v39  ;;  %v251_v44 = vmul.f32 %v249_v34, %v6141_v40 }
  0xa1   :  { %v255_v62 = vmul.f32 %v249_v34, %v6188_v60  ;;  %v256_v63 = vmul.f32 %v249_v34, %v6191_v61  ;;  %v392_v34 = vmul.f32 %v388_v25, %v6122_v30 }
  0xa2   :  { %267 = vrot.lane.b32.xlu0 %v253_v37, %s5983_s22  ;;  %265 = vrot.lane.b32.xlu1 %v252_v38, %s5983_s22  ;;  %v201_v37 = vrot.slane %v28_v49, %v184_v51  ;;  %v393_v38 = vmul.f32 %v388_v25, %v6138_v39  ;;  %v437_v49 = vmul.f32 %v434_v35, %v6152_v45 }
  0xa3   :  { %v438_v51 = vmul.f32 %v434_v35, %v6155_v46 }
  0xa4   :  { %v6249_v42 = vrot.slane %v201_v37, %v6169_v50 }
  0xa6   :  { %269 = vrot.lane.b32.xlu1 %v254_v43, %s5983_s22  ;;  %263 = vrot.lane.b32.xlu0 %v251_v44, %s5983_s22  ;;  %v527_v43 = vpop.permute.xlu1 %526  ;;  %v346_v44 = vmul.f32 %v340_v2, %v6246_v41 }
  0xa7   :  { %v530_v7 = vmul.f32 %v527_v43, %v6125_v31  ;;  %v531_v8 = vmul.f32 %v527_v43, %v6122_v30 }
  0xaa   :  { %311 = vrot.lane.b32.xlu1 %v298_v52, %s5983_s22  ;;  %313 = vrot.lane.b32.xlu0 %v299_v53, %s5983_s22  ;;  %v347_v52 = vmul.f32 %v340_v2, %v6249_v42  ;;  %v6257_v53 = vpop.permute.xlu1 %572  ;;  %v484_v2 = vmul.f32 %v6077_v12, %v6215_v9 }
  0xab   :  { %v578_v37 = vmul.f32 %v6257_v53, %v6160_v47 }
  0xae   :  { %315 = vrot.lane.b32.xlu1 %v300_v58, %s5983_s22  ;;  %309 = vrot.lane.b32.xlu0 %v297_v59, %s5983_s22  ;;  %v6265_v56 = vpop.permute.xlu1 %665  ;;  %v395_v58 = vmul.f32 %v388_v25, %v6191_v61  ;;  %v482_v59 = vmul.f32 %v6077_v12, %v6198_v0  ;;  %v529_v25 = vmul.f32 %v527_v43, %v6141_v40 }
  0xb2   :  { %271 = vrot.lane.b32.xlu1 %v255_v62, %s5983_s22  ;;  %273 = vrot.lane.b32.xlu0 %v256_v63, %s5983_s22  ;;  %v483_v62 = vmul.f32 %v6077_v12, %v6201_v1  ;;  %v6275_v63 = vpop.permute.xlu1 %756 }
  0xb6   :  { %356 = vrot.lane.b32.xlu1 %v343_v4, %s5983_s22  ;;  %358 = vrot.lane.b32.xlu0 %v344_v5, %s5983_s22  ;;  %v6285_v4 = vpop.permute.xlu1 %804  ;;  %v440_v5 = vmul.f32 %v434_v35, %v6223_v23  ;;  %v577_v35 = vmul.f32 %v6257_v53, %v6155_v46 }
  0xba   :  { %360 = vrot.lane.b32.xlu1 %v345_v11, %s5983_s22  ;;  %354 = vrot.lane.b32.xlu0 %v342_v17, %s5983_s22  ;;  %v6293_v11 = vpop.permute.xlu1 %895  ;;  %v532_v17 = vmul.f32 %v527_v43, %v6138_v39 }
  0xbe   :  { %317 = vrot.lane.b32.xlu1 %v301_v26, %s5983_s22  ;;  %319 = vrot.lane.b32.xlu0 %v302_v32, %s5983_s22  ;;  %v6301_v26 = vpop.permute.xlu1 %989  ;;  %v485_v32 = vmul.f32 %v6077_v12, %v6246_v41 }
  0xc2   :  { %404 = vrot.lane.b32.xlu1 %v391_v33, %s5984_s0  ;;  %406 = vrot.lane.b32.xlu0 %v392_v34, %s5984_s0  ;;  %v486_v33 = vmul.f32 %v6077_v12, %v6249_v42  ;;  %v576_v34 = vmul.f32 %v6257_v53, %v6152_v45  ;;  %v6313_v36 = vpop.permute.xlu1 %1034  ;;  %v575_v12 = vmul.f32 %v6257_v53, %v6163_v48 }
  0xc6   :  { %408 = vrot.lane.b32.xlu1 %v393_v38, %s5984_s0  ;;  %402 = vrot.lane.b32.xlu0 %v390_v16, %s5984_s0  ;;  %v6323_v38 = vpop.permute.xlu1 %1128  ;;  %v533_v16 = vmul.f32 %v527_v43, %v6188_v60 }
  0xca   :  { %362 = vrot.lane.b32.xlu1 %v346_v44, %s5983_s22  ;;  %364 = vrot.lane.b32.xlu0 %v347_v52, %s5983_s22  ;;  %v534_v44 = vmul.f32 %v527_v43, %v6191_v61  ;;  %v621_v52 = vmul.f32 %v6079_v13, %v6198_v0  ;;  %v620_v43 = vmul.f32 %v6079_v13, %v6218_v10 }
  0xce   :  { %450 = vrot.lane.b32.xlu1 %v437_v49, %s5984_s0  ;;  %452 = vrot.lane.b32.xlu0 %v438_v51, %s5984_s0  ;;  %v622_v49 = vmul.f32 %v6079_v13, %v6201_v1  ;;  %v6333_v51 = vpop.permute.xlu1 %1221 }
  0xd2   :  { %454 = vrot.lane.b32.xlu1 %v439_v54, %s5984_s0  ;;  %448 = vrot.lane.b32.xlu0 %v436_v55, %s5984_s0  ;;  %v623_v54 = vmul.f32 %v6079_v13, %v6215_v9  ;;  %v6343_v55 = vpop.permute.xlu1 %1267 }
  0xd6   :  { %410 = vrot.lane.b32.xlu1 %v394_v57, %s5984_s0  ;;  %412 = vrot.lane.b32.xlu0 %v395_v58, %s5984_s0  ;;  %v579_v57 = vmul.f32 %v6257_v53, %v6223_v23  ;;  %v580_v58 = vmul.f32 %v6257_v53, %v6226_v24  ;;  %v671_v53 = vmul.f32 %v6265_v56, %v6138_v39 }
  0xda   :  { %495 = vrot.lane.b32.xlu1 %v482_v59, %s5984_s0  ;;  %497 = vrot.lane.b32.xlu0 %v483_v62, %s5984_s0  ;;  %v669_v59 = vmul.f32 %v6265_v56, %v6125_v31  ;;  %v670_v62 = vmul.f32 %v6265_v56, %v6122_v30 }
  0xde   :  { %499 = vrot.lane.b32.xlu1 %v484_v2, %s5984_s0  ;;  %493 = vrot.lane.b32.xlu0 %v481_v3, %s5984_s0  ;;  %v6355_v2 = vpop.permute.xlu0 %943  ;;  %v6357_v3 = vpop.permute.xlu1 %32 }
  0xe2   :  { %456 = vrot.lane.b32.xlu1 %v440_v5, %s5984_s0  ;;  %458 = vrot.lane.b32.xlu0 %v441_v6, %s5984_s0  ;;  %v668_v5 = vmul.f32 %v6265_v56, %v6141_v40  ;;  %v6367_v6 = vpop.permute.xlu0 %1082 }
  0xe6   :  { %543 = vrot.lane.b32.xlu1 %v530_v7, %s5985_s25  ;;  %545 = vrot.lane.b32.xlu0 %v531_v8, %s5985_s25  ;;  %v6369_v7 = vpop.permute.xlu1 %175  ;;  %v624_v8 = vmul.f32 %v6079_v13, %v6246_v41 }
  0xea   :  { %547 = vrot.lane.b32.xlu1 %v532_v17, %s5985_s25  ;;  %541 = vrot.lane.b32.xlu0 %v529_v25, %s5985_s25  ;;  %v625_v17 = vmul.f32 %v6079_v13, %v6249_v42 }
  0xee   :  { %501 = vrot.lane.b32.xlu1 %v485_v32, %s5984_s0  ;;  %503 = vrot.lane.b32.xlu0 %v486_v33, %s5984_s0  ;;  %v715_v33 = vmul.f32 %v6087_v18, %v6152_v45 }
  0xf2   :  { %589 = vrot.lane.b32.xlu1 %v576_v34, %s5985_s25  ;;  %591 = vrot.lane.b32.xlu0 %v577_v35, %s5985_s25  ;;  %v716_v34 = vmul.f32 %v6087_v18, %v6155_v46 }
  0xf6   :  { %593 = vrot.lane.b32.xlu1 %v578_v37, %s5985_s25  ;;  %587 = vrot.lane.b32.xlu0 %v575_v12, %s5985_s25  ;;  %v717_v37 = vmul.f32 %v6087_v18, %v6160_v47  ;;  %v714_v12 = vmul.f32 %v6087_v18, %v6163_v48 }
  0xfa   :  { %549 = vrot.lane.b32.xlu1 %v533_v16, %s5985_s25  ;;  %551 = vrot.lane.b32.xlu0 %v534_v44, %s5985_s25 }
  0xfe   :  { %634 = vrot.lane.b32.xlu1 %v621_v52, %s5985_s25  ;;  %636 = vrot.lane.b32.xlu0 %v622_v49, %s5985_s25  ;;  %v672_v52 = vmul.f32 %v6265_v56, %v6188_v60  ;;  %v673_v49 = vmul.f32 %v6265_v56, %v6191_v61 }
 0x102   :  { %638 = vrot.lane.b32.xlu1 %v623_v54, %s5985_s25  ;;  %632 = vrot.lane.b32.xlu0 %v620_v43, %s5985_s25 }
 0x106   :  { %595 = vrot.lane.b32.xlu1 %v579_v57, %s5985_s25  ;;  %597 = vrot.lane.b32.xlu0 %v580_v58, %s5985_s25  ;;  %v760_v57 = vmul.f32 %v6275_v63, %v6198_v0  ;;  %v761_v58 = vmul.f32 %v6275_v63, %v6201_v1 }
 0x10a   :  { %682 = vrot.lane.b32.xlu1 %v669_v59, %s5986_s26  ;;  %684 = vrot.lane.b32.xlu0 %v670_v62, %s5986_s26  ;;  %v762_v62 = vmul.f32 %v6275_v63, %v6215_v9 }
 0x10e   :  { %686 = vrot.lane.b32.xlu1 %v671_v53, %s5986_s26  ;;  %680 = vrot.lane.b32.xlu0 %v668_v5, %s5986_s26  ;;  %v759_v53 = vmul.f32 %v6275_v63, %v6218_v10 }
 0x112   :  { %640 = vrot.lane.b32.xlu1 %v624_v8, %s5985_s25  ;;  %642 = vrot.lane.b32.xlu0 %v625_v17, %s5985_s25  ;;  %v718_v17 = vmul.f32 %v6087_v18, %v6223_v23 }
 0x114   :  { %v6377_v25 = vpop.permute.xlu0 %267  ;;  %v6379_v32 = vpop.permute.xlu1 %265 }
 0x116   :  { %728 = vrot.lane.b32.xlu1 %v715_v33, %s5986_s26  ;;  %730 = vrot.lane.b32.xlu0 %v716_v34, %s5986_s26  ;;  %v719_v33 = vmul.f32 %v6087_v18, %v6226_v24 }
 0x118   :  { %v6387_v35 = vpop.permute.xlu1 %269  ;;  %v6389_v13 = vpop.permute.xlu0 %263 }
 0x11a   :  { %732 = vrot.lane.b32.xlu1 %v717_v37, %s5986_s26  ;;  %726 = vrot.lane.b32.xlu0 %v714_v12, %s5986_s26  ;;  %v808_v12 = vmul.f32 %v6285_v4, %v6125_v31 }
 0x11c   :  { %v6397_v16 = vpop.permute.xlu1 %311  ;;  %v6399_v44 = vpop.permute.xlu0 %313 }
 0x11e   :  { %688 = vrot.lane.b32.xlu1 %v672_v52, %s5986_s26  ;;  %690 = vrot.lane.b32.xlu0 %v673_v49, %s5986_s26  ;;  %v809_v52 = vmul.f32 %v6285_v4, %v6122_v30 }
 0x120   :  { %v6407_v54 = vpop.permute.xlu1 %315  ;;  %v6409_v43 = vpop.permute.xlu0 %309 }
 0x122   :  { %773 = vrot.lane.b32.xlu1 %v760_v57, %s5986_s26  ;;  %775 = vrot.lane.b32.xlu0 %v761_v58, %s5986_s26  ;;  %v810_v57 = vmul.f32 %v6285_v4, %v6138_v39  ;;  %v807_v58 = vmul.f32 %v6285_v4, %v6141_v40 }
 0x124   :  { %v6417_v59 = vpop.permute.xlu1 %271  ;;  %v6419_v56 = vpop.permute.xlu0 %273 }
 0x126   :  { %777 = vrot.lane.b32.xlu1 %v762_v62, %s5986_s26  ;;  %771 = vrot.lane.b32.xlu0 %v759_v53, %s5986_s26 }
 0x128   :  { %v6427_v5 = vpop.permute.xlu1 %356  ;;  %v6429_v8 = vpop.permute.xlu0 %358 }
 0x12a   :  { %734 = vrot.lane.b32.xlu1 %v718_v17, %s5986_s26  ;;  %736 = vrot.lane.b32.xlu0 %v719_v33, %s5986_s26  ;;  %v763_v17 = vmul.f32 %v6275_v63, %v6246_v41  ;;  %v764_v33 = vmul.f32 %v6275_v63, %v6249_v42 }
 0x12c   :  { %v6437_v34 = vpop.permute.xlu1 %360  ;;  %v6439_v37 = vpop.permute.xlu0 %354 }
 0x12e   :  { %821 = vrot.lane.b32.xlu1 %v808_v12, %s5987_s27  ;;  %823 = vrot.lane.b32.xlu0 %v809_v52, %s5987_s27 }
 0x130   :  { %v6447_v18 = vpop.permute.xlu1 %317  ;;  %v6449_v49 = vpop.permute.xlu0 %319 }
 0x132   :  { %825 = vrot.lane.b32.xlu1 %v810_v57, %s5987_s27  ;;  %819 = vrot.lane.b32.xlu0 %v807_v58, %s5987_s27  ;;  %v854_v57 = vmul.f32 %v6097_v22, %v6152_v45  ;;  %v855_v58 = vmul.f32 %v6097_v22, %v6155_v46 }
 0x134   :  { %v6457_v62 = vpop.permute.xlu1 %404  ;;  %v6459_v53 = vpop.permute.xlu0 %406 }
 0x136   :  { %779 = vrot.lane.b32.xlu1 %v763_v17, %s5986_s26  ;;  %781 = vrot.lane.b32.xlu0 %v764_v33, %s5986_s26  ;;  %v856_v17 = vmul.f32 %v6097_v22, %v6160_v47  ;;  %v853_v33 = vmul.f32 %v6097_v22, %v6163_v48  ;;  %s6007_s26 = smov 60  }
 0x138   :  { %v6467_v12 = vpop.permute.xlu1 %408  ;;  %v6469_v52 = vpop.permute.xlu0 %402 }
 0x139   :  { %8092 = vst [vmem:[#allocation3_spill] sm:$0xff] %v6467_v12  ;;  %8093 = vst [vmem:[#allocation4_spill] sm:$0xff] %v6469_v52 }
 0x13a   :  { %867 = vrot.lane.b32.xlu1 %v854_v57, %s5987_s27  ;;  %869 = vrot.lane.b32.xlu0 %v855_v58, %s5987_s27  ;;  %v811_v57 = vmul.f32 %v6285_v4, %v6188_v60  ;;  %v812_v58 = vmul.f32 %v6285_v4, %v6191_v61 }
 0x13c   :  { %v6477_v29 = vpop.permute.xlu1 %362  ;;  %v6479_v63 = vpop.permute.xlu0 %364 }
 0x13d   :  { %8094 = vst [vmem:[#allocation5_spill] sm:$0xff] %v6477_v29  ;;  %8095 = vst [vmem:[#allocation6_spill] sm:$0xff] %v6479_v63 }
 0x13e   :  { %871 = vrot.lane.b32.xlu1 %v856_v17, %s5987_s27  ;;  %865 = vrot.lane.b32.xlu0 %v853_v33, %s5987_s27  ;;  %v899_v17 = vmul.f32 %v6293_v11, %v6198_v0  ;;  %v900_v33 = vmul.f32 %v6293_v11, %v6201_v1 }
 0x140   :  { %v6487_v52 = vpop.permute.xlu1 %450  ;;  %v6489_v12 = vpop.permute.xlu0 %452 }
 0x141   :  { %8096 = vst [vmem:[#allocation7_spill] sm:$0xff] %v6487_v52 }
 0x142   :  { %827 = vrot.lane.b32.xlu1 %v811_v57, %s5987_s27  ;;  %829 = vrot.lane.b32.xlu0 %v812_v58, %s5987_s27  ;;  %v901_v57 = vmul.f32 %v6293_v11, %v6215_v9  ;;  %v898_v58 = vmul.f32 %v6293_v11, %v6218_v10 }
 0x144   :  { %v6497_v63 = vpop.permute.xlu1 %454  ;;  %v6499_v29 = vpop.permute.xlu0 %448 }
 0x145   :  { %8097 = vst [vmem:[#allocation8_spill] sm:$0xff] %v6497_v63  ;;  %8098 = vst [vmem:[#allocation9_spill] sm:$0xff] %v6499_v29 }
 0x146   :  { %912 = vrot.lane.b32.xlu1 %v899_v17, %s5987_s27  ;;  %914 = vrot.lane.b32.xlu0 %v900_v33, %s5987_s27  ;;  %v857_v17 = vmul.f32 %v6097_v22, %v6223_v23  ;;  %v858_v33 = vmul.f32 %v6097_v22, %v6226_v24 }
 0x148   :  { %v6507_v52 = vpop.permute.xlu1 %410  ;;  %v6509_v4 = vpop.permute.xlu0 %412 }
 0x149   :  { %8099 = vst [vmem:[#allocation10_spill] sm:$0xff] %v6507_v52  ;;  %8100 = vst [vmem:[#allocation11_spill] sm:$0xff] %v6509_v4 }
 0x14a   :  { %916 = vrot.lane.b32.xlu1 %v901_v57, %s5987_s27  ;;  %910 = vrot.lane.b32.xlu0 %v898_v58, %s5987_s27  ;;  %v947_v57 = vmul.f32 %v6355_v2, %v6125_v31  ;;  %v948_v58 = vmul.f32 %v6355_v2, %v6122_v30 }
 0x14c   :  { %v6517_v29 = vpop.permute.xlu1 %495  ;;  %v6519_v63 = vpop.permute.xlu0 %497 }
 0x14d   :  { %8101 = vst [vmem:[#allocation12_spill] sm:$0xff] %v6517_v29 }
 0x14e   :  { %873 = vrot.lane.b32.xlu1 %v857_v17, %s5987_s27  ;;  %875 = vrot.lane.b32.xlu0 %v858_v33, %s5987_s27  ;;  %v949_v33 = vmul.f32 %v6355_v2, %v6138_v39 }
 0x150   :  { %v6527_v4 = vpop.permute.xlu1 %499  ;;  %v6529_v52 = vpop.permute.xlu0 %493 }
 0x151   :  { %8102 = vst [vmem:[#allocation13_spill] sm:$0xff] %v6527_v4  ;;  %8103 = vst [vmem:[#allocation14_spill] sm:$0xff] %v6529_v52  ;;  %v946_v52 = vmul.f32 %v6355_v2, %v6141_v40 }
 0x152   :  { %960 = vrot.lane.b32.xlu1 %v947_v57, %s5988_s28  ;;  %962 = vrot.lane.b32.xlu0 %v948_v58, %s5988_s28  ;;  %v902_v57 = vmul.f32 %v6293_v11, %v6246_v41  ;;  %v903_v58 = vmul.f32 %v6293_v11, %v6249_v42 }
 0x154   :  { %v6537_v22 = vpop.permute.xlu1 %456  ;;  %v6539_v17 = vpop.permute.xlu0 %458 }
 0x155   :  { %8104 = vst [vmem:[#allocation15_spill] sm:$0xff] %v6537_v22  ;;  %8105 = vst [vmem:[#allocation16_spill] sm:$0xff] %v6539_v17 }
 0x156   :  { %964 = vrot.lane.b32.xlu1 %v949_v33, %s5988_s28  ;;  %958 = vrot.lane.b32.xlu0 %v946_v52, %s5988_s28  ;;  %v993_v52 = vmul.f32 %v6301_v26, %v6152_v45  ;;  %v994_v33 = vmul.f32 %v6301_v26, %v6155_v46 }
 0x158   :  { %v6547_v4 = vpop.permute.xlu1 %543  ;;  %v6549_v29 = vpop.permute.xlu0 %545 }
 0x159   :  { %8106 = vst [vmem:[#allocation17_spill] sm:$0xff] %v6547_v4 }
 0x15a   :  { %918 = vrot.lane.b32.xlu1 %v902_v57, %s5987_s27  ;;  %920 = vrot.lane.b32.xlu0 %v903_v58, %s5987_s27  ;;  %v995_v57 = vmul.f32 %v6301_v26, %v6160_v47  ;;  %v992_v58 = vmul.f32 %v6301_v26, %v6163_v48 }
 0x15c   :  { %v6557_v17 = vpop.permute.xlu1 %547  ;;  %v6559_v22 = vpop.permute.xlu0 %541 }
 0x15d   :  { %8107 = vst [vmem:[#allocation18_spill] sm:$0xff] %v6557_v17  ;;  %8108 = vst [vmem:[#allocation19_spill] sm:$0xff] %v6559_v22 }
 0x15e   :  { %1006 = vrot.lane.b32.xlu1 %v993_v52, %s5988_s28  ;;  %1008 = vrot.lane.b32.xlu0 %v994_v33, %s5988_s28  ;;  %v950_v52 = vmul.f32 %v6355_v2, %v6188_v60  ;;  %v951_v33 = vmul.f32 %v6355_v2, %v6191_v61 }
 0x160   :  { %v6567_v4 = vpop.permute.xlu1 %501  ;;  %v6569_v11 = vpop.permute.xlu0 %503 }
 0x161   :  { %8109 = vst [vmem:[#allocation20_spill] sm:$0xff] %v6567_v4  ;;  %8110 = vst [vmem:[#allocation21_spill] sm:$0xff] %v6569_v11 }
 0x162   :  { %1010 = vrot.lane.b32.xlu1 %v995_v57, %s5988_s28  ;;  %1004 = vrot.lane.b32.xlu0 %v992_v58, %s5988_s28  ;;  %v1038_v57 = vmul.f32 %v6313_v36, %v6198_v0  ;;  %v1039_v58 = vmul.f32 %v6313_v36, %v6201_v1 }
 0x164   :  { %v6577_v22 = vpop.permute.xlu1 %589  ;;  %v6579_v17 = vpop.permute.xlu0 %591 }
 0x165   :  { %8111 = vst [vmem:[#allocation22_spill] sm:$0xff] %v6577_v22 }
 0x166   :  { %966 = vrot.lane.b32.xlu1 %v950_v52, %s5988_s28  ;;  %968 = vrot.lane.b32.xlu0 %v951_v33, %s5988_s28  ;;  %v1040_v52 = vmul.f32 %v6313_v36, %v6215_v9  ;;  %v1037_v33 = vmul.f32 %v6313_v36, %v6218_v10 }
 0x168   :  { %v6587_v11 = vpop.permute.xlu1 %593  ;;  %v6589_v4 = vpop.permute.xlu0 %587 }
 0x169   :  { %8112 = vst [vmem:[#allocation23_spill] sm:$0xff] %v6587_v11  ;;  %8113 = vst [vmem:[#allocation24_spill] sm:$0xff] %v6589_v4 }
 0x16a   :  { %1051 = vrot.lane.b32.xlu1 %v1038_v57, %s5988_s28  ;;  %1053 = vrot.lane.b32.xlu0 %v1039_v58, %s5988_s28  ;;  %v996_v57 = vmul.f32 %v6301_v26, %v6223_v23  ;;  %v997_v58 = vmul.f32 %v6301_v26, %v6226_v24 }
 0x16c   :  { %v6597_v22 = vpop.permute.xlu1 %549  ;;  %v6599_v2 = vpop.permute.xlu0 %551 }
 0x16d   :  { %8114 = vst [vmem:[#allocation25_spill] sm:$0xff] %v6597_v22  ;;  %8115 = vst [vmem:[#allocation26_spill] sm:$0xff] %v6599_v2 }
 0x16e   :  { %1055 = vrot.lane.b32.xlu1 %v1040_v52, %s5988_s28  ;;  %1049 = vrot.lane.b32.xlu0 %v1037_v33, %s5988_s28  ;;  %v1086_v52 = vmul.f32 %v6367_v6, %v6125_v31  ;;  %v1087_v33 = vmul.f32 %v6367_v6, %v6122_v30 }
 0x170   :  { %v6607_v4 = vpop.permute.xlu1 %634  ;;  %v6609_v11 = vpop.permute.xlu0 %636 }
 0x171   :  { %8116 = vst [vmem:[#allocation27_spill] sm:$0xff] %v6607_v4 }
 0x172   :  { %1012 = vrot.lane.b32.xlu1 %v996_v57, %s5988_s28  ;;  %1014 = vrot.lane.b32.xlu0 %v997_v58, %s5988_s28  ;;  %v1088_v58 = vmul.f32 %v6367_v6, %v6138_v39 }
 0x174   :  { %v6617_v2 = vpop.permute.xlu1 %638  ;;  %v6619_v22 = vpop.permute.xlu0 %632 }
 0x175   :  { %8117 = vst [vmem:[#allocation28_spill] sm:$0xff] %v6617_v2  ;;  %8118 = vst [vmem:[#allocation29_spill] sm:$0xff] %v6619_v22  ;;  %v1085_v22 = vmul.f32 %v6367_v6, %v6141_v40 }
 0x176   :  { %1099 = vrot.lane.b32.xlu1 %v1086_v52, %s5989_s29  ;;  %1101 = vrot.lane.b32.xlu0 %v1087_v33, %s5989_s29  ;;  %v1041_v52 = vmul.f32 %v6313_v36, %v6246_v41  ;;  %v1042_v33 = vmul.f32 %v6313_v36, %v6249_v42 }
 0x178   :  { %v6627_v26 = vpop.permute.xlu1 %595  ;;  %v6629_v57 = vpop.permute.xlu0 %597 }
 0x179   :  { %8119 = vst [vmem:[#allocation30_spill] sm:$0xff] %v6627_v26  ;;  %8120 = vst [vmem:[#allocation31_spill] sm:$0xff] %v6629_v57 }
 0x17a   :  { %1103 = vrot.lane.b32.xlu1 %v1088_v58, %s5989_s29  ;;  %1097 = vrot.lane.b32.xlu0 %v1085_v22, %s5989_s29  ;;  %v1132_v22 = vmul.f32 %v6323_v38, %v6152_v45  ;;  %v1133_v58 = vmul.f32 %v6323_v38, %v6155_v46 }
 0x17c   :  { %v6637_v2 = vpop.permute.xlu1 %682  ;;  %v6639_v4 = vpop.permute.xlu0 %684 }
 0x17d   :  { %8121 = vst [vmem:[#allocation32_spill] sm:$0xff] %v6637_v2 }
 0x17e   :  { %1057 = vrot.lane.b32.xlu1 %v1041_v52, %s5988_s28  ;;  %1059 = vrot.lane.b32.xlu0 %v1042_v33, %s5988_s28  ;;  %v1134_v52 = vmul.f32 %v6323_v38, %v6160_v47  ;;  %v1131_v33 = vmul.f32 %v6323_v38, %v6163_v48 }
 0x180   :  { %v6647_v57 = vpop.permute.xlu1 %686  ;;  %v6649_v26 = vpop.permute.xlu0 %680 }
 0x181   :  { %8122 = vst [vmem:[#allocation33_spill] sm:$0xff] %v6647_v57  ;;  %8123 = vst [vmem:[#allocation34_spill] sm:$0xff] %v6649_v26 }
 0x182   :  { %1145 = vrot.lane.b32.xlu1 %v1132_v22, %s5989_s29  ;;  %1147 = vrot.lane.b32.xlu0 %v1133_v58, %s5989_s29  ;;  %v1089_v22 = vmul.f32 %v6367_v6, %v6188_v60  ;;  %v1090_v58 = vmul.f32 %v6367_v6, %v6191_v61 }
 0x184   :  { %v6657_v2 = vpop.permute.xlu1 %640  ;;  %v6659_v36 = vpop.permute.xlu0 %642 }
 0x185   :  { %8124 = vst [vmem:[#allocation35_spill] sm:$0xff] %v6657_v2  ;;  %8125 = vst [vmem:[#allocation36_spill] sm:$0xff] %v6659_v36 }
 0x186   :  { %1149 = vrot.lane.b32.xlu1 %v1134_v52, %s5989_s29  ;;  %1143 = vrot.lane.b32.xlu0 %v1131_v33, %s5989_s29  ;;  %v1177_v52 = vmul.f32 %v6081_v14, %v6198_v0  ;;  %v1178_v33 = vmul.f32 %v6081_v14, %v6201_v1 }
 0x188   :  { %v6667_v26 = vpop.permute.xlu1 %728  ;;  %v6669_v57 = vpop.permute.xlu0 %730 }
 0x189   :  { %8126 = vst [vmem:[#allocation37_spill] sm:$0xff] %v6667_v26 }
 0x18a   :  { %1105 = vrot.lane.b32.xlu1 %v1089_v22, %s5989_s29  ;;  %1107 = vrot.lane.b32.xlu0 %v1090_v58, %s5989_s29  ;;  %v1179_v22 = vmul.f32 %v6081_v14, %v6215_v9  ;;  %v1176_v58 = vmul.f32 %v6081_v14, %v6218_v10 }
 0x18c   :  { %v6677_v36 = vpop.permute.xlu1 %732  ;;  %v6679_v2 = vpop.permute.xlu0 %726 }
 0x18d   :  { %8127 = vst [vmem:[#allocation38_spill] sm:$0xff] %v6677_v36  ;;  %8128 = vst [vmem:[#allocation39_spill] sm:$0xff] %v6679_v2 }
 0x18e   :  { %1190 = vrot.lane.b32.xlu1 %v1177_v52, %s5989_s29  ;;  %1192 = vrot.lane.b32.xlu0 %v1178_v33, %s5989_s29  ;;  %v1135_v52 = vmul.f32 %v6323_v38, %v6223_v23  ;;  %v1136_v33 = vmul.f32 %v6323_v38, %v6226_v24 }
 0x190   :  { %v6687_v26 = vpop.permute.xlu1 %688  ;;  %v6689_v6 = vpop.permute.xlu0 %690 }
 0x191   :  { %8129 = vst [vmem:[#allocation40_spill] sm:$0xff] %v6687_v26  ;;  %8130 = vst [vmem:[#allocation41_spill] sm:$0xff] %v6689_v6 }
 0x192   :  { %1194 = vrot.lane.b32.xlu1 %v1179_v22, %s5989_s29  ;;  %1188 = vrot.lane.b32.xlu0 %v1176_v58, %s5989_s29  ;;  %v1225_v22 = vmul.f32 %v6333_v51, %v6125_v31  ;;  %v1226_v58 = vmul.f32 %v6333_v51, %v6122_v30 }
 0x194   :  { %v6697_v2 = vpop.permute.xlu1 %773  ;;  %v6699_v36 = vpop.permute.xlu0 %775 }
 0x195   :  { %8131 = vst [vmem:[#allocation42_spill] sm:$0xff] %v6697_v2 }
 0x196   :  { %1151 = vrot.lane.b32.xlu1 %v1135_v52, %s5989_s29  ;;  %1153 = vrot.lane.b32.xlu0 %v1136_v33, %s5989_s29  ;;  %v1227_v33 = vmul.f32 %v6333_v51, %v6138_v39 }
 0x198   :  { %v6707_v6 = vpop.permute.xlu1 %777  ;;  %v6709_v26 = vpop.permute.xlu0 %771 }
 0x199   :  { %8132 = vst [vmem:[#allocation43_spill] sm:$0xff] %v6707_v6  ;;  %8133 = vst [vmem:[#allocation44_spill] sm:$0xff] %v6709_v26  ;;  %v1224_v26 = vmul.f32 %v6333_v51, %v6141_v40 }
 0x19a   :  { %1238 = vrot.lane.b32.xlu1 %v1225_v22, %s5990_s30  ;;  %1240 = vrot.lane.b32.xlu0 %v1226_v58, %s5990_s30  ;;  %v1180_v22 = vmul.f32 %v6081_v14, %v6246_v41  ;;  %v1181_v58 = vmul.f32 %v6081_v14, %v6249_v42  ;;  %v1356_v14 = vld [vmem:[%s8020_s2] sm:$0xff] }
 0x19c   :  { %v6717_v38 = vpop.permute.xlu1 %734  ;;  %v6719_v52 = vpop.permute.xlu0 %736 }
 0x19d   :  { %8134 = vst [vmem:[#allocation45_spill] sm:$0xff] %v6717_v38  ;;  %8135 = vst [vmem:[#allocation46_spill] sm:$0xff] %v6719_v52 }
 0x19e   :  { %1242 = vrot.lane.b32.xlu1 %v1227_v33, %s5990_s30  ;;  %1236 = vrot.lane.b32.xlu0 %v1224_v26, %s5990_s30  ;;  %v1271_v26 = vmul.f32 %v6343_v55, %v6152_v45  ;;  %v1272_v33 = vmul.f32 %v6343_v55, %v6155_v46 }
 0x1a0   :  { %v6727_v6 = vpop.permute.xlu1 %821  ;;  %v6729_v2 = vpop.permute.xlu0 %823 }
 0x1a1   :  { %8136 = vst [vmem:[#allocation47_spill] sm:$0xff] %v6727_v6 }
 0x1a2   :  { %1196 = vrot.lane.b32.xlu1 %v1180_v22, %s5989_s29  ;;  %1198 = vrot.lane.b32.xlu0 %v1181_v58, %s5989_s29 }
 0x1a4   :  { %v6737_v52 = vpop.permute.xlu1 %825  ;;  %v6739_v38 = vpop.permute.xlu0 %819 }
 0x1a5   :  { %8137 = vst [vmem:[#allocation48_spill] sm:$0xff] %v6737_v52  ;;  %8138 = vst [vmem:[#allocation49_spill] sm:$0xff] %v6739_v38  ;;  %v1273_v38 = vmul.f32 %v6343_v55, %v6160_v47 }
 0x1a6   :  { %1284 = vrot.lane.b32.xlu1 %v1271_v26, %s5990_s30  ;;  %1286 = vrot.lane.b32.xlu0 %v1272_v33, %s5990_s30  ;;  %v1270_v26 = vmul.f32 %v6343_v55, %v6163_v48  ;;  %v1229_v33 = vmul.f32 %v6333_v51, %v6191_v61 }
 0x1a8   :  { %v6750_v22 = vpop.permute.xlu1 %779  ;;  %v6752_v58 = vpop.permute.xlu0 %781 }
 0x1a9   :  { %8139 = vst [vmem:[#allocation50_spill] sm:$0xff] %v6750_v22  ;;  %8140 = vst [vmem:[#allocation51_spill] sm:$0xff] %v6752_v58 }
 0x1aa   :  { %1288 = vrot.lane.b32.xlu1 %v1273_v38, %s5990_s30  ;;  %1359 = vperm.xlu0 %5978, %v1356_v14   ;;  %v1228_v38 = vmul.f32 %v6333_v51, %v6188_v60  ;;  %v1317_v14 = vmul.f32 %v6083_v15, %v6201_v1 }
 0x1ac   :  { %v6757_v52 = vpop.permute.xlu1 %867  ;;  %v6759_v6 = vpop.permute.xlu0 %869 }
 0x1ad   :  { %8141 = vst [vmem:[#allocation52_spill] sm:$0xff] %v6757_v52  ;;  %8142 = vst [vmem:[#allocation53_spill] sm:$0xff] %v6759_v6 }
 0x1ae   :  { %1282 = vrot.lane.b32.xlu1 %v1270_v26, %s5990_s30  ;;  %1246 = vrot.lane.b32.xlu0 %v1229_v33, %s5990_s30  ;;  %v1316_v26 = vmul.f32 %v6083_v15, %v6198_v0  ;;  %v1315_v33 = vmul.f32 %v6083_v15, %v6218_v10 }
 0x1b0   :  { %v6767_v58 = vpop.permute.xlu1 %871  ;;  %v6769_v22 = vpop.permute.xlu0 %865 }
 0x1b1   :  { %8143 = vst [vmem:[#allocation54_spill] sm:$0xff] %v6769_v22 }
 0x1b2   :  { %1244 = vrot.lane.b32.xlu1 %v1228_v38, %s5990_s30  ;;  %1331 = vrot.lane.b32.xlu0 %v1317_v14, %s5990_s30  ;;  %v1318_v38 = vmul.f32 %v6083_v15, %v6215_v9  ;;  %v1275_v14 = vmul.f32 %v6343_v55, %v6226_v24 }
 0x1b4   :  { %v6777_v52 = vpop.permute.xlu1 %827  ;;  %v6779_v6 = vpop.permute.xlu0 %829 }
 0x1b5   :  { %8144 = vst [vmem:[#allocation55_spill] sm:$0xff] %v6777_v52  ;;  %8145 = vst [vmem:[#allocation56_spill] sm:$0xff] %v6779_v6 }
 0x1b6   :  { %1329 = vrot.lane.b32.xlu1 %v1316_v26, %s5990_s30  ;;  %1327 = vrot.lane.b32.xlu0 %v1315_v33, %s5990_s30  ;;  %v1274_v26 = vmul.f32 %v6343_v55, %v6223_v23  ;;  %v1320_v33 = vmul.f32 %v6083_v15, %v6249_v42 }
 0x1b8   :  { %v6787_v51 = vpop.permute.xlu1 %912  ;;  %v6789_v22 = vpop.permute.xlu0 %914 }
 0x1b9   :  { %8146 = vst [vmem:[#allocation57_spill] sm:$0xff] %v6787_v51  ;;  %8147 = vst [vmem:[#allocation58_spill] sm:$0xff] %v6789_v22  ;;  %v6808_v51 = vld [vmem:[%s8021_s5] sm:$0x3f]  ;;  %s5991_s5 = smov 13  }
 0x1ba   :  { %1333 = vrot.lane.b32.xlu1 %v1318_v38, %s5990_s30  ;;  %1292 = vrot.lane.b32.xlu0 %v1275_v14, %s5990_s30  ;;  %8150 = vst [vmem:[#allocation61_spill] sm:$0xff] %v6808_v51  ;;  %v1383_v38 = vrot.slane %v6808_v51, %v6116_v28  ;;  %v1390_v14 = vsub.s32 3, %v6089_v19  ;;  %v1379_v22 = vrot.slane %v6808_v51, %v6092_v20 }
 0x1bb   :  { %v1395_v20 = vrot.slane %v6808_v51, %v6095_v21 }
 0x1bc   :  { %v6797_v6 = vpop.permute.xlu1 %916  ;;  %v6799_v52 = vpop.permute.xlu0 %910 }
 0x1bd   :  { %8148 = vst [vmem:[#allocation59_spill] sm:$0xff] %v6797_v6  ;;  %8149 = vst [vmem:[#allocation60_spill] sm:$0xff] %v6799_v52  ;;  %v1319_v6 = vmul.f32 %v6083_v15, %v6246_v41 }
 0x1be   :  { %1290 = vrot.lane.b32.xlu1 %v1274_v26, %s5990_s30  ;;  %1337 = vrot.lane.b32.xlu0 %v1320_v33, %s5990_s30  ;;  %v1391_v26 = vrot.slane %v6808_v51, %v1390_v14  ;;  %v1387_v33 = vrot.slane %v6808_v51, %v6169_v50 }
 0x1c0   :  { %v6815_v52 = vpop.permute.xlu1 %873  ;;  %v6817_v55 = vpop.permute.xlu0 %875 }
 0x1c2   :  { %1335 = vrot.lane.b32.xlu1 %v1319_v6, %s5990_s30  ;;  %1402 = vrot.lane.b32.xlu0 %v1383_v38, %s5991_s5 }
 0x1c4   :  { %v6826_v28 = vpop.permute.xlu1 %960  ;;  %v6828_v19 = vpop.permute.xlu0 %962 }
 0x1c5   :  { %8151 = vst [vmem:[#allocation62_spill] sm:$0xff] %v6826_v28 }
 0x1c6   :  { %1400 = vrot.lane.b32.xlu1 %v1379_v22, %s5991_s5  ;;  %1406 = vrot.lane.b32.xlu0 %v1391_v26, %s5991_s5 }
 0x1c8   :  { %v6834_v15 = vpop.permute.xlu1 %964  ;;  %v6836_v6 = vpop.permute.xlu0 %958 }
 0x1c9   :  { %8152 = vst [vmem:[#allocation63_spill] sm:$0xff] %v6834_v15  ;;  %8153 = vst [vmem:[#allocation64_spill] sm:$0xff] %v6836_v6 }
 0x1ca   :  { %1404 = vrot.lane.b32.xlu1 %v1387_v33, %s5991_s5 }
 0x1cc   :  { %v6841_v38 = vpop.permute.xlu1 %918  ;;  %v6843_v14 = vpop.permute.xlu0 %920 }
 0x1cd   :  { %8154 = vst [vmem:[#allocation65_spill] sm:$0xff] %v6843_v14 }
 0x1ce   :  { %1408 = vrot.lane.b32.xlu1 %v1395_v20, %s5991_s5 }
 0x1d0   :  { %v6846_v22 = vpop.permute.xlu1 %1006  ;;  %v6848_v50 = vpop.permute.xlu0 %1008 }
 0x1d1   :  { %8155 = vst [vmem:[#allocation66_spill] sm:$0xff] %v6846_v22  ;;  %8156 = vst [vmem:[#allocation67_spill] sm:$0xff] %v6848_v50 }
 0x1d4   :  { %v6850_v26 = vpop.permute.xlu1 %1010  ;;  %v6852_v15 = vpop.permute.xlu0 %1004 }
 0x1d5   :  { %8157 = vst [vmem:[#allocation68_spill] sm:$0xff] %v6850_v26  ;;  %8158 = vst [vmem:[#allocation69_spill] sm:$0xff] %v6852_v15 }
 0x1d8   :  { %v6854_v6 = vpop.permute.xlu1 %966  ;;  %v6856_v33 = vpop.permute.xlu0 %968 }
 0x1d9   :  { %8159 = vst [vmem:[#allocation70_spill] sm:$0xff] %v6854_v6 }
 0x1dc   :  { %v6858_v28 = vpop.permute.xlu1 %1051  ;;  %v6860_v21 = vpop.permute.xlu0 %1053 }
 0x1dd   :  { %8160 = vst [vmem:[#allocation71_spill] sm:$0xff] %v6858_v28  ;;  %8161 = vst [vmem:[#allocation72_spill] sm:$0xff] %v6860_v21  ;;  %v163_v28 = vmul.f32 %v6152_v45, %v6113_v27  ;;  %v95_v45 = vmul.f32 %v6138_v39, %v6357_v3  ;;  %v232_v39 = vmul.f32 %v6218_v10, %v6369_v7 }
 0x1e0   :  { %v6862_v51 = vpop.permute.xlu1 %1055  ;;  %v6864_v14 = vpop.permute.xlu0 %1049 }
 0x1e1   :  { %8162 = vst [vmem:[#allocation73_spill] sm:$0xff] %v6862_v51  ;;  %8163 = vst [vmem:[#allocation74_spill] sm:$0xff] %v6864_v14  ;;  %v93_v51 = vmul.f32 %v6125_v31, %v6357_v3  ;;  %v96_v31 = vmul.f32 %v6188_v60, %v6357_v3  ;;  %v235_v60 = vmul.f32 %v6215_v9, %v6369_v7 }
 0x1e4   :  { %v6866_v20 = vpop.permute.xlu1 %1012  ;;  %v6868_v22 = vpop.permute.xlu0 %1014 }
 0x1e5   :  { %8164 = vst [vmem:[#allocation75_spill] sm:$0xff] %v6866_v20  ;;  %8165 = vst [vmem:[#allocation76_spill] sm:$0xff] %v6868_v22  ;;  %v164_v20 = vmul.f32 %v6155_v46, %v6113_v27  ;;  %v162_v22 = vmul.f32 %v6163_v48, %v6113_v27  ;;  %v233_v46 = vmul.f32 %v6198_v0, %v6369_v7 }
 0x1e6   :  { %v165_v48 = vmul.f32 %v6160_v47, %v6113_v27  ;;  %v167_v0 = vmul.f32 %v6226_v24, %v6113_v27  ;;  %v236_v47 = vmul.f32 %v6246_v41, %v6369_v7  ;;  %v278_v24 = vsel %vm275_vm0, %v6377_v25, %v6387_v35 }
 0x1e8   :  { %v6870_v50 = vpop.permute.xlu1 %1099  ;;  %v6872_v26 = vpop.permute.xlu0 %1101  ;;  %v171_v14 = vadd.f32 %v165_v48, %v95_v45 }
 0x1e9   :  { %8166 = vst [vmem:[#allocation77_spill] sm:$0xff] %v6870_v50  ;;  %8167 = vst [vmem:[#allocation78_spill] sm:$0xff] %v6872_v26 }
 0x1ec   :  { %v6874_v15 = vpop.permute.xlu1 %1103  ;;  %v6876_v6 = vpop.permute.xlu0 %1097 }
 0x1ed   :  { %8168 = vst [vmem:[#allocation79_spill] sm:$0xff] %v6874_v15  ;;  %8169 = vst [vmem:[#allocation80_spill] sm:$0xff] %v6876_v6  ;;  %v94_v6 = vmul.f32 %v6122_v30, %v6357_v3  ;;  %v92_v15 = vmul.f32 %v6141_v40, %v6357_v3  ;;  %v166_v30 = vmul.f32 %v6223_v23, %v6113_v27 }
 0x1ee   :  { %v234_v40 = vmul.f32 %v6201_v1, %v6369_v7  ;;  %v277_v27 = vsel %vm275_vm0, %v6379_v32, %v6377_v25 }
 0x1ef   :  { %v168_v10 = vadd.f32 %v162_v22, %v92_v15  ;;  %v172_v21 = vadd.f32 %v166_v30, %v96_v31  ;;  %v322_v15 = vsel %vm275_vm0, %v6397_v16, %v6399_v44 }
 0x1f0   :  { %v6886_v50 = vpop.permute.xlu1 %1057  ;;  %v6888_v26 = vpop.permute.xlu0 %1059 }
 0x1f1   :  { %8170 = vst [vmem:[#allocation81_spill] sm:$0xff] %v6886_v50  ;;  %8171 = vst [vmem:[#allocation82_spill] sm:$0xff] %v6888_v26  ;;  %v97_v26 = vmul.f32 %v6191_v61, %v6357_v3  ;;  %v169_v50 = vadd.f32 %v163_v28, %v93_v51  ;;  %v237_v61 = vmul.f32 %v6249_v42, %v6369_v7 }
 0x1f2   :  { %v170_v3 = vadd.f32 %v164_v20, %v94_v6  ;;  %v238_v7 = vadd.f32 %v232_v39, %v168_v10  ;;  %v276_v51 = vsel %vm275_vm0, %v6389_v13, %v6379_v32  ;;  %v241_v28 = vadd.f32 %v235_v60, %v171_v14 }
 0x1f3   :  { %v239_v9 = vadd.f32 %v233_v46, %v169_v50  ;;  %v173_v41 = vadd.f32 %v167_v0, %v97_v26  ;;  %v323_v6 = vsel %vm275_vm0, %v6399_v44, %v6407_v54  ;;  %v242_v22 = vadd.f32 %v236_v47, %v172_v21  ;;  %v8172_v47 = vld [vmem:[#allocation3_spill] sm:$0xff] }
 0x1f4   :  { %v6918_v23 = vpop.permute.xlu1 %1145  ;;  %v6920_v1 = vpop.permute.xlu0 %1147  ;;  %v240_v42 = vadd.f32 %v234_v40, %v170_v3  ;;  %v321_v32 = vsel %vm275_vm0, %v6409_v43, %v6397_v16  ;;  %v279_v13 = vsel %vm275_vm0, %v6387_v35, %v6417_v59  ;;  %v287_v14 = vadd.f32 %v276_v51, %v238_v7  ;;  %v8176_v51 = vld [vmem:[#allocation7_spill] sm:$0xff] }
 0x1f5   :  { %v243_v50 = vadd.f32 %v237_v61, %v173_v41  ;;  %v288_v26 = vadd.f32 %v277_v27, %v239_v9  ;;  %v280_v44 = vsel %vm275_vm0, %v6417_v59, %v6419_v56  ;;  %v367_v21 = vsel %vm275_vm0, %v6427_v5, %v6429_v8  ;;  %v8173_v61 = vld [vmem:[#allocation4_spill] sm:$0xff]  ;;  %v8174_v27 = vld [vmem:[#allocation5_spill] sm:$0xff] }
 0x1f6   :  { %v289_v45 = vadd.f32 %v278_v24, %v240_v42  ;;  %v368_v16 = vsel %vm275_vm0, %v6429_v8, %v6437_v34  ;;  %v366_v35 = vsel %vm275_vm0, %v6439_v37, %v6427_v5  ;;  %v332_v43 = vadd.f32 %v321_v32, %v287_v14  ;;  %v8175_v24 = vld [vmem:[#allocation6_spill] sm:$0xff] }
 0x1f7   :  { %v333_v31 = vadd.f32 %v322_v15, %v288_v26  ;;  %v290_v48 = vadd.f32 %v279_v13, %v241_v28  ;;  %v292_v30 = vadd.f32 %v6419_v56, %v243_v50  ;;  %v324_v59 = vsel %vm275_vm0, %v6407_v54, %v6447_v18  ;;  %v8177_v28 = vld [vmem:[#allocation8_spill] sm:$0xff]  ;;  %v8178_v50 = vld [vmem:[#allocation9_spill] sm:$0xff]  ;;  %v8179_v13 = vld [vmem:[#allocation10_spill] sm:$0xff] }
 0x1f8   :  { %v6937_v20 = vpop.permute.xlu1 %1149  ;;  %v6939_v25 = vpop.permute.xlu0 %1143  ;;  %v334_v46 = vadd.f32 %v323_v6, %v289_v45  ;;  %v291_v60 = vadd.f32 %v280_v44, %v242_v22  ;;  %v325_v8 = vsel %vm275_vm0, %v6447_v18, %v6449_v49  ;;  %v416_v5 = vsel %vm414_vm1, %v6457_v62, %v6459_v53  ;;  %v8180_v44 = vld [vmem:[#allocation11_spill] sm:$0xff] }
 0x1f9   :  { %v378_v0 = vadd.f32 %v367_v21, %v333_v31  ;;  %v377_v56 = vadd.f32 %v366_v35, %v332_v43  ;;  %v417_v54 = vsel %vm414_vm1, %v6459_v53, %v8172_v47  ;;  %v415_v3 = vsel %vm414_vm1, %v8173_v61, %v6457_v62  ;;  %v8182_v35 = vld [vmem:[#allocation13_spill] sm:$0xff] }
 0x1fa   :  { %v379_v37 = vadd.f32 %v368_v16, %v334_v46  ;;  %v335_v10 = vadd.f32 %v324_v59, %v290_v48  ;;  %v337_v9 = vadd.f32 %v6449_v49, %v292_v30  ;;  %v369_v18 = vsel %vm275_vm0, %v6437_v34, %v8174_v27  ;;  %v8181_v46 = vld [vmem:[#allocation12_spill] sm:$0xff]  ;;  %v8183_v59 = vld [vmem:[#allocation14_spill] sm:$0xff]  ;;  %v8186_v61 = vld [vmem:[#allocation17_spill] sm:$0xff] }
 0x1fb   :  { %v370_v41 = vsel %vm275_vm0, %v8174_v27, %v8175_v24  ;;  %v336_v42 = vadd.f32 %v325_v8, %v291_v60  ;;  %v427_v7 = vadd.f32 %v416_v5, %v378_v0  ;;  %v461_v53 = vsel %vm414_vm1, %v8176_v51, %v6489_v12  ;;  %v8184_v0 = vld [vmem:[#allocation15_spill] sm:$0xff]  ;;  %v8187_v27 = vld [vmem:[#allocation18_spill] sm:$0xff] }
 0x1fc   :  { %v6963_v40 = vpop.permute.xlu1 %1105  ;;  %v6965_v39 = vpop.permute.xlu0 %1107  ;;  %v462_v62 = vsel %vm414_vm1, %v6489_v12, %v8177_v28  ;;  %v428_v6 = vadd.f32 %v417_v54, %v379_v37  ;;  %v426_v34 = vadd.f32 %v415_v3, %v377_v56  ;;  %v382_v22 = vadd.f32 %v8175_v24, %v337_v9  ;;  %v8185_v54 = vld [vmem:[#allocation16_spill] sm:$0xff]  ;;  %v8188_v24 = vld [vmem:[#allocation19_spill] sm:$0xff] }
 0x1fd   :  { %v460_v26 = vsel %vm414_vm1, %v8178_v50, %v8176_v51  ;;  %v380_v45 = vadd.f32 %v369_v18, %v335_v10  ;;  %v381_v32 = vadd.f32 %v370_v41, %v336_v42  ;;  %v418_v14 = vsel %vm414_vm1, %v8172_v47, %v8179_v13 }
 0x1fe   :  { %v419_v12 = vsel %vm414_vm1, %v8179_v13, %v8180_v44  ;;  %v472_v21 = vadd.f32 %v461_v53, %v427_v7  ;;  %v473_v31 = vadd.f32 %v462_v62, %v428_v6  ;;  %v506_v16 = vsel %vm414_vm1, %v8181_v46, %v6519_v63  ;;  %v8189_v53 = vld [vmem:[#allocation20_spill] sm:$0xff]  ;;  %v8192_v13 = vld [vmem:[#allocation23_spill] sm:$0xff] }
 0x1ff   :  { %v507_v43 = vsel %vm414_vm1, %v6519_v63, %v8182_v35  ;;  %v471_v48 = vadd.f32 %v460_v26, %v426_v34  ;;  %v431_v30 = vadd.f32 %v8180_v44, %v382_v22  ;;  %v505_v60 = vsel %vm414_vm1, %v8183_v59, %v8181_v46  ;;  %v8190_v34 = vld [vmem:[#allocation21_spill] sm:$0xff]  ;;  %v8193_v44 = vld [vmem:[#allocation24_spill] sm:$0xff] }
 0x200   :  { %v6992_v15 = vpop.permute.xlu1 %1190  ;;  %v6994_v49 = vpop.permute.xlu0 %1192  ;;  %v463_v8 = vsel %vm414_vm1, %v8177_v28, %v8184_v0  ;;  %v429_v56 = vadd.f32 %v418_v14, %v380_v45  ;;  %v430_v47 = vadd.f32 %v419_v12, %v381_v32  ;;  %v464_v63 = vsel %vm414_vm1, %v8184_v0, %v8185_v54  ;;  %v8197_v0 = vld [vmem:[#allocation28_spill] sm:$0xff] }
 0x201   :  { %v555_v3 = vsel %vm553_vm2, %v8186_v61, %v6549_v29  ;;  %v517_v10 = vadd.f32 %v506_v16, %v472_v21  ;;  %v518_v9 = vadd.f32 %v507_v43, %v473_v31  ;;  %v556_v18 = vsel %vm553_vm2, %v6549_v29, %v8187_v27  ;;  %v8191_v29 = vld [vmem:[#allocation22_spill] sm:$0xff]  ;;  %v8194_v16 = vld [vmem:[#allocation25_spill] sm:$0xff] }
 0x202   :  { %v554_v41 = vsel %vm553_vm2, %v8188_v24, %v8186_v61  ;;  %v516_v42 = vadd.f32 %v505_v60, %v471_v48  ;;  %v474_v7 = vadd.f32 %v463_v8, %v429_v56  ;;  %v476_v51 = vadd.f32 %v8185_v54, %v431_v30  ;;  %v8195_v43 = vld [vmem:[#allocation26_spill] sm:$0xff]  ;;  %v8200_v24 = vld [vmem:[#allocation31_spill] sm:$0xff] }
 0x203   :  { %v508_v28 = vsel %vm414_vm1, %v8182_v35, %v8189_v53  ;;  %v475_v62 = vadd.f32 %v464_v63, %v430_v47  ;;  %v566_v6 = vadd.f32 %v555_v3, %v517_v10  ;;  %v509_v22 = vsel %vm414_vm1, %v8189_v53, %v8190_v34  ;;  %v8198_v63 = vld [vmem:[#allocation29_spill] sm:$0xff] }
 0x204   :  { %v7019_v5 = vpop.permute.xlu1 %1194  ;;  %v7021_v37 = vpop.permute.xlu0 %1188  ;;  %v600_v50 = vsel %vm553_vm2, %v8191_v29, %v6579_v17  ;;  %v567_v45 = vadd.f32 %v556_v18, %v518_v9  ;;  %v565_v32 = vadd.f32 %v554_v41, %v516_v42  ;;  %v601_v14 = vsel %vm553_vm2, %v6579_v17, %v8192_v13  ;;  %v8196_v17 = vld [vmem:[#allocation27_spill] sm:$0xff]  ;;  %v8202_v53 = vld [vmem:[#allocation33_spill] sm:$0xff] }
 0x205   :  { %v599_v12 = vsel %vm553_vm2, %v8193_v44, %v8191_v29  ;;  %v519_v31 = vadd.f32 %v508_v28, %v474_v7  ;;  %v521_v46 = vadd.f32 %v8190_v34, %v476_v51  ;;  %v557_v35 = vsel %vm553_vm2, %v8187_v27, %v8194_v16  ;;  %v8199_v27 = vld [vmem:[#allocation30_spill] sm:$0xff]  ;;  %v8201_v7 = vld [vmem:[#allocation32_spill] sm:$0xff]  ;;  %v8204_v29 = vld [vmem:[#allocation35_spill] sm:$0xff] }
 0x206   :  { %v558_v48 = vsel %vm553_vm2, %v8194_v16, %v8195_v43  ;;  %v520_v30 = vadd.f32 %v509_v22, %v475_v62  ;;  %v611_v59 = vadd.f32 %v600_v50, %v566_v6  ;;  %v645_v60 = vsel %vm553_vm2, %v8196_v17, %v6609_v11  ;;  %v8203_v34 = vld [vmem:[#allocation34_spill] sm:$0xff] }
 0x207   :  { %v646_v8 = vsel %vm553_vm2, %v6609_v11, %v8197_v0  ;;  %v612_v56 = vadd.f32 %v601_v14, %v567_v45  ;;  %v610_v47 = vadd.f32 %v599_v12, %v565_v32  ;;  %v570_v54 = vadd.f32 %v8195_v43, %v521_v46  ;;  %v8205_v14 = vld [vmem:[#allocation36_spill] sm:$0xff] }
 0x208   :  { %v7045_v26 = vpop.permute.xlu1 %1151  ;;  %v7053_v21 = vpop.permute.xlu0 %1153  ;;  %v644_v61 = vsel %vm553_vm2, %v8198_v63, %v8196_v17  ;;  %v568_v10 = vadd.f32 %v557_v35, %v519_v31  ;;  %v569_v9 = vadd.f32 %v558_v48, %v520_v30  ;;  %v602_v18 = vsel %vm553_vm2, %v8192_v13, %v8199_v27  ;;  %v8207_v35 = vld [vmem:[#allocation38_spill] sm:$0xff]  ;;  %v8208_v48 = vld [vmem:[#allocation39_spill] sm:$0xff] }
 0x209   :  { %v603_v11 = vsel %vm553_vm2, %v8199_v27, %v8200_v24  ;;  %v656_v41 = vadd.f32 %v645_v60, %v611_v59  ;;  %v657_v42 = vadd.f32 %v646_v8, %v612_v56  ;;  %v694_v51 = vsel %vm692_vm3, %v8201_v7, %v6639_v4  ;;  %v8212_v27 = vld [vmem:[#allocation43_spill] sm:$0xff] }
 0x20a   :  { %v695_v28 = vsel %vm692_vm3, %v6639_v4, %v8202_v53  ;;  %v655_v62 = vadd.f32 %v644_v61, %v610_v47  ;;  %v615_v6 = vadd.f32 %v8200_v24, %v570_v54  ;;  %v693_v22 = vsel %vm692_vm3, %v8203_v34, %v8201_v7  ;;  %v8206_v4 = vld [vmem:[#allocation37_spill] sm:$0xff]  ;;  %v8213_v24 = vld [vmem:[#allocation44_spill] sm:$0xff] }
 0x20b   :  { %v647_v50 = vsel %vm553_vm2, %v8197_v0, %v8204_v29  ;;  %v613_v32 = vadd.f32 %v602_v18, %v568_v10  ;;  %v614_v13 = vadd.f32 %v603_v11, %v569_v9  ;;  %v648_v44 = vsel %vm553_vm2, %v8204_v29, %v8205_v14  ;;  %v8209_v0 = vld [vmem:[#allocation40_spill] sm:$0xff]  ;;  %v8210_v54 = vld [vmem:[#allocation41_spill] sm:$0xff] }
 0x20c   :  { %v7072_v3 = vpop.permute.xlu1 %1238  ;;  %v7093_v45 = vpop.permute.xlu0 %1240  ;;  %v739_v12 = vsel %vm692_vm3, %v8206_v4, %v6669_v57  ;;  %v705_v46 = vadd.f32 %v694_v51, %v656_v41  ;;  %v706_v16 = vadd.f32 %v695_v28, %v657_v42  ;;  %v740_v43 = vsel %vm692_vm3, %v6669_v57, %v8207_v35  ;;  %v8211_v57 = vld [vmem:[#allocation42_spill] sm:$0xff]  ;;  %v8214_v51 = vld [vmem:[#allocation45_spill] sm:$0xff] }
 0x20d   :  { %v738_v30 = vsel %vm692_vm3, %v8208_v48, %v8206_v4  ;;  %v704_v59 = vadd.f32 %v693_v22, %v655_v62  ;;  %v658_v17 = vadd.f32 %v647_v50, %v613_v32  ;;  %v660_v60 = vadd.f32 %v8205_v14, %v615_v6  ;;  %v8215_v28 = vld [vmem:[#allocation46_spill] sm:$0xff]  ;;  %v8216_v22 = vld [vmem:[#allocation47_spill] sm:$0xff]  ;;  %v8217_v50 = vld [vmem:[#allocation48_spill] sm:$0xff] }
 0x20e   :  { %v696_v8 = vsel %vm692_vm3, %v8202_v53, %v8209_v0  ;;  %v659_v56 = vadd.f32 %v648_v44, %v614_v13  ;;  %v750_v47 = vadd.f32 %v739_v12, %v705_v46  ;;  %v697_v63 = vsel %vm692_vm3, %v8209_v0, %v8210_v54  ;;  %v8218_v4 = vld [vmem:[#allocation49_spill] sm:$0xff]  ;;  %v8220_v48 = vld [vmem:[#allocation51_spill] sm:$0xff]  ;;  %v8222_v0 = vld [vmem:[#allocation52_spill] sm:$0xff] }
 0x20f   :  { %v784_v61 = vsel %vm692_vm3, %v8211_v57, %v6699_v36  ;;  %v751_v10 = vadd.f32 %v740_v43, %v706_v16  ;;  %v749_v9 = vadd.f32 %v738_v30, %v704_v59  ;;  %v785_v18 = vsel %vm692_vm3, %v6699_v36, %v8212_v27 }
 0x210   :  { %v7101_v31 = vpop.permute.xlu1 %1242  ;;  %v783_v11 = vsel %vm692_vm3, %v8213_v24, %v8211_v57  ;;  %v707_v42 = vadd.f32 %v696_v8, %v658_v17  ;;  %v709_v7 = vadd.f32 %v8210_v54, %v660_v60  ;;  %v741_v53 = vsel %vm692_vm3, %v8207_v35, %v8214_v51  ;;  %v7134_v6 = vpop.permute.xlu0 %1236  ;;  %v8219_v35 = vld [vmem:[#allocation50_spill] sm:$0xff]  ;;  %v8221_v60 = vld [vmem:[#allocation53_spill] sm:$0xff]  ;;  %v8224_v57 = vld [vmem:[#allocation55_spill] sm:$0xff] }
 0x211   :  { %v742_v62 = vsel %vm692_vm3, %v8214_v51, %v8215_v28  ;;  %v708_v36 = vadd.f32 %v697_v63, %v659_v56  ;;  %v795_v34 = vadd.f32 %v784_v61, %v750_v47  ;;  %v833_v29 = vsel %vm831_vm4, %v8216_v22, %v6729_v2  ;;  %v8223_v54 = vld [vmem:[#allocation54_spill] sm:$0xff] }
 0x212   :  { %v834_v32 = vsel %vm831_vm4, %v6729_v2, %v8217_v50  ;;  %v796_v13 = vadd.f32 %v785_v18, %v751_v10  ;;  %v794_v14 = vadd.f32 %v783_v11, %v749_v9  ;;  %v754_v44 = vadd.f32 %v8215_v28, %v709_v7  ;;  %v8225_v10 = vld [vmem:[#allocation56_spill] sm:$0xff]  ;;  %v8226_v11 = vld [vmem:[#allocation58_spill] sm:$0xff] }
 0x213   :  { %v832_v12 = vsel %vm831_vm4, %v8218_v4, %v8216_v22  ;;  %v752_v46 = vadd.f32 %v741_v53, %v707_v42  ;;  %v753_v16 = vadd.f32 %v742_v62, %v708_v36  ;;  %v786_v43 = vsel %vm692_vm3, %v8212_v27, %v8219_v35  ;;  %v8227_v42 = vld [vmem:[#allocation57_spill] sm:$0xff]  ;;  %v8228_v62 = vld [vmem:[#allocation59_spill] sm:$0xff] }
 0x214   :  { %v7125_v41 = vpop.permute.xlu1 %1196  ;;  %v787_v30 = vsel %vm692_vm3, %v8219_v35, %v8220_v48  ;;  %v844_v2 = vadd.f32 %v833_v29, %v795_v34  ;;  %v845_v17 = vadd.f32 %v834_v32, %v796_v13  ;;  %v878_v8 = vsel %vm831_vm4, %v8222_v0, %v8221_v60  ;;  %v7173_v51 = vpop.permute.xlu0 %1198  ;;  %v8229_v34 = vld [vmem:[#allocation60_spill] sm:$0xff] }
 0x215   :  { %v879_v56 = vsel %vm831_vm4, %v8221_v60, %v6767_v58  ;;  %v843_v47 = vadd.f32 %v832_v12, %v794_v14  ;;  %v877_v63 = vsel %vm831_vm4, %v8223_v54, %v8222_v0  ;;  %v835_v61 = vsel %vm831_vm4, %v8217_v50, %v8224_v57  ;;  %v8233_v60 = vld [vmem:[#allocation65_spill] sm:$0xff] }
 0x216   :  { %v836_v9 = vsel %vm831_vm4, %v8224_v57, %v8225_v10  ;;  %v797_v27 = vadd.f32 %v786_v43, %v752_v46  ;;  %v798_v18 = vadd.f32 %v787_v30, %v753_v16  ;;  %v799_v24 = vadd.f32 %v8220_v48, %v754_v44  ;;  %v8230_v46 = vld [vmem:[#allocation62_spill] sm:$0xff]  ;;  %v8231_v48 = vld [vmem:[#allocation63_spill] sm:$0xff] }
 0x217   :  { %v923_v7 = vsel %vm831_vm4, %v8227_v42, %v8226_v11  ;;  %v889_v53 = vadd.f32 %v878_v8, %v844_v2  ;;  %v890_v28 = vadd.f32 %v879_v56, %v845_v17  ;;  %v924_v36 = vsel %vm831_vm4, %v8226_v11, %v8228_v62  ;;  %v8232_v2 = vld [vmem:[#allocation64_spill] sm:$0xff]  ;;  %v8234_v8 = vld [vmem:[#allocation67_spill] sm:$0xff]  ;;  %v8235_v56 = vld [vmem:[#allocation66_spill] sm:$0xff] }
 0x218   :  { %v7152_v59 = vpop.permute.xlu1 %1284  ;;  %v922_v22 = vsel %vm831_vm4, %v8229_v34, %v8227_v42  ;;  %v888_v50 = vadd.f32 %v877_v63, %v843_v47  ;;  %v846_v32 = vadd.f32 %v835_v61, %v797_v27  ;;  %v847_v13 = vadd.f32 %v836_v9, %v798_v18  ;;  %v8236_v61 = vld [vmem:[#allocation68_spill] sm:$0xff]  ;;  %v8237_v18 = vld [vmem:[#allocation69_spill] sm:$0xff] }
 0x219   :  { %v848_v14 = vadd.f32 %v8225_v10, %v799_v24  ;;  %v934_v44 = vadd.f32 %v923_v7, %v889_v53  ;;  %v880_v4 = vsel %vm831_vm4, %v6767_v58, %v6815_v52  ;;  %v881_v12 = vsel %vm831_vm4, %v6815_v52, %v6817_v55  ;;  %v7214_v10 = vpop.permute.xlu0 %1286  ;;  %v8238_v24 = vld [vmem:[#allocation70_spill] sm:$0xff]  ;;  %v8239_v34 = vld [vmem:[#allocation72_spill] sm:$0xff] }
 0x21a   :  { %v972_v16 = vsel %vm970_vm5, %v8230_v46, %v6828_v19  ;;  %v935_v35 = vadd.f32 %v924_v36, %v890_v28  ;;  %v933_v43 = vadd.f32 %v922_v22, %v888_v50  ;;  %v973_v30 = vsel %vm970_vm5, %v6828_v19, %v8231_v48  ;;  %v8240_v22 = vld [vmem:[#allocation71_spill] sm:$0xff] }
 0x21b   :  { %v971_v17 = vsel %vm970_vm5, %v8232_v2, %v8230_v46  ;;  %v893_v58 = vadd.f32 %v6817_v55, %v848_v14  ;;  %v925_v52 = vsel %vm831_vm4, %v8228_v62, %v6841_v38  ;;  %v926_v0 = vsel %vm831_vm4, %v6841_v38, %v8233_v60  ;;  %v8242_v46 = vld [vmem:[#allocation74_spill] sm:$0xff] }
 0x21c   :  { %v7181_v29 = vpop.permute.xlu1 %1288  ;;  %v1017_v47 = vsel %vm970_vm5, %v8235_v56, %v8234_v8  ;;  %v891_v19 = vadd.f32 %v880_v4, %v846_v32  ;;  %v892_v63 = vadd.f32 %v881_v12, %v847_v13  ;;  %v983_v57 = vadd.f32 %v972_v16, %v934_v44  ;;  %v8241_v32 = vld [vmem:[#allocation73_spill] sm:$0xff] }
 0x21d   :  { %v1018_v55 = vsel %vm970_vm5, %v8234_v8, %v8236_v61  ;;  %v984_v9 = vadd.f32 %v973_v30, %v935_v35  ;;  %v982_v27 = vadd.f32 %v971_v17, %v933_v43  ;;  %v1016_v38 = vsel %vm970_vm5, %v8237_v18, %v8235_v56  ;;  %v8243_v43 = vld [vmem:[#allocation75_spill] sm:$0xff]  ;;  %v8244_v30 = vld [vmem:[#allocation76_spill] sm:$0xff]  ;;  %v8245_v17 = vld [vmem:[#allocation78_spill] sm:$0xff] }
 0x21e   :  { %v974_v11 = vsel %vm970_vm5, %v8231_v48, %v8238_v24  ;;  %v936_v42 = vadd.f32 %v925_v52, %v891_v19  ;;  %v937_v7 = vadd.f32 %v926_v0, %v892_v63  ;;  %v938_v53 = vadd.f32 %v8233_v60, %v893_v58  ;;  %v8246_v58 = vld [vmem:[#allocation77_spill] sm:$0xff]  ;;  %v8247_v60 = vld [vmem:[#allocation79_spill] sm:$0xff] }
 0x21f   :  { %v1028_v28 = vadd.f32 %v1017_v47, %v983_v57  ;;  %v1029_v62 = vadd.f32 %v1018_v55, %v984_v9  ;;  %v975_v36 = vsel %vm970_vm5, %v8238_v24, %v6856_v33  ;;  %v1062_v50 = vsel %vm970_vm5, %v8240_v22, %v8239_v34  ;;  %v8248_v47 = vld [vmem:[#allocation80_spill] sm:$0xff]  ;;  %v8250_v9 = vld [vmem:[#allocation82_spill] sm:$0xff] }
 0x220   :  { %v7209_v54 = vpop.permute.xlu1 %1282  ;;  %v1063_v13 = vsel %vm970_vm5, %v8239_v34, %v8241_v32  ;;  %v1027_v44 = vadd.f32 %v1016_v38, %v982_v27  ;;  %v985_v4 = vadd.f32 %v974_v11, %v936_v42  ;;  %v987_v12 = vadd.f32 %v6856_v33, %v938_v53 }
 0x221   :  { %v1061_v16 = vsel %vm970_vm5, %v8242_v46, %v8240_v22  ;;  %v1019_v48 = vsel %vm970_vm5, %v8236_v61, %v8243_v43  ;;  %v1020_v2 = vsel %vm970_vm5, %v8243_v43, %v8244_v30  ;;  %v1111_v52 = vsel %vm1109_vm6, %v8246_v58, %v8245_v17  ;;  %v8249_v61 = vld [vmem:[#allocation81_spill] sm:$0xff] }
 0x222   :  { %v1112_v33 = vsel %vm1109_vm6, %v8245_v17, %v8247_v60  ;;  %v986_v0 = vadd.f32 %v975_v36, %v937_v7  ;;  %v1073_v8 = vadd.f32 %v1062_v50, %v1028_v28  ;;  %v1074_v56 = vadd.f32 %v1063_v13, %v1029_v62 }
 0x223   :  { %v1110_v19 = vsel %vm1109_vm6, %v8248_v47, %v8246_v58  ;;  %v1072_v63 = vadd.f32 %v1061_v16, %v1027_v44  ;;  %v1032_v57 = vadd.f32 %v8244_v30, %v987_v12  ;;  %v1064_v55 = vsel %vm970_vm5, %v8241_v32, %v8249_v61 }
 0x224   :  { %v7232_v14 = vpop.permute.xlu1 %1244  ;;  %v1065_v27 = vsel %vm970_vm5, %v8249_v61, %v8250_v9  ;;  %v1030_v38 = vadd.f32 %v1019_v48, %v985_v4  ;;  %v1031_v24 = vadd.f32 %v1020_v2, %v986_v0  ;;  %v1122_v11 = vadd.f32 %v1111_v52, %v1073_v8 }
 0x225   :  { %v7238_v35 = vpop.permute.xlu0 %1359  ;;  %v1123_v42 = vadd.f32 %v1112_v33, %v1074_v56  ;;  %v1121_v53 = vadd.f32 %v1110_v19, %v1072_v63  ;;  %v1156_v28 = vsel %vm1109_vm6, %v6918_v23, %v6920_v1  ;;  %v1157_v62 = vsel %vm1109_vm6, %v6920_v1, %v6937_v20 }
 0x226   :  { %v1155_v36 = vsel %vm1109_vm6, %v6939_v25, %v6918_v23  ;;  %v1075_v34 = vadd.f32 %v1064_v55, %v1030_v38  ;;  %v1076_v22 = vadd.f32 %v1065_v27, %v1031_v24  ;;  %v1077_v50 = vadd.f32 %v8250_v9, %v1032_v57 }
 0x227   :  { %v1113_v32 = vsel %vm1109_vm6, %v8247_v60, %v6963_v40  ;;  %v1114_v13 = vsel %vm1109_vm6, %v6963_v40, %v6965_v39  ;;  %v1201_v1 = vsel %vm1109_vm6, %v6992_v15, %v6994_v49  ;;  %v1202_v23 = vsel %vm1109_vm6, %v6994_v49, %v7019_v5 }
 0x228   :  { %v1330_v18 = vpop.permute.xlu1 %1329  ;;  %v1200_v25 = vsel %vm1109_vm6, %v7021_v37, %v6992_v15  ;;  %v1167_v4 = vadd.f32 %v1156_v28, %v1122_v11  ;;  %v1168_v12 = vadd.f32 %v1157_v62, %v1123_v42  ;;  %v1166_v46 = vadd.f32 %v1155_v36, %v1121_v53 }
 0x229   :  { %v1247_v7 = vpop.permute.xlu0 %1246  ;;  %v1126_v16 = vadd.f32 %v6965_v39, %v1077_v50  ;;  %v1124_v40 = vadd.f32 %v1113_v32, %v1075_v34  ;;  %v1158_v48 = vsel %vm1109_vm6, %v6937_v20, %v7045_v26  ;;  %v1250_v49 = vsel %vm1248_vm7, %v7072_v3, %v7093_v45 }
 0x22a   :  { %v1251_v15 = vsel %vm1248_vm7, %v7093_v45, %v7101_v31  ;;  %v1125_v37 = vadd.f32 %v1114_v13, %v1076_v22  ;;  %v1212_v30 = vadd.f32 %v1201_v1, %v1167_v4  ;;  %v1213_v2 = vadd.f32 %v1202_v23, %v1168_v12 }
 0x22b   :  { %v1211_v17 = vadd.f32 %v1200_v25, %v1166_v46  ;;  %v1171_v39 = vadd.f32 %v7053_v21, %v1126_v16  ;;  %v1249_v58 = vsel %vm1248_vm7, %v7134_v6, %v7072_v3  ;;  %v1295_v20 = vsel %vm1248_vm7, %v7152_v59, %v7214_v10 }
 0x22c   :  { %v1334_v44 = vpop.permute.xlu1 %1333  ;;  %v1296_v52 = vsel %vm1248_vm7, %v7214_v10, %v7181_v29  ;;  %v1169_v45 = vadd.f32 %v1158_v48, %v1124_v40  ;;  %v1159_v33 = vsel %vm1109_vm6, %v7045_v26, %v7053_v21  ;;  %v1261_v0 = vadd.f32 %v1250_v49, %v1212_v30 }
 0x22d   :  { %v1332_v43 = vpop.permute.xlu0 %1331  ;;  %v1262_v8 = vadd.f32 %v1251_v15, %v1213_v2  ;;  %v1216_v47 = vadd.f32 %v7173_v51, %v1171_v39  ;;  %v1294_v3 = vsel %vm1248_vm7, %v7209_v54, %v7152_v59  ;;  %v1260_v10 = vadd.f32 %v1249_v58, %v1211_v17  ;;  %v8251_v39 = vld [vmem:[#allocation2_spill] sm:$0xff]  ;;  %v8252_v58 = vld [vmem:[#allocation61_spill] sm:$0xff] }
 0x22e   :  { %v1340_v6 = vsel %vm1248_vm7, %v1330_v18, %v1332_v43  ;;  %v1341_v19 = vsel %vm1248_vm7, %v1332_v43, %v1334_v44  ;;  %v1203_v63 = vsel %vm1109_vm6, %v7019_v5, %v7125_v41  ;;  %v1306_v57 = vadd.f32 %v1295_v20, %v1261_v0 }
 0x22f   :  { %v1307_v26 = vadd.f32 %v1296_v52, %v1262_v8  ;;  %v1170_v21 = vadd.f32 %v1159_v33, %v1125_v37  ;;  %v1204_v61 = vsel %vm1109_vm6, %v7125_v41, %v7173_v51  ;;  %v1265_v55 = vadd.f32 %v1247_v7, %v1216_v47 }
 0x230   :  { %v1291_v60 = vpop.permute.xlu1 %1290  ;;  %v1305_v54 = vadd.f32 %v1294_v3, %v1260_v10  ;;  %v1252_v27 = vsel %vm1248_vm7, %v7101_v31, %v7232_v14  ;;  %v1351_v38 = vadd.f32 %v1340_v6, %v1306_v57  ;;  %v1214_v5 = vadd.f32 %v1203_v63, %v1169_v45 }
 0x231   :  { %v1328_v56 = vpop.permute.xlu0 %1327  ;;  %v1352_v24 = vadd.f32 %v1341_v19, %v1307_v26  ;;  %v1253_v42 = vsel %vm1248_vm7, %v7232_v14, %v1247_v7  ;;  %v1215_v28 = vadd.f32 %v1204_v61, %v1170_v21  ;;  %v1297_v51 = vsel %vm1248_vm7, %v7181_v29, %v1291_v60  ;;  %v5650_v26 = vld [vmem:[%s8022_s3 + $0x4] sm:$0xf] }
 0x232   :  { %v1339_v9 = vsel %vm1248_vm7, %v1328_v56, %v1330_v18  ;;  %v1263_v41 = vadd.f32 %v1252_v27, %v1214_v5  ;;  %v1363_v31 = vadd.f32 %v7238_v35, %v1351_v38  ;;  %v5992_v13 = vmov 0.0  }
 0x233   :  { %v1350_v62 = vadd.f32 %v1339_v9, %v1305_v54  ;;  %v1264_v34 = vadd.f32 %v1253_v42, %v1215_v28  ;;  %v1364_v50 = vadd.f32 %v7238_v35, %v1352_v24  ;;  %1526 = vmatprep.mubr.f32.mxu1 %v5992_v13  ;;  %1832 = vmatprep.mubr.f32.mxu0 %v5992_v13  ;;  %vm2647_vm0 = vcmask 785408  }
 0x234   :  { %v1336_v59 = vpop.permute.xlu1 %1335  ;;  %v1308_v29 = vadd.f32 %v1297_v51, %v1263_v41  ;;  %v1369_v46 = vmax.f32 %v1363_v31, 0.0  ;;  %v1399_v20 = vrot.slane %v8252_v58, %v8251_v39  ;;  %vm2889_vm1 = vcmask 777216   ;;  %5635 = vst [vmem:[%s8025_s7] sm:$0xff] %v5992_v13 }
 0x235   :  { %v1293_v11 = vpop.permute.xlu0 %1292  ;;  %v1342_v32 = vsel %vm1248_vm7, %v1334_v44, %v1336_v59  ;;  %v1362_v23 = vadd.f32 %v7238_v35, %v1350_v62  ;;  %v1370_v16 = vmax.f32 %v1364_v50, 0.0  ;;  %vm3131_vm2 = vcmask 769024  }
 0x236   :  { %v1310_v53 = vadd.f32 %v1293_v11, %v1265_v55  ;;  %v1298_v18 = vsel %vm1248_vm7, %v1291_v60, %v1293_v11  ;;  %v1353_v4 = vadd.f32 %v1342_v32, %v1308_v29  ;;  %v5657_v32 = vld [vmem:[%s8022_s3 + $0x8] sm:$0xf]  ;;  %vm3373_vm3 = vcmask 646144  }
 0x237   :  { %v1309_v1 = vadd.f32 %v1298_v18, %v1264_v34  ;;  %v1368_v48 = vmax.f32 %v1362_v23, 0.0  ;;  %vm3618_vm4 = vcmask 637952   ;;  %vm3863_vm5 = vcmask 629760  }
 0x238   :  { %v1401_v36 = vpop.permute.xlu1 %1400  ;;  %v1365_v37 = vadd.f32 %v7238_v35, %v1353_v4  ;;  %vm4108_vm6 = vcmask 621568  }
 0x239   :  { %v1338_v22 = vpop.permute.xlu0 %1337  ;;  %v7354_v52 = vmul.f32 %v1401_v36, %v1368_v48 }
 0x23a   :  { %v1343_v14 = vsel %vm1248_vm7, %v1336_v59, %v1338_v22  ;;  %v7335_v7 = vadd.f32 %v1338_v22, %v1310_v53  ;;  %v1371_v33 = vmax.f32 %v1365_v37, 0.0  ;;  %v1430_v53 = vld [vmem:[%s8022_s3] sm:$0xf]  ;;  %vm4353_vm7 = vcmask 498688  }
 0x23b   :  { %v1354_v12 = vadd.f32 %v1343_v14, %v1309_v1 }
 0x23c   :  { %v1405_v25 = vpop.permute.xlu1 %1404  ;;  %v1367_v47 = vadd.f32 %v7238_v35, %v7335_v7 }
 0x23d   :  { %v1403_v44 = vpop.permute.xlu0 %1402  ;;  %v1366_v30 = vadd.f32 %v7238_v35, %v1354_v12  ;;  %v5661_v12 = vld [vmem:[%s8022_s3 + $0xc] sm:$0xf] }
 0x23e   :  { %v1413_v43 = vsel %vm1412_vm8, %v1401_v36, %v1403_v44  ;;  %v1414_v40 = vsel %vm1412_vm8, %v1403_v44, %v1405_v25  ;;  %v1373_v10 = vmax.f32 %v1367_v47, 0.0 }
 0x23f   :  { %v7342_v49 = vmul.f32 %v1413_v43, %v1369_v46  ;;  %v7344_v15 = vmul.f32 %v1414_v40, %v1370_v16  ;;  %v1372_v0 = vmax.f32 %v1366_v30, 0.0 }
 0x240   :  { %v7348_v2 = vpop.permute.xlu1 %1408 }
 0x241   :  { %1442 = vrot.lane.b32.xlu1 %v7344_v15, %s5993_s11  ;;  %1440 = vrot.lane.b32.xlu0 %v7342_v49, %s5993_s11  ;;  %v1407_v17 = vpop.permute.xlu0 %1406 }
 0x242   :  { %v1415_v60 = vsel %vm1412_vm8, %v1405_v25, %v1407_v17  ;;  %v1416_v45 = vsel %vm1412_vm8, %v1407_v17, %v7348_v2  ;;  %v5665_v17 = vld [vmem:[%s8022_s3 + $0x10] sm:$0xf] }
 0x243   :  { %v7361_v8 = vmul.f32 %v1415_v60, %v1371_v33  ;;  %v7363_v56 = vmul.f32 %v1416_v45, %v1372_v0 }
 0x245   :  { %1410 = vrot.lane.b32.xlu1 %v1399_v20, %s5991_s5  ;;  %1438 = vrot.lane.b32.xlu0 %v7354_v52, %s5993_s11 }
 0x249   :  { %1446 = vrot.lane.b32.xlu1 %v7363_v56, %s5993_s11  ;;  %1444 = vrot.lane.b32.xlu0 %v7361_v8, %s5993_s11 }
 0x24d   :  { %1678 = vrot.lane.b32.xlu1 %v7344_v15, %s5994_s12  ;;  %1676 = vrot.lane.b32.xlu0 %v7342_v49, %s5994_s12 }
 0x251   :  { %1680 = vrot.lane.b32.xlu1 %v7361_v8, %s5994_s12  ;;  %1674 = vrot.lane.b32.xlu0 %v7354_v52, %s5994_s12 }
 0x255   :  { %1917 = vrot.lane.b32.xlu1 %v7361_v8, %s5995_s13  ;;  %1682 = vrot.lane.b32.xlu0 %v7363_v56, %s5994_s12 }
 0x259   :  { %1915 = vrot.lane.b32.xlu1 %v7344_v15, %s5995_s13  ;;  %1919 = vrot.lane.b32.xlu0 %v7363_v56, %s5995_s13 }
 0x25d   :  { %1911 = vrot.lane.b32.xlu1 %v7354_v52, %s5995_s13  ;;  %1913 = vrot.lane.b32.xlu0 %v7342_v49, %s5995_s13 }
 0x261   :  { %2157 = vrot.lane.b32.xlu1 %v7344_v15, %s5996_s14  ;;  %2155 = vrot.lane.b32.xlu0 %v7342_v49, %s5996_s14 }
 0x265   :  { %2159 = vrot.lane.b32.xlu1 %v7361_v8, %s5996_s14  ;;  %2153 = vrot.lane.b32.xlu0 %v7354_v52, %s5996_s14 }
 0x269   :  { %2401 = vrot.lane.b32.xlu1 %v7361_v8, %s5997_s15  ;;  %2161 = vrot.lane.b32.xlu0 %v7363_v56, %s5996_s14 }
 0x26d   :  { %2399 = vrot.lane.b32.xlu1 %v7344_v15, %s5997_s15  ;;  %2403 = vrot.lane.b32.xlu0 %v7363_v56, %s5997_s15 }
 0x271   :  { %2395 = vrot.lane.b32.xlu1 %v7354_v52, %s5997_s15  ;;  %2397 = vrot.lane.b32.xlu0 %v7342_v49, %s5997_s15 }
 0x275   :  { %2641 = vrot.lane.b32.xlu1 %v7344_v15, %s5998_s16  ;;  %2639 = vrot.lane.b32.xlu0 %v7342_v49, %s5998_s16 }
 0x279   :  { %2643 = vrot.lane.b32.xlu1 %v7361_v8, %s5998_s16  ;;  %2637 = vrot.lane.b32.xlu0 %v7354_v52, %s5998_s16 }
 0x27d   :  { %2885 = vrot.lane.b32.xlu1 %v7361_v8, %s5999_s17  ;;  %2645 = vrot.lane.b32.xlu0 %v7363_v56, %s5998_s16 }
 0x281   :  { %2883 = vrot.lane.b32.xlu1 %v7344_v15, %s5999_s17  ;;  %2887 = vrot.lane.b32.xlu0 %v7363_v56, %s5999_s17 }
 0x285   :  { %2879 = vrot.lane.b32.xlu1 %v7354_v52, %s5999_s17  ;;  %2881 = vrot.lane.b32.xlu0 %v7342_v49, %s5999_s17 }
 0x289   :  { %3125 = vrot.lane.b32.xlu1 %v7344_v15, %s6000_s18  ;;  %3123 = vrot.lane.b32.xlu0 %v7342_v49, %s6000_s18 }
 0x28d   :  { %3127 = vrot.lane.b32.xlu1 %v7361_v8, %s6000_s18  ;;  %3121 = vrot.lane.b32.xlu0 %v7354_v52, %s6000_s18 }
 0x291   :  { %3369 = vrot.lane.b32.xlu1 %v7361_v8, %s6001_s1  ;;  %3129 = vrot.lane.b32.xlu0 %v7363_v56, %s6000_s18 }
 0x295   :  { %3367 = vrot.lane.b32.xlu1 %v7344_v15, %s6001_s1  ;;  %3371 = vrot.lane.b32.xlu0 %v7363_v56, %s6001_s1 }
 0x299   :  { %3363 = vrot.lane.b32.xlu1 %v7354_v52, %s6001_s1  ;;  %3365 = vrot.lane.b32.xlu0 %v7342_v49, %s6001_s1 }
 0x29d   :  { %3610 = vrot.lane.b32.xlu1 %v7344_v15, %s6002_s19  ;;  %3608 = vrot.lane.b32.xlu0 %v7342_v49, %s6002_s19 }
 0x2a1   :  { %3614 = vrot.lane.b32.xlu1 %v7363_v56, %s6002_s19  ;;  %3606 = vrot.lane.b32.xlu0 %v7354_v52, %s6002_s19 }
 0x2a5   :  { %3612 = vrot.lane.b32.xlu1 %v7361_v8, %s6002_s19 }
 0x2a9   :  { %3859 = vrot.lane.b32.xlu1 %v7363_v56, %s6003_s20 }
 0x2ad   :  { %3853 = vrot.lane.b32.xlu1 %v7342_v49, %s6003_s20 }
 0x2b1   :  { %4098 = vrot.lane.b32.xlu1 %v7342_v49, %s6004_s21 }
 0x2b3   :  { %v1443_v3 = vpop.permute.xlu1 %1442  ;;  %v1441_v6 = vpop.permute.xlu0 %1440 }
 0x2b4   :  { %v1450_v19 = vsel %vm1448_vm9, %v1441_v6, %v1443_v3 }
 0x2b5   :  { %1492 = vmatprep.subr.mxu1 %v1450_v19  ;;  %4096 = vrot.lane.b32.xlu1 %v7354_v52, %s6004_s21 }
 0x2b7   :  { %v1411_v63 = vpop.permute.xlu1 %1410  ;;  %v1439_v57 = vpop.permute.xlu0 %1438 }
 0x2b8   :  { %v1417_v21 = vsel %vm1412_vm8, %v7348_v2, %v1411_v63  ;;  %v1449_v35 = vsel %vm1448_vm9, %v1439_v57, %v1441_v6  ;;  %vm4598_vm8 = vcmask 490496  }
 0x2b9   :  { %v7434_v61 = vmul.f32 %v1417_v21, %v1373_v10  ;;  %4104 = vrot.lane.b32.xlu1 %v7363_v56, %s6004_s21  ;;  %1493 = vmatpush1.msra.mxu1 %v1449_v35 }
 0x2ba   :  { %5651 = vmatmul.mubr.msk.f32.vlgmr.msra.gmra.mxu1 %vm1458_vm10, %v5650_v26 }
 0x2bb   :  { %v1447_v55 = vpop.permute.xlu1 %1446  ;;  %3616 = vrot.lane.b32.xlu0 %v7434_v61, %s6002_s19  ;;  %v1445_v9 = vpop.permute.xlu0 %1444  ;;  %1597 = vmatprep.mubr.f32.mxu1 %v5992_v13 }
 0x2bc   :  { %v1451_v59 = vsel %vm1448_vm9, %v1443_v3, %v1445_v9  ;;  %v1452_v54 = vsel %vm1448_vm9, %v1445_v9, %v1447_v55  ;;  %v5669_v3 = vld [vmem:[%s8022_s3 + $0x14] sm:$0xf]  ;;  %vm4843_vm9 = vcmask 482304  }
 0x2bd   :  { %4102 = vrot.lane.b32.xlu1 %v7361_v8, %s6004_s21  ;;  %1563 = vmatprep.subr.mxu1 %v1452_v54 }
 0x2be   :  { %1564 = vmatpush1.msra.mxu1 %v1451_v59 }
 0x2bf   :  { %v1679_v27 = vpop.permute.xlu1 %1678  ;;  %3857 = vrot.lane.b32.xlu0 %v7361_v8, %s6003_s20  ;;  %5828 = vmatprep.subr.mxu1 %v5992_v13  ;;  %v1677_v38 = vpop.permute.xlu0 %1676 }
 0x2c0   :  { %5652 = vmatmul.mubr.msk.f32.vlgmr.msra.gmra.mxu1 %vm1458_vm10, %v5650_v26  ;;  %v1686_v24 = vsel %vm1684_vm11, %v1677_v38, %v1679_v27 }
 0x2c1   :  { %5829 = vmatpush3.msra.mxu1 %v1447_v55  ;;  %4349 = vrot.lane.b32.xlu1 %v7363_v56, %s6005_s24  ;;  %v5673_v55 = vld [vmem:[%s8022_s3 + $0x18] sm:$0xf] }
 0x2c2   :  { %1727 = vmatprep.subr.mxu1 %v1686_v24  ;;  %5830 = vmatprep.mubr.msk.f32.mxu1 %vm6006_vm12, %v5992_v13 }
 0x2c3   :  { %v1681_v11 = vpop.permute.xlu1 %1680  ;;  %3855 = vrot.lane.b32.xlu0 %v7344_v15, %s6003_s20  ;;  %v1675_v5 = vpop.permute.xlu0 %1674 }
 0x2c4   :  { %v1685_v42 = vsel %vm1684_vm11, %v1675_v5, %v1677_v38  ;;  %5831 = vmatmul.mubr.msk.f32.vlgmr.msra.gmra.mxu1 %vm1458_vm10, %v5650_v26  ;;  %v1687_v51 = vsel %vm1684_vm11, %v1679_v27, %v1681_v11 }
 0x2c5   :  { %4343 = vrot.lane.b32.xlu1 %v7342_v49, %s6005_s24  ;;  %1728 = vmatpush1.msra.mxu1 %v1685_v42 }
 0x2c6   :  { %1761 = vmatprep.mubr.f32.mxu1 %v5992_v13  ;;  %5833 = vmatprep.subr.mxu1 %v5992_v13 }
 0x2c7   :  { %v1918_v28 = vpop.permute.xlu1 %1917  ;;  %3851 = vrot.lane.b32.xlu0 %v7354_v52, %s6003_s20  ;;  %v1683_v62 = vpop.permute.xlu0 %1682 }
 0x2c8   :  { %5654 = vmatmul.mubr.msk.f32.vlgmr.msra.gmra.mxu1 %vm1458_vm10, %v1430_v53  ;;  %v1688_v41 = vsel %vm1684_vm11, %v1681_v11, %v1683_v62  ;;  %vm5088_vm11 = vcmask 474112  }
 0x2c9   :  { %5834 = vmatpush3.msra.mxu1 %v1683_v62  ;;  %4588 = vrot.lane.b32.xlu1 %v7342_v49, %s6007_s26  ;;  %v5319_v62 = vld [vmem:[%s8023_s4] sm:$0xf] }
 0x2ca   :  { %1798 = vmatprep.subr.mxu0 %v1688_v41  ;;  %5835 = vmatprep.mubr.msk.f32.mxu1 %vm6006_vm12, %v5992_v13 }
 0x2cb   :  { %1799 = vmatpush1.msra.mxu0 %v1687_v51  ;;  %v1916_v18 = vpop.permute.xlu1 %1915  ;;  %4100 = vrot.lane.b32.xlu0 %v7344_v15, %s6004_s21  ;;  %v1920_v36 = vpop.permute.xlu0 %1919 }
 0x2cc   :  { %v1924_v34 = vsel %vm1921_vm13, %v1916_v18, %v1918_v28  ;;  %v1925_v22 = vsel %vm1921_vm13, %v1918_v28, %v1920_v36  ;;  %5836 = vmatmul.mubr.msk.f32.vlgmr.msra.gmra.mxu1 %vm1458_vm10, %v1430_v53  ;;  %5655 = vmatmul.mubr.msk.f32.vlgmr.msra.gmra.mxu0 %vm1458_vm10, %v1430_v53 }
 0x2cd   :  { %4586 = vrot.lane.b32.xlu1 %v7354_v52, %s6007_s26  ;;  %2035 = vmatprep.subr.mxu1 %v1925_v22 }
 0x2ce   :  { %2036 = vmatpush1.msra.mxu1 %v1924_v34  ;;  %1998 = vmatprep.mubr.f32.mxu0 %v5992_v13  ;;  %v5681_v34 = vld [vmem:[%s8022_s3 + $0x20] sm:$0xf] }
 0x2cf   :  { %v1912_v31 = vpop.permute.xlu1 %1911  ;;  %3861 = vrot.lane.b32.xlu0 %v7434_v61, %s6003_s20  ;;  %v1914_v50 = vpop.permute.xlu0 %1913  ;;  %2069 = vmatprep.mubr.f32.mxu1 %v5992_v13 }
 0x2d0   :  { %v1922_v14 = vsel %vm1921_vm13, %v1912_v31, %v1914_v50  ;;  %v1923_v7 = vsel %vm1921_vm13, %v1914_v50, %v1916_v18  ;;  %5659 = vmatmul.mubr.msk.f32.vlgmr.msra.gmra.mxu1 %vm1458_vm10, %v5657_v32  ;;  %vm5636_vm13 = vcmask 8192  }
 0x2d1   :  { %4594 = vrot.lane.b32.xlu1 %v7363_v56, %s6007_s26  ;;  %1964 = vmatprep.subr.mxu0 %v1923_v7 }
 0x2d2   :  { %1965 = vmatpush1.msra.mxu0 %v1922_v14  ;;  %2240 = vmatprep.mubr.f32.mxu1 %v5992_v13 }
 0x2d3   :  { %v2158_v29 = vpop.permute.xlu1 %2157  ;;  %4106 = vrot.lane.b32.xlu0 %v7434_v61, %s6004_s21  ;;  %5838 = vmatprep.subr.mxu0 %v5992_v13  ;;  %v2156_v1 = vpop.permute.xlu0 %2155 }
 0x2d4   :  { %5658 = vmatmul.mubr.msk.f32.vlgmr.msra.gmra.mxu0 %vm1458_vm10, %v5657_v32  ;;  %v2165_v23 = vsel %vm2163_vm14, %v2156_v1, %v2158_v29 }
 0x2d5   :  { %5839 = vmatpush3.msra.mxu0 %v1920_v36  ;;  %4592 = vrot.lane.b32.xlu1 %v7361_v8, %s6007_s26 }
 0x2d6   :  { %2206 = vmatprep.subr.mxu1 %v2165_v23  ;;  %5840 = vmatprep.mubr.msk.f32.mxu0 %vm6006_vm12, %v5992_v13 }
 0x2d7   :  { %v2160_v25 = vpop.permute.xlu1 %2159  ;;  %4347 = vrot.lane.b32.xlu0 %v7361_v8, %s6005_s24  ;;  %v2154_v4 = vpop.permute.xlu0 %2153 }
 0x2d8   :  { %v2164_v46 = vsel %vm2163_vm14, %v2154_v4, %v2156_v1  ;;  %5841 = vmatmul.mubr.msk.f32.vlgmr.msra.gmra.mxu0 %vm1458_vm10, %v5657_v32  ;;  %v2166_v40 = vsel %vm2163_vm14, %v2158_v29, %v2160_v25 }
 0x2d9   :  { %4839 = vrot.lane.b32.xlu1 %v7363_v56, %s6008_s8  ;;  %2207 = vmatpush1.msra.mxu1 %v2164_v46 }
 0x2da   :  { %5843 = vmatprep.subr.mxu1 %v5992_v13  ;;  %5662 = vmatmul.mubr.msk.f32.vlgmr.msra.gmra.mxu1 %vm1458_vm10, %v5661_v12 }
 0x2db   :  { %v2402_v16 = vpop.permute.xlu1 %2401  ;;  %4345 = vrot.lane.b32.xlu0 %v7344_v15, %s6005_s24  ;;  %v2162_v44 = vpop.permute.xlu0 %2161  ;;  %5845 = vmatprep.mubr.msk.f32.mxu1 %vm6006_vm12, %v5992_v13 }
 0x2dc   :  { %5844 = vmatpush3.msra.mxu1 %v2162_v44  ;;  %v2167_v43 = vsel %vm2163_vm14, %v2160_v25, %v2162_v44  ;;  %2311 = vmatprep.mubr.f32.mxu0 %v5992_v13  ;;  %v5685_v25 = vld [vmem:[%s8022_s3 + $0x24] sm:$0xf] }
 0x2dd   :  { %4833 = vrot.lane.b32.xlu1 %v7342_v49, %s6008_s8  ;;  %2277 = vmatprep.subr.mxu0 %v2167_v43 }
 0x2de   :  { %2278 = vmatpush1.msra.mxu0 %v2166_v40  ;;  %5846 = vmatmul.mubr.msk.f32.vlgmr.msra.gmra.mxu1 %vm1458_vm10, %v5661_v12 }
 0x2df   :  { %v2400_v48 = vpop.permute.xlu1 %2399  ;;  %4341 = vrot.lane.b32.xlu0 %v7354_v52, %s6005_s24  ;;  %v2404_v37 = vpop.permute.xlu0 %2403  ;;  %5663 = vmatmul.mubr.msk.f32.vlgmr.msra.gmra.mxu0 %vm1458_vm10, %v5661_v12 }
 0x2e0   :  { %v2408_v30 = vsel %vm2405_vm15, %v2400_v48, %v2402_v16  ;;  %v2409_v2 = vsel %vm2405_vm15, %v2402_v16, %v2404_v37  ;;  %2482 = vmatprep.mubr.f32.mxu0 %v5992_v13  ;;  %2553 = vmatprep.mubr.f32.mxu1 %v5992_v13 }
 0x2e1   :  { %5078 = vrot.lane.b32.xlu1 %v7342_v49, %s6009_s9  ;;  %2519 = vmatprep.subr.mxu1 %v2409_v2 }
 0x2e2   :  { %2520 = vmatpush1.msra.mxu1 %v2408_v30 }
 0x2e3   :  { %v2396_v39 = vpop.permute.xlu1 %2395  ;;  %4590 = vrot.lane.b32.xlu0 %v7344_v15, %s6007_s26  ;;  %v2398_v58 = vpop.permute.xlu0 %2397  ;;  %5667 = vmatmul.mubr.msk.f32.vlgmr.msra.gmra.mxu1 %vm1458_vm10, %v5665_v17 }
 0x2e4   :  { %v2406_v20 = vsel %vm2405_vm15, %v2396_v39, %v2398_v58  ;;  %v2407_v60 = vsel %vm2405_vm15, %v2398_v58, %v2400_v48  ;;  %2724 = vmatprep.mubr.f32.mxu1 %v5992_v13 }
 0x2e5   :  { %5076 = vrot.lane.b32.xlu1 %v7354_v52, %s6009_s9  ;;  %2448 = vmatprep.subr.mxu0 %v2407_v60 }
 0x2e6   :  { %2449 = vmatpush1.msra.mxu0 %v2406_v20 }
 0x2e7   :  { %v2642_v49 = vpop.permute.xlu1 %2641  ;;  %4351 = vrot.lane.b32.xlu0 %v7434_v61, %s6005_s24  ;;  %5848 = vmatprep.subr.mxu0 %v5992_v13  ;;  %v2640_v45 = vpop.permute.xlu0 %2639 }
 0x2e8   :  { %5666 = vmatmul.mubr.msk.f32.vlgmr.msra.gmra.mxu0 %vm1458_vm10, %v5665_v17  ;;  %v2649_v33 = vsel %vm2647_vm0, %v2640_v45, %v2642_v49 }
 0x2e9   :  { %5849 = vmatpush3.msra.mxu0 %v2404_v37  ;;  %5082 = vrot.lane.b32.xlu1 %v7361_v8, %s6009_s9 }
 0x2ea   :  { %2690 = vmatprep.subr.mxu1 %v2649_v33  ;;  %5850 = vmatprep.mubr.msk.f32.mxu0 %vm6006_vm12, %v5992_v13 }
 0x2eb   :  { %v2644_v0 = vpop.permute.xlu1 %2643  ;;  %4596 = vrot.lane.b32.xlu0 %v7434_v61, %s6007_s26  ;;  %v2638_v47 = vpop.permute.xlu0 %2637 }
 0x2ec   :  { %v2648_v6 = vsel %vm2647_vm0, %v2638_v47, %v2640_v45  ;;  %5851 = vmatmul.mubr.msk.f32.vlgmr.msra.gmra.mxu0 %vm1458_vm10, %v5665_v17  ;;  %v2650_v57 = vsel %vm2647_vm0, %v2642_v49, %v2644_v0  ;;  %v5689_v49 = vld [vmem:[%s8022_s3 + $0x28] sm:$0xf] }
 0x2ed   :  { %5086 = vrot.lane.b32.xlu1 %v7434_v61, %s6009_s9  ;;  %2691 = vmatpush1.msra.mxu1 %v2648_v6 }
 0x2ee   :  { %5853 = vmatprep.subr.mxu1 %v5992_v13  ;;  %5670 = vmatmul.mubr.msk.f32.vlgmr.msra.gmra.mxu1 %vm1458_vm10, %v5669_v3 }
 0x2ef   :  { %v2886_v19 = vpop.permute.xlu1 %2885  ;;  %4837 = vrot.lane.b32.xlu0 %v7361_v8, %s6008_s8  ;;  %v2646_v10 = vpop.permute.xlu0 %2645  ;;  %5855 = vmatprep.mubr.msk.f32.mxu1 %vm6006_vm12, %v5992_v13 }
 0x2f0   :  { %5854 = vmatpush3.msra.mxu1 %v2646_v10  ;;  %v2651_v63 = vsel %vm2647_vm0, %v2644_v0, %v2646_v10  ;;  %2795 = vmatprep.mubr.f32.mxu0 %v5992_v13  ;;  %v5693_v10 = vld [vmem:[%s8022_s3 + $0x2c] sm:$0xf] }
 0x2f1   :  { %2761 = vmatprep.subr.mxu0 %v2651_v63 }
 0x2f2   :  { %2762 = vmatpush1.msra.mxu0 %v2650_v57  ;;  %5856 = vmatmul.mubr.msk.f32.vlgmr.msra.gmra.mxu1 %vm1458_vm10, %v5669_v3 }
 0x2f3   :  { %v2884_v26 = vpop.permute.xlu1 %2883  ;;  %4835 = vrot.lane.b32.xlu0 %v7344_v15, %s6008_s8  ;;  %v2888_v8 = vpop.permute.xlu0 %2887  ;;  %5671 = vmatmul.mubr.msk.f32.vlgmr.msra.gmra.mxu0 %vm1458_vm10, %v5669_v3 }
 0x2f4   :  { %v2892_v21 = vsel %vm2889_vm1, %v2884_v26, %v2886_v19  ;;  %v2893_v35 = vsel %vm2889_vm1, %v2886_v19, %v2888_v8  ;;  %2966 = vmatprep.mubr.f32.mxu0 %v5992_v13  ;;  %3037 = vmatprep.mubr.f32.mxu1 %v5992_v13 }
 0x2f5   :  { %3003 = vmatprep.subr.mxu1 %v2893_v35 }
 0x2f6   :  { %3004 = vmatpush1.msra.mxu1 %v2892_v21 }
 0x2f7   :  { %v2880_v9 = vpop.permute.xlu1 %2879  ;;  %4831 = vrot.lane.b32.xlu0 %v7354_v52, %s6008_s8  ;;  %v2882_v59 = vpop.permute.xlu0 %2881  ;;  %5675 = vmatmul.mubr.msk.f32.vlgmr.msra.gmra.mxu1 %vm1458_vm10, %v5673_v55 }
 0x2f8   :  { %v2890_v54 = vsel %vm2889_vm1, %v2880_v9, %v2882_v59  ;;  %v2891_v27 = vsel %vm2889_vm1, %v2882_v59, %v2884_v26  ;;  %3208 = vmatprep.mubr.f32.mxu1 %v5992_v13 }
 0x2f9   :  { %2932 = vmatprep.subr.mxu0 %v2891_v27 }
 0x2fa   :  { %2933 = vmatpush1.msra.mxu0 %v2890_v54 }
 0x2fb   :  { %v3126_v38 = vpop.permute.xlu1 %3125  ;;  %5080 = vrot.lane.b32.xlu0 %v7344_v15, %s6009_s9  ;;  %5858 = vmatprep.subr.mxu0 %v5992_v13  ;;  %v3124_v24 = vpop.permute.xlu0 %3123  ;;  %v5677_v15 = vld [vmem:[%s8022_s3 + $0x1c] sm:$0xf] }
 0x2fc   :  { %5674 = vmatmul.mubr.msk.f32.vlgmr.msra.gmra.mxu0 %vm1458_vm10, %v5673_v55  ;;  %v3133_v52 = vsel %vm3131_vm2, %v3124_v24, %v3126_v38 }
 0x2fd   :  { %5859 = vmatpush3.msra.mxu0 %v2888_v8  ;;  %3174 = vmatprep.subr.mxu1 %v3133_v52  ;;  %v5697_v52 = vld [vmem:[%s8022_s3 + $0x30] sm:$0xf] }
 0x2fe   :  { %5860 = vmatprep.mubr.msk.f32.mxu0 %vm6006_vm12, %v5992_v13 }
 0x2ff   :  { %v3128_v11 = vpop.permute.xlu1 %3127  ;;  %4841 = vrot.lane.b32.xlu0 %v7434_v61, %s6008_s8  ;;  %v3122_v5 = vpop.permute.xlu0 %3121 }
 0x300   :  { %v3132_v42 = vsel %vm3131_vm2, %v3122_v5, %v3124_v24  ;;  %5861 = vmatmul.mubr.msk.f32.vlgmr.msra.gmra.mxu0 %vm1458_vm10, %v5673_v55  ;;  %v3134_v41 = vsel %vm3131_vm2, %v3126_v38, %v3128_v11 }
 0x301   :  { %3175 = vmatpush1.msra.mxu1 %v3132_v42  ;;  %3279 = vmatprep.mubr.f32.mxu0 %v5992_v13 }
 0x302   :  { %5863 = vmatprep.subr.mxu1 %v5992_v13  ;;  %5678 = vmatmul.mubr.msk.f32.vlgmr.msra.gmra.mxu1 %vm1458_vm10, %v5677_v15 }
 0x303   :  { %v3370_v53 = vpop.permute.xlu1 %3369  ;;  %5084 = vrot.lane.b32.xlu0 %v7363_v56, %s6009_s9  ;;  %v3130_v61 = vpop.permute.xlu0 %3129  ;;  %5865 = vmatprep.mubr.msk.f32.mxu1 %vm6006_vm12, %v5992_v13 }
 0x304   :  { %5864 = vmatpush3.msra.mxu1 %v3130_v61  ;;  %v3135_v28 = vsel %vm3131_vm2, %v3128_v11, %v3130_v61 }
 0x305   :  { %3245 = vmatprep.subr.mxu0 %v3135_v28 }
 0x306   :  { %3246 = vmatpush1.msra.mxu0 %v3134_v41  ;;  %5866 = vmatmul.mubr.msk.f32.vlgmr.msra.gmra.mxu1 %vm1458_vm10, %v5677_v15 }
 0x307   :  { %v3368_v51 = vpop.permute.xlu1 %3367  ;;  %5322 = vperm.xlu0 %5978, %v5319_v62   ;;  %v3372_v56 = vpop.permute.xlu0 %3371  ;;  %5679 = vmatmul.mubr.msk.f32.vlgmr.msra.gmra.mxu0 %vm1458_vm10, %v5677_v15  ;;  %v5701_v62 = vld [vmem:[%s8022_s3 + $0x34] sm:$0xf] }
 0x308   :  { %v3376_v18 = vsel %vm3373_vm3, %v3368_v51, %v3370_v53  ;;  %v3377_v36 = vsel %vm3373_vm3, %v3370_v53, %v3372_v56  ;;  %3450 = vmatprep.mubr.f32.mxu0 %v5992_v13  ;;  %3521 = vmatprep.mubr.f32.mxu1 %v5992_v13 }
 0x309   :  { %3487 = vmatprep.subr.mxu1 %v3377_v36 }
 0x30a   :  { %3488 = vmatpush1.msra.mxu1 %v3376_v18 }
 0x30b   :  { %v3364_v22 = vpop.permute.xlu1 %3363  ;;  %v3366_v31 = vpop.permute.xlu0 %3365  ;;  %5683 = vmatmul.mubr.msk.f32.vlgmr.msra.gmra.mxu1 %vm1458_vm10, %v5681_v34 }
 0x30c   :  { %v3374_v50 = vsel %vm3373_vm3, %v3364_v22, %v3366_v31  ;;  %v3375_v32 = vsel %vm3373_vm3, %v3366_v31, %v3368_v51  ;;  %3696 = vmatprep.mubr.f32.mxu1 %v5992_v13 }
 0x30d   :  { %3416 = vmatprep.subr.mxu0 %v3375_v32 }
 0x30e   :  { %3417 = vmatpush1.msra.mxu0 %v3374_v50 }
 0x30f   :  { %v3611_v14 = vpop.permute.xlu1 %3610  ;;  %5868 = vmatprep.subr.mxu0 %v5992_v13  ;;  %v3609_v7 = vpop.permute.xlu0 %3608  ;;  %5682 = vmatmul.mubr.msk.f32.vlgmr.msra.gmra.mxu0 %vm1458_vm10, %v5681_v34 }
 0x310   :  { %5869 = vmatpush3.msra.mxu0 %v3372_v56  ;;  %v3620_v29 = vsel %vm3618_vm4, %v3609_v7, %v3611_v14  ;;  %5870 = vmatprep.mubr.msk.f32.mxu0 %vm6006_vm12, %v5992_v13 }
 0x311   :  { %3662 = vmatprep.subr.mxu1 %v3620_v29 }
 0x313   :  { %v3615_v1 = vpop.permute.xlu1 %3614  ;;  %v3607_v23 = vpop.permute.xlu0 %3606  ;;  %5871 = vmatmul.mubr.msk.f32.vlgmr.msra.gmra.mxu0 %vm1458_vm10, %v5681_v34 }
 0x314   :  { %v3619_v4 = vsel %vm3618_vm4, %v3607_v23, %v3609_v7  ;;  %3767 = vmatprep.mubr.f32.mxu0 %v5992_v13 }
 0x315   :  { %3663 = vmatpush1.msra.mxu1 %v3619_v4 }
 0x316   :  { %5686 = vmatmul.mubr.msk.f32.vlgmr.msra.gmra.mxu1 %vm1458_vm10, %v5685_v25  ;;  %5873 = vmatprep.subr.mxu1 %v5992_v13 }
 0x317   :  { %v3613_v12 = vpop.permute.xlu1 %3612  ;;  %5875 = vmatprep.mubr.msk.f32.mxu1 %vm6006_vm12, %v5992_v13 }
 0x318   :  { %v3621_v46 = vsel %vm3618_vm4, %v3611_v14, %v3613_v12  ;;  %v3622_v16 = vsel %vm3618_vm4, %v3613_v12, %v3615_v1 }
 0x319   :  { %3733 = vmatprep.subr.mxu0 %v3622_v16 }
 0x31a   :  { %3734 = vmatpush1.msra.mxu0 %v3621_v46 }
 0x31b   :  { %v3860_v44 = vpop.permute.xlu1 %3859  ;;  %5687 = vmatmul.mubr.msk.f32.vlgmr.msra.gmra.mxu0 %vm1458_vm10, %v5685_v25 }
 0x31c   :  { %3941 = vmatprep.mubr.f32.mxu0 %v5992_v13 }
 0x31f   :  { %v3854_v43 = vpop.permute.xlu1 %3853 }
 0x323   :  { %v4099_v40 = vpop.permute.xlu1 %4098 }
 0x327   :  { %v4097_v48 = vpop.permute.xlu1 %4096 }
 0x328   :  { %v4109_v63 = vsel %vm4108_vm6, %v4097_v48, %v4099_v40 }
 0x32b   :  { %v4105_v37 = vpop.permute.xlu1 %4104 }
 0x32d   :  { %v3617_v30 = vpop.permute.xlu0 %3616 }
 0x32e   :  { %v3623_v2 = vsel %vm3618_vm4, %v3615_v1, %v3617_v30  ;;  %v5705_v1 = vld [vmem:[%s8022_s3 + $0x38] sm:$0xf] }
 0x32f   :  { %v4103_v17 = vpop.permute.xlu1 %4102  ;;  %5874 = vmatpush3.msra.mxu1 %v3623_v2 }
 0x330   :  { %5876 = vmatmul.mubr.msk.f32.vlgmr.msra.gmra.mxu1 %vm1458_vm10, %v5685_v25  ;;  %v4112_v21 = vsel %vm4108_vm6, %v4103_v17, %v4105_v37 }
 0x331   :  { %v3858_v39 = vpop.permute.xlu0 %3857  ;;  %4012 = vmatprep.mubr.f32.mxu1 %v5992_v13 }
 0x332   :  { %v3867_v58 = vsel %vm3863_vm5, %v3858_v39, %v3860_v44 }
 0x333   :  { %v7652_v20 = vpop.permute.xlu1 %4349  ;;  %3978 = vmatprep.subr.mxu1 %v3867_v58 }
 0x335   :  { %v3856_v60 = vpop.permute.xlu0 %3855 }
 0x336   :  { %v3866_v45 = vsel %vm3863_vm5, %v3856_v60, %v3858_v39  ;;  %v3865_v33 = vsel %vm3863_vm5, %v3854_v43, %v3856_v60 }
 0x337   :  { %3907 = vmatprep.subr.mxu0 %v3865_v33  ;;  %3979 = vmatpush1.msra.mxu1 %v3866_v45  ;;  %v4344_v0 = vpop.permute.xlu1 %4343 }
 0x338   :  { %5691 = vmatmul.mubr.msk.f32.vlgmr.msra.gmra.mxu1 %vm1458_vm10, %v5689_v49 }
 0x339   :  { %v3852_v47 = vpop.permute.xlu0 %3851  ;;  %4186 = vmatprep.mubr.f32.mxu1 %v5992_v13 }
 0x33a   :  { %v3864_v3 = vsel %vm3863_vm5, %v3852_v47, %v3854_v43  ;;  %v5709_v43 = vld [vmem:[%s8022_s3 + $0x3c] sm:$0xf] }
 0x33b   :  { %3908 = vmatpush1.msra.mxu0 %v3864_v3  ;;  %v4589_v57 = vpop.permute.xlu1 %4588 }
 0x33c   :  { %5690 = vmatmul.mubr.msk.f32.vlgmr.msra.gmra.mxu0 %vm1458_vm10, %v5689_v49  ;;  %5878 = vmatprep.subr.mxu0 %v5992_v13 }
 0x33d   :  { %v4101_v6 = vpop.permute.xlu0 %4100  ;;  %5880 = vmatprep.mubr.msk.f32.mxu0 %vm6006_vm12, %v5992_v13 }
 0x33e   :  { %v4110_v19 = vsel %vm4108_vm6, %v4099_v40, %v4101_v6  ;;  %v4111_v35 = vsel %vm4108_vm6, %v4101_v6, %v4103_v17 }
 0x33f   :  { %4152 = vmatprep.subr.mxu1 %v4110_v19  ;;  %v4587_v55 = vpop.permute.xlu1 %4586 }
 0x340   :  { %4153 = vmatpush1.msra.mxu1 %v4109_v63  ;;  %v4599_v41 = vsel %vm4598_vm8, %v4587_v55, %v4589_v57 }
 0x341   :  { %5694 = vmatmul.mubr.msk.f32.vlgmr.msra.gmra.mxu1 %vm1458_vm10, %v5693_v10  ;;  %v3862_v26 = vpop.permute.xlu0 %3861  ;;  %5883 = vmatprep.subr.mxu1 %v5992_v13 }
 0x342   :  { %v3868_v8 = vsel %vm3863_vm5, %v3860_v44, %v3862_v26  ;;  %5885 = vmatprep.mubr.msk.f32.mxu1 %vm6006_vm12, %v5992_v13 }
 0x343   :  { %5879 = vmatpush3.msra.mxu0 %v3868_v8  ;;  %v4595_v38 = vpop.permute.xlu1 %4594 }
 0x344   :  { %5881 = vmatmul.mubr.msk.f32.vlgmr.msra.gmra.mxu0 %vm1458_vm10, %v5689_v49  ;;  %4223 = vmatprep.subr.mxu0 %v4112_v21 }
 0x345   :  { %4224 = vmatpush1.msra.mxu0 %v4111_v35  ;;  %v4107_v9 = vpop.permute.xlu0 %4106  ;;  %4257 = vmatprep.mubr.f32.mxu0 %v5992_v13 }
 0x346   :  { %v4113_v59 = vsel %vm4108_vm6, %v4105_v37, %v4107_v9 }
 0x347   :  { %5884 = vmatpush3.msra.mxu1 %v4113_v59  ;;  %v4593_v15 = vpop.permute.xlu1 %4592 }
 0x348   :  { %5695 = vmatmul.mubr.msk.f32.vlgmr.msra.gmra.mxu0 %vm1458_vm10, %v5693_v10  ;;  %5886 = vmatmul.mubr.msk.f32.vlgmr.msra.gmra.mxu1 %vm1458_vm10, %v5693_v10  ;;  %v4602_v36 = vsel %vm4598_vm8, %v4593_v15, %v4595_v38 }
 0x349   :  { %v4348_v54 = vpop.permute.xlu0 %4347  ;;  %4502 = vmatprep.mubr.f32.mxu1 %v5992_v13  ;;  %4431 = vmatprep.mubr.f32.mxu0 %v5992_v13 }
 0x34a   :  { %v4357_v27 = vsel %vm4353_vm7, %v4348_v54, %v7652_v20 }
 0x34b   :  { %4468 = vmatprep.subr.mxu1 %v4357_v27  ;;  %v4840_v51 = vpop.permute.xlu1 %4839 }
 0x34d   :  { %v4346_v24 = vpop.permute.xlu0 %4345 }
 0x34e   :  { %v4356_v11 = vsel %vm4353_vm7, %v4346_v24, %v4348_v54  ;;  %v4355_v5 = vsel %vm4353_vm7, %v4344_v0, %v4346_v24 }
 0x34f   :  { %4397 = vmatprep.subr.mxu0 %v4355_v5  ;;  %4469 = vmatpush1.msra.mxu1 %v4356_v11  ;;  %v4834_v22 = vpop.permute.xlu1 %4833 }
 0x350   :  { %5699 = vmatmul.mubr.msk.f32.vlgmr.msra.gmra.mxu1 %vm1458_vm10, %v5697_v52 }
 0x351   :  { %v4342_v42 = vpop.permute.xlu0 %4341  ;;  %4676 = vmatprep.mubr.f32.mxu1 %v5992_v13 }
 0x352   :  { %v4354_v53 = vsel %vm4353_vm7, %v4342_v42, %v4344_v0 }
 0x353   :  { %4398 = vmatpush1.msra.mxu0 %v4354_v53  ;;  %v5079_v7 = vpop.permute.xlu1 %5078 }
 0x354   :  { %5698 = vmatmul.mubr.msk.f32.vlgmr.msra.gmra.mxu0 %vm1458_vm10, %v5697_v52  ;;  %5888 = vmatprep.subr.mxu0 %v5992_v13 }
 0x355   :  { %v4591_v61 = vpop.permute.xlu0 %4590  ;;  %5890 = vmatprep.mubr.msk.f32.mxu0 %vm6006_vm12, %v5992_v13 }
 0x356   :  { %v4600_v28 = vsel %vm4598_vm8, %v4589_v57, %v4591_v61  ;;  %v4601_v34 = vsel %vm4598_vm8, %v4591_v61, %v4593_v15 }
 0x357   :  { %4642 = vmatprep.subr.mxu1 %v4600_v28  ;;  %v5077_v4 = vpop.permute.xlu1 %5076  ;;  %v5366_v28 = vld [vmem:[%s8024_s6 + $0xf8] sm:$0xff] }
 0x358   :  { %4643 = vmatpush1.msra.mxu1 %v4599_v41  ;;  %v5089_v40 = vsel %vm5088_vm11, %v5077_v4, %v5079_v7  ;;  %v5350_v41 = vld [vmem:[%s8024_s6 + $0x78] sm:$0xff] }
 0x359   :  { %5702 = vmatmul.mubr.msk.f32.vlgmr.msra.gmra.mxu1 %vm1458_vm10, %v5701_v62  ;;  %v4352_v56 = vpop.permute.xlu0 %4351  ;;  %5893 = vmatprep.subr.mxu1 %v5992_v13  ;;  %v5362_v4 = vld [vmem:[%s8024_s6 + $0xd8] sm:$0xff] }
 0x35a   :  { %v4358_v18 = vsel %vm4353_vm7, %v7652_v20, %v4352_v56  ;;  %5895 = vmatprep.mubr.msk.f32.mxu1 %vm6006_vm12, %v5992_v13  ;;  %v5365_v56 = vld [vmem:[%s8024_s6 + $0xf0] sm:$0xff] }
 0x35b   :  { %5889 = vmatpush3.msra.mxu0 %v4358_v18  ;;  %v5083_v48 = vpop.permute.xlu1 %5082  ;;  %v5349_v18 = vld [vmem:[%s8024_s6 + $0x70] sm:$0xff] }
 0x35c   :  { %5891 = vmatmul.mubr.msk.f32.vlgmr.msra.gmra.mxu0 %vm1458_vm10, %v5697_v52  ;;  %4713 = vmatprep.subr.mxu0 %v4602_v36 }
 0x35d   :  { %4714 = vmatpush1.msra.mxu0 %v4601_v34  ;;  %v4597_v31 = vpop.permute.xlu0 %4596  ;;  %4747 = vmatprep.mubr.f32.mxu0 %v5992_v13  ;;  %v5364_v34 = vld [vmem:[%s8024_s6 + $0xe8] sm:$0xff] }
 0x35e   :  { %v4603_v50 = vsel %vm4598_vm8, %v4595_v38, %v4597_v31 }
 0x35f   :  { %5894 = vmatpush3.msra.mxu1 %v4603_v50  ;;  %v5087_v2 = vpop.permute.xlu1 %5086 }
 0x360   :  { %5703 = vmatmul.mubr.msk.f32.vlgmr.msra.gmra.mxu0 %vm1458_vm10, %v5701_v62  ;;  %5896 = vmatmul.mubr.msk.f32.vlgmr.msra.gmra.mxu1 %vm1458_vm10, %v5701_v62 }
 0x361   :  { %v4838_v32 = vpop.permute.xlu0 %4837  ;;  %4992 = vmatprep.mubr.f32.mxu1 %v5992_v13  ;;  %4921 = vmatprep.mubr.f32.mxu0 %v5992_v13 }
 0x362   :  { %v4847_v14 = vsel %vm4843_vm9, %v4838_v32, %v4840_v51 }
 0x363   :  { %4958 = vmatprep.subr.mxu1 %v4847_v14 }
 0x365   :  { %v4836_v29 = vpop.permute.xlu0 %4835 }
 0x366   :  { %v4846_v23 = vsel %vm4843_vm9, %v4836_v29, %v4838_v32  ;;  %v4845_v25 = vsel %vm4843_vm9, %v4834_v22, %v4836_v29  ;;  %v5363_v29 = vld [vmem:[%s8024_s6 + $0xe0] sm:$0xff] }
 0x367   :  { %4887 = vmatprep.subr.mxu0 %v4845_v25  ;;  %4959 = vmatpush1.msra.mxu1 %v4846_v23 }
 0x368   :  { %5707 = vmatmul.mubr.msk.f32.vlgmr.msra.gmra.mxu1 %vm1458_vm10, %v5705_v1 }
 0x369   :  { %v4832_v12 = vpop.permute.xlu0 %4831  ;;  %5166 = vmatprep.mubr.f32.mxu1 %v5992_v13 }
 0x36a   :  { %v4844_v46 = vsel %vm4843_vm9, %v4832_v12, %v4834_v22  ;;  %v5348_v22 = vld [vmem:[%s8024_s6 + $0x68] sm:$0xff]  ;;  %v5346_v12 = vld [vmem:[%s8024_s6 + $0x58] sm:$0xff] }
 0x36b   :  { %4888 = vmatpush1.msra.mxu0 %v4844_v46  ;;  %v5398_v46 = vld [vmem:[%s8024_s6 + $0x1f8] sm:$0xff] }
 0x36c   :  { %5706 = vmatmul.mubr.msk.f32.vlgmr.msra.gmra.mxu0 %vm1458_vm10, %v5705_v1  ;;  %5898 = vmatprep.subr.mxu0 %v5992_v13 }
 0x36d   :  { %v5081_v16 = vpop.permute.xlu0 %5080  ;;  %5900 = vmatprep.mubr.msk.f32.mxu0 %vm6006_vm12, %v5992_v13 }
 0x36e   :  { %v5090_v44 = vsel %vm5088_vm11, %v5079_v7, %v5081_v16  ;;  %v5091_v20 = vsel %vm5088_vm11, %v5081_v16, %v5083_v48 }
 0x36f   :  { %5132 = vmatprep.subr.mxu1 %v5090_v44  ;;  %v5361_v44 = vld [vmem:[%s8024_s6 + $0xd0] sm:$0xff] }
 0x370   :  { %5133 = vmatpush1.msra.mxu1 %v5089_v40  ;;  %v5345_v40 = vld [vmem:[%s8024_s6 + $0x50] sm:$0xff] }
 0x371   :  { %5710 = vmatmul.mubr.msk.f32.vlgmr.msra.gmra.mxu1 %vm1458_vm10, %v5709_v43  ;;  %v4842_v37 = vpop.permute.xlu0 %4841  ;;  %5903 = vmatprep.subr.mxu1 %v5992_v13 }
 0x372   :  { %v4848_v30 = vsel %vm4843_vm9, %v4840_v51, %v4842_v37  ;;  %5905 = vmatprep.mubr.msk.f32.mxu1 %vm6006_vm12, %v5992_v13  ;;  %v5397_v37 = vld [vmem:[%s8024_s6 + $0x1f0] sm:$0xff] }
 0x373   :  { %5899 = vmatpush3.msra.mxu0 %v4848_v30  ;;  %v5360_v30 = vld [vmem:[%s8024_s6 + $0xc8] sm:$0xff] }
 0x374   :  { %5901 = vmatmul.mubr.msk.f32.vlgmr.msra.gmra.mxu0 %vm1458_vm10, %v5705_v1  ;;  %v5347_v1 = vld [vmem:[%s8024_s6 + $0x60] sm:$0xff] }
 0x375   :  { %v5085_v17 = vpop.permute.xlu0 %5084  ;;  %5237 = vmatprep.mubr.f32.mxu0 %v5992_v13 }
 0x376   :  { %v5093_v39 = vsel %vm5088_vm11, %v5085_v17, %v5087_v2  ;;  %v5092_v58 = vsel %vm5088_vm11, %v5083_v48, %v5085_v17  ;;  %v5381_v2 = vld [vmem:[%s8024_s6 + $0x170] sm:$0xff] }
 0x377   :  { %5203 = vmatprep.subr.mxu0 %v5092_v58  ;;  %5904 = vmatpush3.msra.mxu1 %v5093_v39  ;;  %v5344_v39 = vld [vmem:[%s8024_s6 + $0x48] sm:$0xff] }
 0x378   :  { %5204 = vmatpush1.msra.mxu0 %v5091_v20  ;;  %5906 = vmatmul.mubr.msk.f32.vlgmr.msra.gmra.mxu1 %vm1458_vm10, %v5709_v43  ;;  %v5396_v58 = vld [vmem:[%s8024_s6 + $0x1e8] sm:$0xff] }
 0x379   :  { %5711 = vmatmul.mubr.msk.f32.vlgmr.msra.gmra.mxu0 %vm1458_vm10, %v5709_v43  ;;  %5747 = vmatprep.subr.mxu0 %v5366_v28  ;;  %v5382_v43 = vld [vmem:[%s8024_s6 + $0x178] sm:$0xff]  ;;  %v5391_v28 = vld [vmem:[%s8024_s6 + $0x1c0] sm:$0xff]  ;;  %vm5412_vm10 = vcmask 1046528  }
 0x37a   :  { %v1528_v60 = vpop.f32.mrf.mxu1  ;;  %5748 = vmatpush3.msra.mxu0 %v5350_v41  ;;  %5782 = vmatprep.subr.mxu1 %v5398_v46  ;;  %v5388_v46 = vld [vmem:[%s8024_s6 + $0x1a8] sm:$0xff] }
 0x37b   :  { %5749 = vmatprep.subr.mxu0 %v5365_v56  ;;  %5783 = vmatpush3.msra.mxu1 %v5382_v43  ;;  %v5375_v56 = vld [vmem:[%s8024_s6 + $0x140] sm:$0xff]  ;;  %v5372_v43 = vld [vmem:[%s8024_s6 + $0x128] sm:$0xff] }
 0x37c   :  { %v1530_v49 = vpop.f32.mrf.mxu1  ;;  %5750 = vmatpush3.msra.mxu0 %v5349_v18  ;;  %5784 = vmatprep.subr.mxu1 %v5397_v37  ;;  %v5387_v37 = vld [vmem:[%s8024_s6 + $0x1a0] sm:$0xff] }
 0x37d   :  { %5751 = vmatprep.subr.mxu0 %v5364_v34  ;;  %5785 = vmatpush3.msra.mxu1 %v5381_v2  ;;  %v5338_v34 = vld [vmem:[%s8024_s6 + $0x18] sm:$0xff] }
 0x37e   :  { %5752 = vmatpush3.msra.mxu0 %v5348_v22  ;;  %5786 = vmatprep.subr.mxu1 %v5396_v58  ;;  %v5390_v22 = vld [vmem:[%s8024_s6 + $0x1b8] sm:$0xff] }
 0x37f   :  { %5753 = vmatprep.subr.mxu0 %v5363_v29  ;;  %v5389_v29 = vld [vmem:[%s8024_s6 + $0x1b0] sm:$0xff]  ;;  %v5370_v58 = vld [vmem:[%s8024_s6 + $0x118] sm:$0xff] }
 0x380   :  { %v1599_v45 = vpop.f32.mrf.mxu1  ;;  %5754 = vmatpush3.msra.mxu0 %v5347_v1 }
 0x381   :  { %5755 = vmatprep.subr.mxu0 %v5362_v4 }
 0x382   :  { %v1601_v33 = vpop.f32.mrf.mxu1  ;;  %5756 = vmatpush3.msra.mxu0 %v5346_v12  ;;  %v5336_v12 = vld [vmem:[%s8024_s6 + $0x8] sm:$0xff] }
 0x383   :  { %5757 = vmatprep.subr.mxu0 %v5361_v44  ;;  %v5351_v44 = vld [vmem:[%s8024_s6 + $0x80] sm:$0xff] }
 0x384   :  { %v1670_v0 = vpop.f32.mrf.mxu1  ;;  %5758 = vmatpush3.msra.mxu0 %v5345_v40 }
 0x385   :  { %5759 = vmatprep.subr.mxu0 %v5360_v30  ;;  %v5371_v30 = vld [vmem:[%s8024_s6 + $0x120] sm:$0xff] }
 0x386   :  { %v5832_v47 = vpop.f32.mrf.mxu1  ;;  %5760 = vmatpush3.msra.mxu0 %v5344_v39 }
 0x387   :  { %v5395_v47 = vld [vmem:[%s8024_s6 + $0x1e0] sm:$0xff] }
 0x388   :  { %v1763_v3 = vpop.f32.mrf.mxu1 }
 0x389   :  { %v1764_v6 = vadd.f32 %v1763_v3, %v1528_v60 }
 0x38a   :  { %v1765_v19 = vpop.f32.mrf.mxu1 }
 0x38b   :  { %v1766_v10 = vadd.f32 %v1765_v19, %v1530_v49  ;;  %v5359_v49 = vld [vmem:[%s8024_s6 + $0xc0] sm:$0xff] }
 0x38c   :  { %v1834_v63 = vpop.f32.mrf.mxu0  ;;  %v1905_v57 = vpop.f32.mrf.mxu1  ;;  %5761 = vmatprep.subr.mxu0 %v5359_v49  ;;  %v5379_v19 = vld [vmem:[%s8024_s6 + $0x160] sm:$0xff] }
 0x38d   :  { %v1835_v26 = vadd.f32 %v1834_v63, %v1599_v45  ;;  %v1906_v8 = vadd.f32 %v1905_v57, %v1670_v0  ;;  %v5380_v45 = vld [vmem:[%s8024_s6 + $0x168] sm:$0xff]  ;;  %v5394_v57 = vld [vmem:[%s8024_s6 + $0x1d8] sm:$0xff] }
 0x38e   :  { %v1836_v21 = vpop.f32.mrf.mxu0  ;;  %v5837_v35 = vpop.f32.mrf.mxu1  ;;  %5787 = vmatpush3.msra.mxu1 %v5380_v45  ;;  %v5369_v45 = vld [vmem:[%s8024_s6 + $0x110] sm:$0xff] }
 0x38f   :  { %v1837_v55 = vadd.f32 %v1836_v21, %v1601_v33  ;;  %v5343_v33 = vld [vmem:[%s8024_s6 + $0x40] sm:$0xff]  ;;  %5788 = vmatprep.subr.mxu1 %v5395_v47  ;;  %v5378_v21 = vld [vmem:[%s8024_s6 + $0x158] sm:$0xff]  ;;  %v5341_v35 = vld [vmem:[%s8024_s6 + $0x30] sm:$0xff] }
 0x390   :  { %v2071_v9 = vpop.f32.mrf.mxu1  ;;  %5762 = vmatpush3.msra.mxu0 %v5343_v33  ;;  %5789 = vmatpush3.msra.mxu1 %v5379_v19  ;;  %v5368_v47 = vld [vmem:[%s8024_s6 + $0x108] sm:$0xff] }
 0x391   :  { %v2148_v59 = vadd.f32 %v2071_v9, %v1835_v26  ;;  %5790 = vmatprep.subr.mxu1 %v5394_v57 }
 0x392   :  { %v2073_v54 = vpop.f32.mrf.mxu1  ;;  %5791 = vmatpush3.msra.mxu1 %v5378_v21 }
 0x393   :  { %v2149_v27 = vadd.f32 %v2073_v54, %v1837_v55 }
 0x394   :  { %v2000_v38 = vpop.f32.mrf.mxu0 }
 0x395   :  { %v2146_v24 = vadd.f32 %v2000_v38, %v1764_v6  ;;  %v5358_v6 = vld [vmem:[%s8024_s6 + $0xb8] sm:$0xff]  ;;  %v5377_v38 = vld [vmem:[%s8024_s6 + $0x150] sm:$0xff] }
 0x396   :  { %v2002_v52 = vpop.f32.mrf.mxu0  ;;  %5763 = vmatprep.subr.mxu0 %v5358_v6  ;;  %v5383_v6 = vld [vmem:[%s8024_s6 + $0x180] sm:$0xff] }
 0x397   :  { %v2147_v11 = vadd.f32 %v2002_v52, %v1766_v10  ;;  %v5342_v10 = vld [vmem:[%s8024_s6 + $0x38] sm:$0xff] }
 0x398   :  { %v2142_v5 = vpop.f32.mrf.mxu0  ;;  %5764 = vmatpush3.msra.mxu0 %v5342_v10 }
 0x399   :  { %v2150_v15 = vadd.f32 %v2142_v5, %v1906_v8  ;;  %v5357_v8 = vld [vmem:[%s8024_s6 + $0xb0] sm:$0xff]  ;;  %v5355_v5 = vld [vmem:[%s8024_s6 + $0xa0] sm:$0xff] }
 0x39a   :  { %v2242_v42 = vpop.f32.mrf.mxu1  ;;  %v5842_v53 = vpop.f32.mrf.mxu0  ;;  %5765 = vmatprep.subr.mxu0 %v5357_v8 }
 0x39b   :  { %v2388_v61 = vadd.f32 %v2242_v42, %v2146_v24  ;;  %5766 = vmatpush3.msra.mxu0 %v5341_v35  ;;  %v5340_v24 = vld [vmem:[%s8024_s6 + $0x28] sm:$0xff] }
 0x39c   :  { %v2244_v62 = vpop.f32.mrf.mxu1 }
 0x39d   :  { %v2389_v51 = vadd.f32 %v2244_v62, %v2147_v11  ;;  %v5392_v11 = vld [vmem:[%s8024_s6 + $0x1c8] sm:$0xff] }
 0x39e   :  { %v2384_v36 = vpop.f32.mrf.mxu1 }
 0x39f   :  { %v2313_v31 = vpop.f32.mrf.mxu0  ;;  %v2392_v50 = vadd.f32 %v2384_v36, %v2150_v15  ;;  %v5376_v15 = vld [vmem:[%s8024_s6 + $0x148] sm:$0xff] }
 0x3a0   :  { %v2390_v32 = vadd.f32 %v2313_v31, %v2148_v59  ;;  %v5847_v14 = vpop.f32.mrf.mxu1  ;;  %v5393_v59 = vld [vmem:[%s8024_s6 + $0x1d0] sm:$0xff] }
 0x3a1   :  { %v2315_v7 = vpop.f32.mrf.mxu0  ;;  %5792 = vmatprep.subr.mxu1 %v5393_v59 }
 0x3a2   :  { %v2391_v23 = vadd.f32 %v2315_v7, %v2149_v27  ;;  %v5356_v27 = vld [vmem:[%s8024_s6 + $0xa8] sm:$0xff]  ;;  %5793 = vmatpush3.msra.mxu1 %v5377_v38  ;;  %v5337_v7 = vld [vmem:[%s8024_s6 + $0x10] sm:$0xff] }
 0x3a3   :  { %v2555_v25 = vpop.f32.mrf.mxu1  ;;  %5767 = vmatprep.subr.mxu0 %v5356_v27  ;;  %5794 = vmatprep.subr.mxu1 %v5392_v11 }
 0x3a4   :  { %v7782_v16 = vadd.f32 %v2555_v25, %v2390_v32  ;;  %5768 = vmatpush3.msra.mxu0 %v5340_v24  ;;  %5795 = vmatpush3.msra.mxu1 %v5376_v15  ;;  %v5374_v32 = vld [vmem:[%s8024_s6 + $0x138] sm:$0xff]  ;;  %v5373_v25 = vld [vmem:[%s8024_s6 + $0x130] sm:$0xff] }
 0x3a5   :  { %v2557_v48 = vpop.f32.mrf.mxu1  ;;  %5769 = vmatprep.subr.mxu0 %v5355_v5  ;;  %5796 = vmatprep.subr.mxu1 %v5391_v28 }
 0x3a6   :  { %v7802_v17 = vadd.f32 %v2557_v48, %v2391_v23  ;;  %5797 = vmatpush3.msra.mxu1 %v5375_v56  ;;  %v5352_v23 = vld [vmem:[%s8024_s6 + $0x88] sm:$0xff]  ;;  %v5335_v48 = vld [vmem:[%s8024_s6] sm:$0xff] }
 0x3a7   :  { %5798 = vmatprep.subr.mxu1 %v5390_v22 }
 0x3a8   :  { %v2484_v20 = vpop.f32.mrf.mxu0  ;;  %5799 = vmatpush3.msra.mxu1 %v5374_v32 }
 0x3a9   :  { %v2630_v60 = vadd.f32 %v2484_v20, %v2388_v61  ;;  %v5339_v61 = vld [vmem:[%s8024_s6 + $0x20] sm:$0xff]  ;;  %5800 = vmatprep.subr.mxu1 %v5389_v29 }
 0x3aa   :  { %v2486_v0 = vpop.f32.mrf.mxu0  ;;  %5770 = vmatpush3.msra.mxu0 %v5339_v61  ;;  %5801 = vmatpush3.msra.mxu1 %v5373_v25 }
 0x3ab   :  { %v2631_v3 = vadd.f32 %v2486_v0, %v2389_v51  ;;  %v5354_v51 = vld [vmem:[%s8024_s6 + $0x98] sm:$0xff]  ;;  %5802 = vmatprep.subr.mxu1 %v5388_v46  ;;  %v5384_v0 = vld [vmem:[%s8024_s6 + $0x188] sm:$0xff] }
 0x3ac   :  { %v2626_v63 = vpop.f32.mrf.mxu0  ;;  %5771 = vmatprep.subr.mxu0 %v5354_v51  ;;  %5803 = vmatpush3.msra.mxu1 %v5372_v43 }
 0x3ad   :  { %v2634_v26 = vadd.f32 %v2626_v63, %v2392_v50  ;;  %5772 = vmatpush3.msra.mxu0 %v5338_v34  ;;  %v5353_v50 = vld [vmem:[%s8024_s6 + $0x90] sm:$0xff]  ;;  %5804 = vmatprep.subr.mxu1 %v5387_v37  ;;  %v5367_v63 = vld [vmem:[%s8024_s6 + $0x100] sm:$0xff] }
 0x3ae   :  { %v2726_v55 = vpop.f32.mrf.mxu1  ;;  %v5852_v9 = vpop.f32.mrf.mxu0  ;;  %5773 = vmatprep.subr.mxu0 %v5353_v50  ;;  %5805 = vmatpush3.msra.mxu1 %v5371_v30 }
 0x3af   :  { %v7846_v54 = vadd.f32 %v2726_v55, %v2630_v60  ;;  %5774 = vmatpush3.msra.mxu0 %v5337_v7  ;;  %v5385_v60 = vld [vmem:[%s8024_s6 + $0x190] sm:$0xff] }
 0x3b0   :  { %v2728_v52 = vpop.f32.mrf.mxu1  ;;  %5775 = vmatprep.subr.mxu0 %v5352_v23 }
 0x3b1   :  { %v7866_v42 = vadd.f32 %v2728_v52, %v2631_v3  ;;  %5776 = vmatpush3.msra.mxu0 %v5336_v12 }
 0x3b2   :  { %v2868_v53 = vpop.f32.mrf.mxu1  ;;  %5777 = vmatprep.subr.mxu0 %v5351_v44 }
 0x3b3   :  { %v2797_v62 = vpop.f32.mrf.mxu0  ;;  %v2876_v41 = vadd.f32 %v2868_v53, %v2634_v26  ;;  %5778 = vmatpush3.msra.mxu0 %v5335_v48 }
 0x3b4   :  { %v2874_v18 = vadd.f32 %v2797_v62, %v7782_v16  ;;  %v5857_v36 = vpop.f32.mrf.mxu1  ;;  %5908 = vmatprep.subr.mxu0 %v5992_v13 }
 0x3b5   :  { %v2799_v31 = vpop.f32.mrf.mxu0 }
 0x3b6   :  { %v2875_v14 = vadd.f32 %v2799_v31, %v7802_v17  ;;  %v5386_v17 = vld [vmem:[%s8024_s6 + $0x198] sm:$0xff] }
 0x3b7   :  { %v3039_v1 = vpop.f32.mrf.mxu1  ;;  %5806 = vmatprep.subr.mxu1 %v5386_v17 }
 0x3b8   :  { %v3116_v4 = vadd.f32 %v3039_v1, %v2874_v18  ;;  %5807 = vmatpush3.msra.mxu1 %v5370_v58 }
 0x3b9   :  { %v3041_v16 = vpop.f32.mrf.mxu1  ;;  %5808 = vmatprep.subr.mxu1 %v5385_v60 }
 0x3ba   :  { %v3117_v40 = vadd.f32 %v3041_v16, %v2875_v14  ;;  %5809 = vmatpush3.msra.mxu1 %v5369_v45 }
 0x3bb   :  { %5810 = vmatprep.subr.mxu1 %v5384_v0 }
 0x3bc   :  { %v2968_v2 = vpop.f32.mrf.mxu0  ;;  %5811 = vmatpush3.msra.mxu1 %v5368_v47 }
 0x3bd   :  { %v3114_v39 = vadd.f32 %v2968_v2, %v7846_v54  ;;  %5812 = vmatprep.subr.mxu1 %v5383_v6 }
 0x3be   :  { %v2970_v20 = vpop.f32.mrf.mxu0  ;;  %5813 = vmatpush3.msra.mxu1 %v5367_v63 }
 0x3bf   :  { %v3115_v49 = vadd.f32 %v2970_v20, %v7866_v42 }
 0x3c0   :  { %v3110_v33 = vpop.f32.mrf.mxu0 }
 0x3c1   :  { %v3118_v3 = vadd.f32 %v3110_v33, %v2876_v41 }
 0x3c2   :  { %v3210_v19 = vpop.f32.mrf.mxu1  ;;  %v5862_v10 = vpop.f32.mrf.mxu0 }
 0x3c3   :  { %v3356_v57 = vadd.f32 %v3210_v19, %v3114_v39 }
 0x3c4   :  { %v3212_v26 = vpop.f32.mrf.mxu1 }
 0x3c5   :  { %v3357_v8 = vadd.f32 %v3212_v26, %v3115_v49 }
 0x3c6   :  { %v3352_v21 = vpop.f32.mrf.mxu1 }
 0x3c7   :  { %v3281_v35 = vpop.f32.mrf.mxu0  ;;  %v3360_v55 = vadd.f32 %v3352_v21, %v3118_v3 }
 0x3c8   :  { %v3358_v9 = vadd.f32 %v3281_v35, %v3116_v4  ;;  %v5867_v59 = vpop.f32.mrf.mxu1 }
 0x3c9   :  { %v3283_v54 = vpop.f32.mrf.mxu0 }
 0x3ca   :  { %v3359_v27 = vadd.f32 %v3283_v54, %v3117_v40 }
 0x3cb   :  { %v3523_v38 = vpop.f32.mrf.mxu1 }
 0x3cc   :  { %v3600_v24 = vadd.f32 %v3523_v38, %v3358_v9 }
 0x3cd   :  { %v3525_v52 = vpop.f32.mrf.mxu1 }
 0x3ce   :  { %v3601_v11 = vadd.f32 %v3525_v52, %v3359_v27 }
 0x3cf   :  { %v3452_v5 = vpop.f32.mrf.mxu0 }
 0x3d0   :  { %v3598_v15 = vadd.f32 %v3452_v5, %v3356_v57 }
 0x3d1   :  { %v3454_v42 = vpop.f32.mrf.mxu0 }
 0x3d2   :  { %v3599_v53 = vadd.f32 %v3454_v42, %v3357_v8 }
 0x3d3   :  { %v3594_v61 = vpop.f32.mrf.mxu0 }
 0x3d4   :  { %v3602_v28 = vadd.f32 %v3594_v61, %v3360_v55 }
 0x3d5   :  { %v5872_v62 = vpop.f32.mrf.mxu0 }
 0x3d6   :  { %v3698_v41 = vpop.f32.mrf.mxu1 }
 0x3d7   :  { %v3844_v58 = vadd.f32 %v3698_v41, %v3598_v15  ;;  %v5323_v15 = vpop.permute.xlu0 %5322 }
 0x3d8   :  { %v3700_v51 = vpop.f32.mrf.mxu1 }
 0x3d9   :  { %v3845_v60 = vadd.f32 %v3700_v51, %v3599_v53 }
 0x3db   :  { %v3769_v34 = vpop.f32.mrf.mxu0 }
 0x3dc   :  { %v3846_v10 = vadd.f32 %v3769_v34, %v3600_v24 }
 0x3dd   :  { %v3771_v22 = vpop.f32.mrf.mxu0 }
 0x3de   :  { %v3847_v21 = vadd.f32 %v3771_v22, %v3601_v11 }
 0x3f0   :  { %v3840_v56 = vpop.f32.mrf.mxu1 }
 0x3f1   :  { %v7954_v18 = vadd.f32 %v3840_v56, %v3602_v28 }
 0x3f2   :  { %v5877_v36 = vpop.f32.mrf.mxu1 }
 0x3f8   :  { %v4014_v31 = vpop.f32.mrf.mxu1 }
 0x3f9   :  { %v4091_v35 = vadd.f32 %v4014_v31, %v3846_v10 }
 0x3fa   :  { %v4016_v32 = vpop.f32.mrf.mxu1 }
 0x3fb   :  { %v4092_v54 = vadd.f32 %v4016_v32, %v3847_v21  ;;  %v5408_v32 = vld [vmem:[%s8024_s6 + $0x248] sm:$0x7f] }
 0x3fc   :  { %v3943_v50 = vpop.f32.mrf.mxu0 }
 0x3fd   :  { %v4089_v49 = vadd.f32 %v3943_v50, %v3844_v58 }
 0x3fe   :  { %v3945_v14 = vpop.f32.mrf.mxu0 }
 0x3ff   :  { %v4090_v45 = vadd.f32 %v3945_v14, %v3845_v60 }
 0x401   :  { %v4188_v7 = vpop.f32.mrf.mxu1 }
 0x402   :  { %v4334_v33 = vadd.f32 %v4188_v7, %v4089_v49  ;;  %v5400_v49 = vld [vmem:[%s8024_s6 + $0x208] sm:$0xff] }
 0x403   :  { %v4190_v1 = vpop.f32.mrf.mxu1 }
 0x404   :  { %v7956_v29 = vpop.f32.mrf.mxu0  ;;  %v4335_v3 = vadd.f32 %v4190_v1, %v4090_v45  ;;  %v5399_v45 = vld [vmem:[%s8024_s6 + $0x200] sm:$0xff] }
 0x406   :  { %v5882_v23 = vpop.f32.mrf.mxu0 }
 0x407   :  { %v4093_v23 = vadd.f32 %v7956_v29, %v7954_v18  ;;  %v5406_v18 = vld [vmem:[%s8024_s6 + $0x238] sm:$0xff] }
 0x408   :  { %v7958_v25 = vpop.f32.mrf.mxu1  ;;  %v4259_v12 = vpop.f32.mrf.mxu0 }
 0x409   :  { %v4336_v27 = vadd.f32 %v4259_v12, %v4091_v35  ;;  %v5407_v12 = vld [vmem:[%s8024_s6 + $0x240] sm:$0xff] }
 0x40a   :  { %v5887_v4 = vpop.f32.mrf.mxu1  ;;  %v4261_v46 = vpop.f32.mrf.mxu0 }
 0x40b   :  { %v4337_v42 = vadd.f32 %v4261_v46, %v4092_v54 }
 0x410   :  { %v4504_v16 = vpop.f32.mrf.mxu1 }
 0x411   :  { %v4581_v53 = vadd.f32 %v4504_v16, %v4336_v27  ;;  %v4338_v16 = vadd.f32 %v7958_v25, %v4093_v23 }
 0x412   :  { %v4506_v43 = vpop.f32.mrf.mxu1 }
 0x413   :  { %v4582_v62 = vadd.f32 %v4506_v43, %v4337_v42 }
 0x414   :  { %v4433_v44 = vpop.f32.mrf.mxu0 }
 0x415   :  { %v4579_v6 = vadd.f32 %v4433_v44, %v4334_v33 }
 0x416   :  { %v4435_v40 = vpop.f32.mrf.mxu0 }
 0x417   :  { %v4580_v63 = vadd.f32 %v4435_v40, %v4335_v3  ;;  %v5405_v40 = vld [vmem:[%s8024_s6 + $0x230] sm:$0xff] }
 0x419   :  { %v4678_v48 = vpop.f32.mrf.mxu1 }
 0x41a   :  { %v4824_v57 = vadd.f32 %v4678_v48, %v4579_v6 }
 0x41b   :  { %v4680_v30 = vpop.f32.mrf.mxu1 }
 0x41c   :  { %v7960_v37 = vpop.f32.mrf.mxu0  ;;  %v4825_v55 = vadd.f32 %v4680_v30, %v4580_v63 }
 0x41d   :  { %v4583_v43 = vadd.f32 %v7960_v37, %v4338_v16 }
 0x41e   :  { %v5892_v2 = vpop.f32.mrf.mxu0 }
 0x41f   :  { %v5404_v2 = vld [vmem:[%s8024_s6 + $0x228] sm:$0xff] }
 0x420   :  { %v7962_v17 = vpop.f32.mrf.mxu1  ;;  %v4749_v20 = vpop.f32.mrf.mxu0 }
 0x421   :  { %v4826_v41 = vadd.f32 %v4749_v20, %v4581_v53  ;;  %v4828_v25 = vadd.f32 %v7962_v17, %v4583_v43  ;;  %v5402_v17 = vld [vmem:[%s8024_s6 + $0x218] sm:$0xff]  ;;  %v5401_v20 = vld [vmem:[%s8024_s6 + $0x210] sm:$0xff] }
 0x422   :  { %v5897_v39 = vpop.f32.mrf.mxu1  ;;  %v4751_v0 = vpop.f32.mrf.mxu0 }
 0x423   :  { %v4827_v11 = vadd.f32 %v4751_v0, %v4582_v62  ;;  %v5403_v39 = vld [vmem:[%s8024_s6 + $0x220] sm:$0xff] }
 0x428   :  { %v4994_v47 = vpop.f32.mrf.mxu1 }
 0x429   :  { %v5071_v36 = vadd.f32 %v4994_v47, %v4826_v41 }
 0x42a   :  { %v4996_v26 = vpop.f32.mrf.mxu1 }
 0x42b   :  { %v5072_v14 = vadd.f32 %v4996_v26, %v4827_v11 }
 0x42c   :  { %v4923_v19 = vpop.f32.mrf.mxu0 }
 0x42d   :  { %v5069_v9 = vadd.f32 %v4923_v19, %v4824_v57 }
 0x42e   :  { %v4925_v8 = vpop.f32.mrf.mxu0 }
 0x42f   :  { %v5070_v38 = vadd.f32 %v4925_v8, %v4825_v55 }
 0x431   :  { %v5168_v59 = vpop.f32.mrf.mxu1 }
 0x432   :  { %v5314_v52 = vadd.f32 %v5168_v59, %v5069_v9 }
 0x433   :  { %v5170_v5 = vpop.f32.mrf.mxu1 }
 0x434   :  { %v5315_v61 = vadd.f32 %v5170_v5, %v5070_v38  ;;  %v5065_v28 = vpop.f32.mrf.mxu0  ;;  %v5325_v24 = vadd.f32 %v5323_v15, %v5314_v52 }
 0x435   :  { %v5073_v37 = vadd.f32 %v5065_v28, %v4828_v25 }
 0x436   :  { %v5326_v51 = vadd.f32 %v5323_v15, %v5315_v61  ;;  %v5902_v56 = vpop.f32.mrf.mxu0  ;;  %v5330_v31 = vmax.f32 %v5325_v24, 0.0 }
 0x438   :  { %v5331_v34 = vmax.f32 %v5326_v51, 0.0  ;;  %v5310_v22 = vpop.f32.mrf.mxu1 }
 0x439   :  { %v5239_v50 = vpop.f32.mrf.mxu0  ;;  %v5318_v58 = vadd.f32 %v5310_v22, %v5073_v37 }
 0x43a   :  { %v5316_v7 = vadd.f32 %v5239_v50, %v5071_v36  ;;  %5480 = vmatprep.mubr.f32.mxu0 %v5331_v34  ;;  %v5907_v1 = vpop.f32.mrf.mxu1 }
 0x43b   :  { %v5241_v4 = vpop.f32.mrf.mxu0  ;;  %5481 = vmatmul.mubr.f32.vlgmr.msra.gmra.mxu0 %v5330_v31  ;;  %v5329_v60 = vadd.f32 %v5323_v15, %v5318_v58 }
 0x43c   :  { %v5317_v46 = vadd.f32 %v5241_v4, %v5072_v14  ;;  %5909 = vmatpush3.msk.msra.mxu0 %vm5412_vm10, %v5408_v32  ;;  %5928 = vmatprep.mubr.msk.f32.mxu0 %vm6006_vm12, %v5992_v13  ;;  %v5327_v44 = vadd.f32 %v5323_v15, %v5316_v7  ;;  %vm5626_vm12 = vcmask 11264  }
 0x43d   :  { %5910 = vmatprep.subr.mxu0 %v5992_v13  ;;  %v5334_v33 = vmax.f32 %v5329_v60, 0.0 }
 0x43e   :  { %v5328_v29 = vadd.f32 %v5323_v15, %v5317_v46  ;;  %5911 = vmatpush3.msra.mxu0 %v5407_v12  ;;  %v5332_v30 = vmax.f32 %v5327_v44, 0.0 }
 0x43f   :  { %5912 = vmatprep.subr.mxu0 %v5992_v13 }
 0x440   :  { %v5333_v48 = vmax.f32 %v5328_v29, 0.0  ;;  %5913 = vmatpush3.msra.mxu0 %v5406_v18 }
 0x441   :  { %5914 = vmatprep.subr.mxu0 %v5992_v13 }
 0x442   :  { %5915 = vmatpush3.msra.mxu0 %v5405_v40  ;;  %5550 = vmatprep.mubr.f32.mxu1 %v5333_v48 }
 0x443   :  { %5916 = vmatprep.subr.mxu0 %v5992_v13  ;;  %5551 = vmatmul.mubr.f32.vlgmr.msra.gmra.mxu1 %v5332_v30 }
 0x444   :  { %5917 = vmatpush3.msra.mxu0 %v5404_v2 }
 0x445   :  { %5918 = vmatprep.subr.mxu0 %v5992_v13 }
 0x446   :  { %5919 = vmatpush3.msra.mxu0 %v5403_v39 }
 0x447   :  { %5920 = vmatprep.subr.mxu0 %v5992_v13 }
 0x448   :  { %5921 = vmatpush3.msra.mxu0 %v5402_v17 }
 0x449   :  { %5922 = vmatprep.subr.mxu0 %v5992_v13 }
 0x44a   :  { %5923 = vmatpush3.msra.mxu0 %v5401_v20 }
 0x44b   :  { %5924 = vmatprep.subr.mxu0 %v5992_v13 }
 0x44c   :  { %5925 = vmatpush3.msra.mxu0 %v5400_v49 }
 0x44d   :  { %5926 = vmatprep.subr.mxu0 %v5992_v13 }
 0x44e   :  { %5927 = vmatpush3.msra.mxu0 %v5399_v45 }
 0x44f   :  { %5929 = vmatmul.mubr.msk.f32.vlgmr.msra.gmra.mxu0 %vm3373_vm3, %v5334_v33 }
 0x4fb   :  { %v5779_v47 = vpop.f32.mrf.mxu0 }
 0x4fd   :  { %v5780_v6 = vpop.f32.mrf.mxu0 }
 0x4fe   :  { %v5781_v10 = vadd.f32 %v5780_v6, %v5779_v47 }
 0x503   :  { %v5814_v0 = vpop.f32.mrf.mxu1 }
 0x505   :  { %v5815_v3 = vpop.f32.mrf.mxu1 }
 0x506   :  { %v5816_v19 = vadd.f32 %v5815_v3, %v5814_v0 }
 0x508   :  { %v5553_v63 = vadd.f32 %v5816_v19, %v5781_v10 }
 0x50f   :  { %v5622_v57 = vpop.f32.mrf.mxu0 }
 0x510   :  { %v5623_v26 = vadd.f32 %v5622_v57, %v5553_v63 }
 0x511   :  { %v5930_v8 = vpop.f32.mrf.mxu0 }
 0x512   :  { %v5627_v21 = vsel %vm5626_vm12, %v5623_v26, 0.0 }
 0x513   :  { %v5628_v35 = vrot.slane %v5627_v21, 4 }
 0x515   :  { %v5629_v55 = vadd.f32 %v5628_v35, %v5627_v21 }
 0x517   :  { %v5630_v9 = vrot.slane %v5629_v55, 2 }
 0x519   :  { %v5631_v59 = vadd.f32 %v5630_v9, %v5629_v55 }
 0x51b   :  { %v5632_v54 = vrot.slane %v5631_v59, 1 }
 0x51d   :  { %v5633_v27 = vadd.f32 %v5632_v54, %v5631_v59 }
 0x51f   :  { %v5634_v13 = vmul.f32 0.0011111111, %v5633_v27 }
 0x521   :  { %5637 = vst.msk [vmem:[%s8025_s7] sm:$0x1] %vm5636_vm13, %v5634_v13 }

</bundles_post_ra>
